<compile_context>
chip_gen: v6e
topology: v6e:2x2x1
jax: 0.10.0
libtpu: 0.0.40
codegen_flags: <defaults>
</compile_context>

<pallas_src>
import functools

import jax
import jax.numpy as jnp
from jax import lax
from jax.experimental import pallas as pl
from jax.experimental.pallas import tpu as pltpu


# ----------------------------------------------------------------------------
# Fused kernel: whole bottleneck block for one batch element
# ----------------------------------------------------------------------------
def _bottleneck_kernel(x_ref, w1_ref, b1_ref, w2_ref, b2_ref, w3_ref, b3_ref,
                       o_ref, t1p_ref, *, dilation):
    d = dilation
    H, W, Cin = x_ref.shape            # batch dim squeezed by BlockSpec
    Pp = w1_ref.shape[1]               # lane-padded planes
    Cout = o_ref.shape[-1]
    HW = H * W
    bf16 = jnp.bfloat16

    # ---- conv1 (1x1, BN folded) + ReLU -> bf16 interior of the padded slab ----
    x_bf = x_ref[...].astype(bf16).reshape(HW, Cin)          # bf16 MXU operand only
    y1 = jnp.dot(x_bf, w1_ref[...], preferred_element_type=jnp.float32)
    y1 = jnp.maximum(y1 + b1_ref[...], 0.0).astype(bf16)     # (HW, Pp)
    t1p_ref[d:d + H, d:d + W, :] = y1.reshape(H, W, Pp)

    # Zero ONLY the halo strips (interior is fully overwritten every step;
    # scratch persists across grid steps and per-core, so no first-step guard).
    t1p_ref[0:d, :, :] = jnp.zeros((d, W + 2 * d, Pp), bf16)
    t1p_ref[d + H:2 * d + H, :, :] = jnp.zeros((d, W + 2 * d, Pp), bf16)
    t1p_ref[d:d + H, 0:d, :] = jnp.zeros((H, d, Pp), bf16)
    t1p_ref[d:d + H, d + W:2 * d + W, :] = jnp.zeros((H, d, Pp), bf16)

    # ---- conv2 (3x3, stride 1, padding = dilation = d, BN folded) + ReLU ----
    # One im2col strip per ky (kx taps concatenated on the lane axis): 3 matmuls
    # with K = 3*Pp, accumulated in a traced value (no VMEM round trips).
    acc = None
    for ky in range(3):
        strip = jnp.concatenate(
            [t1p_ref[ky * d:ky * d + H, kx * d:kx * d + W, :] for kx in range(3)],
            axis=-1).reshape(HW, 3 * Pp)
        part = jnp.dot(strip, w2_ref[ky], preferred_element_type=jnp.float32)
        acc = part if acc is None else acc + part
    y2 = jnp.maximum(acc + b2_ref[...], 0.0).astype(bf16)    # (HW, Pp)

    # ---- conv3 (1x1, BN folded) + identity residual + ReLU ----
    y3 = jnp.dot(y2, w3_ref[...], preferred_element_type=jnp.float32)
    out = y3.reshape(H, W, Cout) + b3_ref[...] + x_ref[...].astype(jnp.float32)
    o_ref[...] = jnp.maximum(out, 0.0).astype(o_ref.dtype)


# ----------------------------------------------------------------------------
# VMEM budget (per generation, derived instead of hard-coded)
# ----------------------------------------------------------------------------
def _vmem_limit_bytes(*byte_counts):
    need = int(sum(int(b) for b in byte_counts) * 1.5) + (8 << 20)  # compiler headroom
    try:
        cap = int(pltpu.get_tpu_info().vmem_capacity_bytes)
    except Exception:
        cap = 64 << 20                 # conservative default: v7x per-core VMEM
    return max(16 << 20, min(need, int(cap * 0.9)))


# ----------------------------------------------------------------------------
# pallas_call wrappers
# ----------------------------------------------------------------------------
def bottleneck_forward_nhwc(x_nhwc, fp, stride=1, dilation=(1, 1)):
    assert stride == 1, "TODO(synk): stride > 1 not implemented"
    d = int(dilation[1])
    N, H, W, Cin = x_nhwc.shape
    Pp = fp["w1"].shape[1]             # lane-padded planes
    Cout = fp["w3"].shape[1]
    assert Cin == Cout, "identity residual requires inplanes == planes * 4"

    # (3,3,Pp,Pp) HWIO -> (ky, kx*Pp + in, out): one K=3*Pp strip weight per ky.
    w2k = fp["w2"].reshape(3, 3 * Pp, Pp)
    kernel = functools.partial(_bottleneck_kernel, dilation=d)

    itm = x_nhwc.dtype.itemsize
    x_blk = H * W * Cin * itm
    out_blk = H * W * Cout * itm
    slab = (H + 2 * d) * (W + 2 * d) * Pp * 2
    wbytes = (fp["w1"].size + fp["w2"].size + fp["w3"].size) * 2 \
        + (fp["b1"].size + fp["b2"].size + fp["b3"].size) * 4
    limit = _vmem_limit_bytes(2 * x_blk, 2 * out_blk, slab, 2 * wbytes)

    return pl.pallas_call(
        kernel,
        out_shape=jax.ShapeDtypeStruct((N, H, W, Cout), x_nhwc.dtype),
        grid=(N,),
        in_specs=[
            pl.BlockSpec((None, H, W, Cin), lambda b: (b, 0, 0, 0)),   # x (f32)
            pl.BlockSpec((Cin, Pp), lambda b: (0, 0)),                 # w1 (bf16, folded)
            pl.BlockSpec((1, Pp), lambda b: (0, 0)),                   # shift1 (f32)
            pl.BlockSpec((3, 3 * Pp, Pp), lambda b: (0, 0, 0)),        # w2 strips (bf16)
            pl.BlockSpec((1, Pp), lambda b: (0, 0)),                   # shift2 (f32)
            pl.BlockSpec((Pp, Cout), lambda b: (0, 0)),                # w3 (bf16, folded)
            pl.BlockSpec((1, Cout), lambda b: (0, 0)),                 # shift3 (f32)
        ],
        out_specs=pl.BlockSpec((None, H, W, Cout), lambda b: (b, 0, 0, 0)),
        scratch_shapes=[
            pltpu.VMEM((H + 2 * d, W + 2 * d, Pp), jnp.bfloat16),      # padded conv1 out
        ],
        compiler_params=pltpu.CompilerParams(
            dimension_semantics=("parallel",),   # batch split across cores (v7x)
            vmem_limit_bytes=limit,
        ),
    )(x_nhwc, fp["w1"], fp["b1"], w2k, fp["b2"], fp["w3"], fp["b3"])


def bottleneck_forward(x_nchw, fp, stride=1, dilation=(1, 1)):
    # NCHW interface matching the PyTorch module.  Prefer the NHWC entry point
    # in an NHWC model to avoid these two full-tensor relayouts.
    x = jnp.transpose(x_nchw, (0, 2, 3, 1))
    y = bottleneck_forward_nhwc(x, fp, stride=stride, dilation=dilation)
    return jnp.transpose(y, (0, 3, 1, 2))


# ----------------------------------------------------------------------------
# Parameters: raw (conv weights + inference BN) and BN-folded, lane-padded form
# ----------------------------------------------------------------------------
def make_params(key, inplanes, planes, eps=1e-5):
    ks = jax.random.split(key, 15)
    expansion = 4

    def bn(kg, kb, km, kv, c):
        gamma = jax.random.normal(kg, (c,), jnp.float32) * 0.1 + 1.0
        beta = jax.random.normal(kb, (c,), jnp.float32) * 0.1
        mean = jax.random.normal(km, (c,), jnp.float32) * 0.1
        var = jax.random.uniform(kv, (c,), jnp.float32, minval=0.5, maxval=1.5)
        scale = gamma / jnp.sqrt(var + eps)
        shift = beta - mean * scale
        return scale.reshape(1, c), shift.reshape(1, c)

    w1 = jax.random.normal(ks[0], (inplanes, planes), jnp.float32) * 0.1
    w2 = jax.random.normal(ks[1], (3, 3, planes, planes), jnp.float32) * 0.1   # HWIO
    w3 = jax.random.normal(ks[2], (planes, planes * expansion), jnp.float32) * 0.1
    s1, b1 = bn(ks[3], ks[4], ks[5], ks[6], planes)
    s2, b2 = bn(ks[7], ks[8], ks[9], ks[10], planes)
    s3, b3 = bn(ks[11], ks[12], ks[13], ks[14], planes * expansion)
    return dict(w1=w1, w2=w2, w3=w3, s1=s1, b1=b1, s2=s2, b2=b2, s3=s3, b3=b3)


def fold_params(raw, lane_multiple=128):
    """Fold BN into the conv weights, zero-pad `planes` to a lane-dense multiple
    of 128, and cast MXU operands to bf16.  Padded channels are exactly zero
    through the whole block (zero weights + zero bias + ReLU)."""
    bf16 = jnp.bfloat16
    P = raw["w1"].shape[1]
    Pp = -(-P // lane_multiple) * lane_multiple

    def pad_last(a, n):
        return jnp.pad(a, [(0, 0)] * (a.ndim - 1) + [(0, n - a.shape[-1])])

    w1 = pad_last(raw["w1"] * raw["s1"], Pp).astype(bf16)                       # (Cin, Pp)
    b1 = pad_last(raw["b1"], Pp).astype(jnp.float32)                            # (1, Pp)
    w2 = raw["w2"] * raw["s2"].reshape(1, 1, 1, -1)
    w2 = jnp.pad(w2, ((0, 0), (0, 0), (0, Pp - P), (0, Pp - P))).astype(bf16)   # (3,3,Pp,Pp)
    b2 = pad_last(raw["b2"], Pp).astype(jnp.float32)                            # (1, Pp)
    w3 = jnp.pad(raw["w3"] * raw["s3"], ((0, Pp - P), (0, 0))).astype(bf16)     # (Pp, Cout)
    b3 = raw["b3"].astype(jnp.float32)                                          # (1, Cout)
    return dict(w1=w1, b1=b1, w2=w2, b2=b2, w3=w3, b3=b3)


# ----------------------------------------------------------------------------
# Pure-JAX reference (same bf16-operand / f32-accumulation math, same params)
# ----------------------------------------------------------------------------
def _reference(x_nchw, fp, dilation=(1, 1)):
    d = int(dilation[1])
    bf16 = jnp.bfloat16
    x = jnp.transpose(x_nchw, (0, 2, 3, 1)).astype(jnp.float32)

    y1 = jnp.einsum("nhwc,cp->nhwp", x.astype(bf16), fp["w1"],
                    preferred_element_type=jnp.float32) + fp["b1"][0]
    y1 = jnp.maximum(y1, 0.0)

    y2 = lax.conv_general_dilated(
        y1.astype(bf16), fp["w2"], window_strides=(1, 1),
        padding=((d, d), (d, d)), rhs_dilation=(d, d),
        dimension_numbers=("NHWC", "HWIO", "NHWC"),
        preferred_element_type=jnp.float32) + fp["b2"][0]
    y2 = jnp.maximum(y2, 0.0)

    y3 = jnp.einsum("nhwp,po->nhwo", y2.astype(bf16), fp["w3"],
                    preferred_element_type=jnp.float32) + fp["b3"][0] + x
    y3 = jnp.maximum(y3, 0.0)
    return jnp.transpose(y3, (0, 3, 1, 2))


if __name__ == "__main__":
    key = jax.random.PRNGKey(0)
    planes = 8
    inplanes = planes * 4            # identity residual (downsample=None)
    n, h, w = 2, 16, 16

    kx, kp = jax.random.split(key)
    x = jax.random.normal(kx, (n, inplanes, h, w), jnp.float32)
    params = fold_params(make_params(kp, inplanes, planes))

    for dil in ((1, 1), (2, 2)):
        out = jax.block_until_ready(
            bottleneck_forward(x, params, stride=1, dilation=dil))
        ref = jax.block_until_ready(_reference(x, params, dilation=dil))
        assert out.shape == (n, inplanes, h, w)
        assert jnp.allclose(out, ref, rtol=1e-2, atol=1e-2), (
            f"mismatch vs reference (dilation={dil})")

    print("KERNEL_OK")
</pallas_src>

<mosaic_0001>
module attributes {stable_mosaic.version = 11 : i64} {
  func.func @_bottleneck_kernel(%arg0: i32, %arg1: memref<1x16x16x32xf32, #tpu.memory_space<vmem>>, %arg2: memref<32x128xbf16, #tpu.memory_space<vmem>>, %arg3: memref<1x128xf32, #tpu.memory_space<vmem>>, %arg4: memref<3x384x128xbf16, #tpu.memory_space<vmem>>, %arg5: memref<1x128xf32, #tpu.memory_space<vmem>>, %arg6: memref<128x32xbf16, #tpu.memory_space<vmem>>, %arg7: memref<1x32xf32, #tpu.memory_space<vmem>>, %arg8: memref<1x16x16x32xf32, #tpu.memory_space<vmem>>, %arg9: memref<18x18x128xbf16, #tpu.memory_space<vmem>>) attributes {dimension_semantics = [#tpu.dimension_semantics<parallel>], iteration_bounds = array<i64: 2>, scalar_prefetch = 0 : i64, scratch_operands = 1 : i64, tpu.core_type = #tpu.core_type<tc>, window_params = [{transform_indices = @transform_0, window_bounds = array<i64: 1, 16, 16, 32>}, {pipeline_mode = #tpu.pipeline_mode<synchronous>, transform_indices = @transform_1, window_bounds = array<i64: 32, 128>}, {pipeline_mode = #tpu.pipeline_mode<synchronous>, transform_indices = @transform_2, window_bounds = array<i64: 1, 128>}, {pipeline_mode = #tpu.pipeline_mode<synchronous>, transform_indices = @transform_3, window_bounds = array<i64: 3, 384, 128>}, {pipeline_mode = #tpu.pipeline_mode<synchronous>, transform_indices = @transform_4, window_bounds = array<i64: 1, 128>}, {pipeline_mode = #tpu.pipeline_mode<synchronous>, transform_indices = @transform_5, window_bounds = array<i64: 128, 32>}, {pipeline_mode = #tpu.pipeline_mode<synchronous>, transform_indices = @transform_6, window_bounds = array<i64: 1, 32>}, {transform_indices = @transform_7, window_bounds = array<i64: 1, 16, 16, 32>}]} {
    %c0 = arith.constant 0 : index
    %c0_0 = arith.constant 0 : index
    %c0_1 = arith.constant 0 : index
    %c0_2 = arith.constant 0 : index
    %0 = vector.load %arg1[%c0, %c0_0, %c0_1, %c0_2] : memref<1x16x16x32xf32, #tpu.memory_space<vmem>>, vector<1x16x16x32xf32>
    %1 = vector.shape_cast %0 : vector<1x16x16x32xf32> to vector<16x16x32xf32>
    %2 = arith.truncf %1 : vector<16x16x32xf32> to vector<16x16x32xbf16>
    %3 = vector.shape_cast %2 : vector<16x16x32xbf16> to vector<256x32xbf16>
    %c0_3 = arith.constant 0 : index
    %c0_4 = arith.constant 0 : index
    %4 = vector.load %arg2[%c0_3, %c0_4] : memref<32x128xbf16, #tpu.memory_space<vmem>>, vector<32x128xbf16>
    %cst = arith.constant dense<0.000000e+00> : vector<256x128xf32>
    %5 = tpu.matmul %3, %4, %cst {dimension_numbers = #tpu.dot_dimension_numbers<[1], [0], [0], [1], [0, 0, 1, 1], [], []>} : vector<256x32xbf16>, vector<32x128xbf16>, vector<256x128xf32> -> vector<256x128xf32>
    %c0_5 = arith.constant 0 : index
    %c0_6 = arith.constant 0 : index
    %6 = vector.load %arg3[%c0_5, %c0_6] : memref<1x128xf32, #tpu.memory_space<vmem>>, vector<1x128xf32>
    %7 = vector.broadcast %6 : vector<1x128xf32> to vector<256x128xf32>
    %8 = arith.addf %5, %7 : vector<256x128xf32>
    %cst_7 = arith.constant 0.000000e+00 : f32
    %9 = vector.broadcast %cst_7 : f32 to vector<256x128xf32>
    %10 = arith.maximumf %8, %9 : vector<256x128xf32>
    %11 = arith.truncf %10 : vector<256x128xf32> to vector<256x128xbf16>
    %12 = vector.shape_cast %11 : vector<256x128xbf16> to vector<16x16x128xbf16>
    %c1 = arith.constant 1 : index
    %c1_8 = arith.constant 1 : index
    %c0_9 = arith.constant 0 : index
    %13 = vector.load %arg9[%c1, %c1_8, %c0_9] : memref<18x18x128xbf16, #tpu.memory_space<vmem>>, vector<16x16x128xbf16>
    tpu.vector_store %arg9[%c1, %c1_8, %c0_9], %12 {strides = array<i32>} : memref<18x18x128xbf16, #tpu.memory_space<vmem>>, vector<16x16x128xbf16>,
    %cst_10 = arith.constant 0.000000e+00 : bf16
    %14 = vector.broadcast %cst_10 : bf16 to vector<1x18x128xbf16>
    %c0_11 = arith.constant 0 : index
    %c0_12 = arith.constant 0 : index
    %c0_13 = arith.constant 0 : index
    %15 = vector.load %arg9[%c0_11, %c0_12, %c0_13] : memref<18x18x128xbf16, #tpu.memory_space<vmem>>, vector<1x18x128xbf16>
    tpu.vector_store %arg9[%c0_11, %c0_12, %c0_13], %14 {strides = array<i32>} : memref<18x18x128xbf16, #tpu.memory_space<vmem>>, vector<1x18x128xbf16>,
    %cst_14 = arith.constant 0.000000e+00 : bf16
    %16 = vector.broadcast %cst_14 : bf16 to vector<1x18x128xbf16>
    %c17 = arith.constant 17 : index
    %c0_15 = arith.constant 0 : index
    %c0_16 = arith.constant 0 : index
    %17 = vector.load %arg9[%c17, %c0_15, %c0_16] : memref<18x18x128xbf16, #tpu.memory_space<vmem>>, vector<1x18x128xbf16>
    tpu.vector_store %arg9[%c17, %c0_15, %c0_16], %16 {strides = array<i32>} : memref<18x18x128xbf16, #tpu.memory_space<vmem>>, vector<1x18x128xbf16>,
    %cst_17 = arith.constant 0.000000e+00 : bf16
    %18 = vector.broadcast %cst_17 : bf16 to vector<16x1x128xbf16>
    %c1_18 = arith.constant 1 : index
    %c0_19 = arith.constant 0 : index
    %c0_20 = arith.constant 0 : index
    %19 = vector.load %arg9[%c1_18, %c0_19, %c0_20] : memref<18x18x128xbf16, #tpu.memory_space<vmem>>, vector<16x1x128xbf16>
    tpu.vector_store %arg9[%c1_18, %c0_19, %c0_20], %18 {strides = array<i32>} : memref<18x18x128xbf16, #tpu.memory_space<vmem>>, vector<16x1x128xbf16>,
    %cst_21 = arith.constant 0.000000e+00 : bf16
    %20 = vector.broadcast %cst_21 : bf16 to vector<16x1x128xbf16>
    %c1_22 = arith.constant 1 : index
    %c17_23 = arith.constant 17 : index
    %c0_24 = arith.constant 0 : index
    %21 = vector.load %arg9[%c1_22, %c17_23, %c0_24] : memref<18x18x128xbf16, #tpu.memory_space<vmem>>, vector<16x1x128xbf16>
    tpu.vector_store %arg9[%c1_22, %c17_23, %c0_24], %20 {strides = array<i32>} : memref<18x18x128xbf16, #tpu.memory_space<vmem>>, vector<16x1x128xbf16>,
    %c0_25 = arith.constant 0 : index
    %c0_26 = arith.constant 0 : index
    %c0_27 = arith.constant 0 : index
    %22 = vector.load %arg9[%c0_25, %c0_26, %c0_27] : memref<18x18x128xbf16, #tpu.memory_space<vmem>>, vector<16x16x128xbf16>
    %c0_28 = arith.constant 0 : index
    %c1_29 = arith.constant 1 : index
    %c0_30 = arith.constant 0 : index
    %23 = vector.load %arg9[%c0_28, %c1_29, %c0_30] : memref<18x18x128xbf16, #tpu.memory_space<vmem>>, vector<16x16x128xbf16>
    %c0_31 = arith.constant 0 : index
    %c2 = arith.constant 2 : index
    %c0_32 = arith.constant 0 : index
    %24 = vector.load %arg9[%c0_31, %c2, %c0_32] : memref<18x18x128xbf16, #tpu.memory_space<vmem>>, vector<16x16x128xbf16>
    %25 = tpu.concatenate %22, %23, %24 in 2 : vector<16x16x128xbf16>, vector<16x16x128xbf16>, vector<16x16x128xbf16> -> vector<16x16x384xbf16>
    %26 = vector.shape_cast %25 : vector<16x16x384xbf16> to vector<256x384xbf16>
    %c0_33 = arith.constant 0 : index
    %c0_34 = arith.constant 0 : index
    %c0_35 = arith.constant 0 : index
    %27 = vector.load %arg4[%c0_33, %c0_34, %c0_35] : memref<3x384x128xbf16, #tpu.memory_space<vmem>>, vector<1x384x128xbf16>
    %28 = vector.shape_cast %27 : vector<1x384x128xbf16> to vector<384x128xbf16>
    %cst_36 = arith.constant dense<0.000000e+00> : vector<256x128xf32>
    %29 = tpu.matmul %26, %28, %cst_36 {dimension_numbers = #tpu.dot_dimension_numbers<[1], [0], [0], [1], [0, 0, 1, 1], [], []>} : vector<256x384xbf16>, vector<384x128xbf16>, vector<256x128xf32> -> vector<256x128xf32>
    %c1_37 = arith.constant 1 : index
    %c0_38 = arith.constant 0 : index
    %c0_39 = arith.constant 0 : index
    %30 = vector.load %arg9[%c1_37, %c0_38, %c0_39] : memref<18x18x128xbf16, #tpu.memory_space<vmem>>, vector<16x16x128xbf16>
    %c1_40 = arith.constant 1 : index
    %c1_41 = arith.constant 1 : index
    %c0_42 = arith.constant 0 : index
    %31 = vector.load %arg9[%c1_40, %c1_41, %c0_42] : memref<18x18x128xbf16, #tpu.memory_space<vmem>>, vector<16x16x128xbf16>
    %c1_43 = arith.constant 1 : index
    %c2_44 = arith.constant 2 : index
    %c0_45 = arith.constant 0 : index
    %32 = vector.load %arg9[%c1_43, %c2_44, %c0_45] : memref<18x18x128xbf16, #tpu.memory_space<vmem>>, vector<16x16x128xbf16>
    %33 = tpu.concatenate %30, %31, %32 in 2 : vector<16x16x128xbf16>, vector<16x16x128xbf16>, vector<16x16x128xbf16> -> vector<16x16x384xbf16>
    %34 = vector.shape_cast %33 : vector<16x16x384xbf16> to vector<256x384xbf16>
    %c1_46 = arith.constant 1 : index
    %c0_47 = arith.constant 0 : index
    %c0_48 = arith.constant 0 : index
    %35 = vector.load %arg4[%c1_46, %c0_47, %c0_48] : memref<3x384x128xbf16, #tpu.memory_space<vmem>>, vector<1x384x128xbf16>
    %36 = vector.shape_cast %35 : vector<1x384x128xbf16> to vector<384x128xbf16>
    %cst_49 = arith.constant dense<0.000000e+00> : vector<256x128xf32>
    %37 = tpu.matmul %34, %36, %cst_49 {dimension_numbers = #tpu.dot_dimension_numbers<[1], [0], [0], [1], [0, 0, 1, 1], [], []>} : vector<256x384xbf16>, vector<384x128xbf16>, vector<256x128xf32> -> vector<256x128xf32>
    %38 = arith.addf %29, %37 : vector<256x128xf32>
    %c2_50 = arith.constant 2 : index
    %c0_51 = arith.constant 0 : index
    %c0_52 = arith.constant 0 : index
    %39 = vector.load %arg9[%c2_50, %c0_51, %c0_52] : memref<18x18x128xbf16, #tpu.memory_space<vmem>>, vector<16x16x128xbf16>
    %c2_53 = arith.constant 2 : index
    %c1_54 = arith.constant 1 : index
    %c0_55 = arith.constant 0 : index
    %40 = vector.load %arg9[%c2_53, %c1_54, %c0_55] : memref<18x18x128xbf16, #tpu.memory_space<vmem>>, vector<16x16x128xbf16>
    %c2_56 = arith.constant 2 : index
    %c2_57 = arith.constant 2 : index
    %c0_58 = arith.constant 0 : index
    %41 = vector.load %arg9[%c2_56, %c2_57, %c0_58] : memref<18x18x128xbf16, #tpu.memory_space<vmem>>, vector<16x16x128xbf16>
    %42 = tpu.concatenate %39, %40, %41 in 2 : vector<16x16x128xbf16>, vector<16x16x128xbf16>, vector<16x16x128xbf16> -> vector<16x16x384xbf16>
    %43 = vector.shape_cast %42 : vector<16x16x384xbf16> to vector<256x384xbf16>
    %c2_59 = arith.constant 2 : index
    %c0_60 = arith.constant 0 : index
    %c0_61 = arith.constant 0 : index
    %44 = vector.load %arg4[%c2_59, %c0_60, %c0_61] : memref<3x384x128xbf16, #tpu.memory_space<vmem>>, vector<1x384x128xbf16>
    %45 = vector.shape_cast %44 : vector<1x384x128xbf16> to vector<384x128xbf16>
    %cst_62 = arith.constant dense<0.000000e+00> : vector<256x128xf32>
    %46 = tpu.matmul %43, %45, %cst_62 {dimension_numbers = #tpu.dot_dimension_numbers<[1], [0], [0], [1], [0, 0, 1, 1], [], []>} : vector<256x384xbf16>, vector<384x128xbf16>, vector<256x128xf32> -> vector<256x128xf32>
    %47 = arith.addf %38, %46 : vector<256x128xf32>
    %c0_63 = arith.constant 0 : index
    %c0_64 = arith.constant 0 : index
    %48 = vector.load %arg5[%c0_63, %c0_64] : memref<1x128xf32, #tpu.memory_space<vmem>>, vector<1x128xf32>
    %49 = vector.broadcast %48 : vector<1x128xf32> to vector<256x128xf32>
    %50 = arith.addf %47, %49 : vector<256x128xf32>
    %cst_65 = arith.constant 0.000000e+00 : f32
    %51 = vector.broadcast %cst_65 : f32 to vector<256x128xf32>
    %52 = arith.maximumf %50, %51 : vector<256x128xf32>
    %53 = arith.truncf %52 : vector<256x128xf32> to vector<256x128xbf16>
    %c0_66 = arith.constant 0 : index
    %c0_67 = arith.constant 0 : index
    %54 = vector.load %arg6[%c0_66, %c0_67] : memref<128x32xbf16, #tpu.memory_space<vmem>>, vector<128x32xbf16>
    %cst_68 = arith.constant dense<0.000000e+00> : vector<256x32xf32>
    %55 = tpu.matmul %53, %54, %cst_68 {dimension_numbers = #tpu.dot_dimension_numbers<[1], [0], [0], [1], [0, 0, 1, 1], [], []>} : vector<256x128xbf16>, vector<128x32xbf16>, vector<256x32xf32> -> vector<256x32xf32>
    %56 = vector.shape_cast %55 : vector<256x32xf32> to vector<16x16x32xf32>
    %c0_69 = arith.constant 0 : index
    %c0_70 = arith.constant 0 : index
    %57 = vector.load %arg7[%c0_69, %c0_70] : memref<1x32xf32, #tpu.memory_space<vmem>>, vector<1x32xf32>
    %58 = vector.shape_cast %57 : vector<1x32xf32> to vector<1x1x32xf32>
    %59 = vector.broadcast %58 : vector<1x1x32xf32> to vector<16x16x32xf32>
    %60 = arith.addf %56, %59 : vector<16x16x32xf32>
    %c0_71 = arith.constant 0 : index
    %c0_72 = arith.constant 0 : index
    %c0_73 = arith.constant 0 : index
    %c0_74 = arith.constant 0 : index
    %61 = vector.load %arg1[%c0_71, %c0_72, %c0_73, %c0_74] : memref<1x16x16x32xf32, #tpu.memory_space<vmem>>, vector<1x16x16x32xf32>
    %62 = vector.shape_cast %61 : vector<1x16x16x32xf32> to vector<16x16x32xf32>
    %63 = arith.addf %60, %62 : vector<16x16x32xf32>
    %cst_75 = arith.constant 0.000000e+00 : f32
    %64 = vector.broadcast %cst_75 : f32 to vector<16x16x32xf32>
    %65 = arith.maximumf %63, %64 : vector<16x16x32xf32>
    %c0_76 = arith.constant 0 : index
    %c0_77 = arith.constant 0 : index
    %c0_78 = arith.constant 0 : index
    %c0_79 = arith.constant 0 : index
    %66 = vector.load %arg8[%c0_76, %c0_77, %c0_78, %c0_79] : memref<1x16x16x32xf32, #tpu.memory_space<vmem>>, vector<1x16x16x32xf32>
    %67 = vector.shape_cast %66 : vector<1x16x16x32xf32> to vector<16x16x32xf32>
    %68 = vector.shape_cast %65 : vector<16x16x32xf32> to vector<1x16x16x32xf32>
    tpu.vector_store %arg8[%c0_76, %c0_77, %c0_78, %c0_79], %68 {strides = array<i32>} : memref<1x16x16x32xf32, #tpu.memory_space<vmem>>, vector<1x16x16x32xf32>,
    return
  }
  func.func @transform_0(%arg0: i32) -> (i32, i32, i32, i32) {
    %c0_i32 = arith.constant 0 : i32
    %c0_i32_0 = arith.constant 0 : i32
    %c0_i32_1 = arith.constant 0 : i32
    %c0_i32_2 = arith.constant 0 : i32
    return %arg0, %c0_i32, %c0_i32_0, %c0_i32_1 : i32, i32, i32, i32
  }
  func.func @transform_1(%arg0: i32) -> (i32, i32) {
    %c0_i32 = arith.constant 0 : i32
    %c0_i32_0 = arith.constant 0 : i32
    %c0_i32_1 = arith.constant 0 : i32
    return %c0_i32, %c0_i32_0 : i32, i32
  }
  func.func @transform_2(%arg0: i32) -> (i32, i32) {
    %c0_i32 = arith.constant 0 : i32
    %c0_i32_0 = arith.constant 0 : i32
    %c0_i32_1 = arith.constant 0 : i32
    return %c0_i32, %c0_i32_0 : i32, i32
  }
  func.func @transform_3(%arg0: i32) -> (i32, i32, i32) {
    %c0_i32 = arith.constant 0 : i32
    %c0_i32_0 = arith.constant 0 : i32
    %c0_i32_1 = arith.constant 0 : i32
    %c0_i32_2 = arith.constant 0 : i32
    return %c0_i32, %c0_i32_0, %c0_i32_1 : i32, i32, i32
  }
  func.func @transform_4(%arg0: i32) -> (i32, i32) {
    %c0_i32 = arith.constant 0 : i32
    %c0_i32_0 = arith.constant 0 : i32
    %c0_i32_1 = arith.constant 0 : i32
    return %c0_i32, %c0_i32_0 : i32, i32
  }
  func.func @transform_5(%arg0: i32) -> (i32, i32) {
    %c0_i32 = arith.constant 0 : i32
    %c0_i32_0 = arith.constant 0 : i32
    %c0_i32_1 = arith.constant 0 : i32
    return %c0_i32, %c0_i32_0 : i32, i32
  }
  func.func @transform_6(%arg0: i32) -> (i32, i32) {
    %c0_i32 = arith.constant 0 : i32
    %c0_i32_0 = arith.constant 0 : i32
    %c0_i32_1 = arith.constant 0 : i32
    return %c0_i32, %c0_i32_0 : i32, i32
  }
  func.func @transform_7(%arg0: i32) -> (i32, i32, i32, i32) {
    %c0_i32 = arith.constant 0 : i32
    %c0_i32_0 = arith.constant 0 : i32
    %c0_i32_1 = arith.constant 0 : i32
    %c0_i32_2 = arith.constant 0 : i32
    return %arg0, %c0_i32, %c0_i32_0, %c0_i32_1 : i32, i32, i32, i32
  }
}

</mosaic_0001>

<bundles_post_ra>
// kernel: tpu_custom_call.1
= control target key start
LH: loop header
LB: loop body
LE: loop exit
PB: predicated region body
PF: predicated region fallthrough
CT: control target
= control target key end

     0   :  { %s8177_s0 = inlined_call_operand.hbm [shape: f32[2,16,16,32], index: 0, kind: input, shape index: {}]   ;;  %s8178_s1 = inlined_call_operand.vmem [shape: bf16[32,128], index: 1, kind: input, shape index: {}]   ;;  %s8179_s2 = inlined_call_operand.vmem [shape: f32[1,128], index: 2, kind: input, shape index: {}]   ;;  %s8180_s3 = inlined_call_operand.hbm [shape: bf16[3,384,128], index: 3, kind: input, shape index: {}]   ;;  %s8181_s4 = inlined_call_operand.vmem [shape: f32[1,128], index: 4, kind: input, shape index: {}]   ;;  %s8182_s5 = inlined_call_operand.vmem [shape: bf16[128,32], index: 5, kind: input, shape index: {}]   ;;  %s8183_s6 = inlined_call_operand.vmem [shape: f32[1,32], index: 6, kind: input, shape index: {}]   ;;  %s8184_s7 = inlined_call_operand.hbm [shape: f32[2,16,16,32], index: 7, kind: output, shape index: {}]  }
   0x1   :  { %8189 = sst [smem:[#allocation12_spill]] %s8180_s3 }
   0x2   :  { %12 = vsyncpa [#allocation4], 0 }
   0x3   :  { %14 = vsyncpa [#allocation4 + $0x1], 0 }
   0x4   :  { %15 = vsyncpa [#allocation7], 0 }
   0x5   :  { %16 = vsyncpa [#allocation5], 0 }
   0x6   :  { %18 = vsyncpa [#allocation5 + $0x1], 0  ;;  %s6480_s24 = smov 0   ;;  %s6482_s25 = smov 0  }
   0x7   :  { %s6484_s26 = smov 0   ;;  %s6486_s27 = smov 0  }
   0x8 LB: > { %s6501_s28 = sadd.s32 4294967295, %s6428_s27   ;;  %s5006_s29 = sadd.s32 4294967294, %s6428_s27   ;;  %s6428_s27 = sphi %s6486_s27, %s8216_s27   ;;  %s6424_s26 = sphi %s6484_s26, %s8215_s26   ;;  %s6420_s25 = sphi %s6482_s25, %s8214_s25   ;;  %s6416_s24 = sphi %s6480_s24, %s8213_s24  }
   0x9   : > { %p44_p0 = scmp.ne.s32.totalorder %s6420_s25, %s6416_s24  ;;  %p8185_p1 = scmp.eq.s32.totalorder %s6501_s28, 0 }
   0xa   : > { %p200_p3 = scmp.eq.s32.totalorder %s5006_s29, 1  ;;  %p5007_p5 = scmp.ge.s32.totalorder %s6428_s27, 1 }
   0xb   : > { %p6510_p4 = por %p8185_p1, %p44_p0  ;;  %p207_p7 = scmp.lt.s32.totalorder %s6428_s27, 3 }
   0xc   : > { %p6515_p6 = por %p200_p3, %p44_p0  ;;  %s6430_s10 = smov [#allocation6]  }
   0xd   : > { %s8190_s30 = scalar_select %p6510_p4, 1, 0 }
   0xe   : > { %s8191_s8 = scalar_select %p6515_p6, 1, 0 }
   0xf   : > { %p6520_p8 = pnand %p5007_p5, %p207_p7  ;;  %s225_s11 = sshll.u32 %s6430_s10, 4  ;;  %s226_s11 = int_to_ptr.vmem [resolvable:$true] %s225_s11 }
  0x10   : > { %s6534_s13 = sadd.s32 1, %s6428_s27   ;;  %s31_s14 = sadd.s32 1, %s6424_s26 }
  0x11   : > { %s8192_s9 = scalar_select %p6520_p8, 1, 0 }
  0x12   : > { %p6023_p9 = pneg %p6520_p8  ;;  %s28_s15 = ssub.s32 %s6428_s27, %s6534_s13 }
  0x13   : > { %s6317_s16 = scalar_lea.vmem %s226_s11, 9216  ;;  %p6325_p5 = scmp.lt.s32.totalorder %s226_s11, %s226_s11 }
  0x14   : > { %p6529_p11 = pnand %p6023_p9, %p8185_p1  ;;  %p6318_p13 = scmp.ne.s32.totalorder %s226_s11, %s6317_s16 }
  0x15   : > { %p6326_p7 = scmp.lt.s32.totalorder %s6317_s16, %s6317_s16 }
  0x16   : > { %p6308_p12 = pneg %p6529_p11 }
  0x17   : > { %p6327_p10 = por %p6326_p7, %p6325_p5 }
  0x18   : > { %p6320_p0 = pnand %p6318_p13, %p6308_p12 }
  0x1a   : > { %p6321_p3 = pneg %p6320_p0 }
  0x1c   : > { %p6328_p2 = pnand %p6327_p10, %p6321_p3 }
  0x1e   : > { %6331 = shalt.err (!%p6328_p2)
}
  0x1f   : > { %s6431_s17 = smov 64   ;;  %s6432_s18 = smov 4  }
  0x20   : > { %s8194_s3 = sld [smem:[#allocation12_spill]]  ;;  %p29_p9 = scmp.eq.s32.totalorder %s28_s15, 0 }
  0x21   : > { %p38_p12 = scmp.ne.s32.totalorder %s6424_s26, %s6420_s25  ;;  %p39_p10 = scmp.eq.s32.totalorder %s6428_s27, 0 }
  0x22   : > { %p6036_p2 = scmp.lt.s32.totalorder %s6428_s27, 2  ;;  %p8195_p0 = scmp.eq.s32.totalorder %s6501_s28, 1 }
  0x23   : > { %s6551_s21 = scalar_select %p29_p9, %s6424_s26, %s31_s14  }
  0x24   : > { %p40_p13 = por %p39_p10, %p38_p12  ;;  %p6555_p3 = por %p8195_p0, %p38_p12 }
  0x25   : > { %s248_s23 = sand.u32 1, %s6424_s26   ;;  %s5299_s29 = sshll.u32 %s6428_s27, 12 }
  0x26   : > { %6026 = dma.hbm_to_vmem [thread:$0]  (!%p6529_p11), %s8194_s3, 9216, %s226_s11, [#allocation7], %s6431_s17, %s6431_s17, %s6432_s18  }
  0x27   : > { %s8196_s22 = scalar_select %p6555_p3, 1, 0 }
  0x28   : > { %s5010_s10 = sshll.u32 %s248_s23, 8  ;;  %s6564_s19 = scalar_lea.hbm %s8177_s0, %s5299_s29 }
  0x29   : > { %s252_s11 = scalar_lea.vmem [#allocation3], %s5010_s10  ;;  %p6566_p11 = pnand %p6036_p2, %p40_p13 }
  0x2a   : > { %s259_s14 = sshll.u32 %s252_s11, 4  ;;  %s6572_s17 = scalar_lea.sflag [#allocation4], %s248_s23  ;;  %s6570_s14 = int_to_ptr.vmem [resolvable:$true] %s259_s14 }
  0x2b   : > { %s6332_s18 = scalar_lea.hbm %s6564_s19, 4096  ;;  %p6334_p7 = pneg %p6566_p11 }
  0x2c   : > { %p6333_p5 = scmp.ne.s32.totalorder %s6564_s19, %s6332_s18  ;;  %s6337_s10 = scalar_lea.hbm %s8177_s0, 8192 }
  0x2d   : > { %p6338_p10 = scmp.lt.s32.totalorder %s6564_s19, %s8177_s0  ;;  %p6339_p2 = scmp.lt.s32.totalorder %s6337_s10, %s6332_s18 }
  0x2e   : > { %p6335_p9 = pnand %p6334_p7, %p6333_p5 }
  0x2f   : > { %p6340_p13 = por %p6339_p2, %p6338_p10 }
  0x30   : > { %p6336_p12 = pneg %p6335_p9 }
  0x32   : > { %p6341_p0 = pnand %p6340_p13, %p6336_p12 }
  0x34   : > { %6344 = shalt.err (!%p6341_p0)
}
  0x35   : > { %s6345_s23 = scalar_lea.vmem %s6570_s14, 4096  ;;  %s6433_s11 = smov [#allocation3]  }
  0x36   : > { %p6346_p1 = scmp.ne.s32.totalorder %s6570_s14, %s6345_s23  ;;  %s6350_s3 = sshll.u32 %s6433_s11, 4  ;;  %s6351_s3 = int_to_ptr.vmem [resolvable:$false] %s6350_s3 }
  0x37   : > { %s6352_s20 = scalar_lea.vmem %s6351_s3, 8192  ;;  %p6353_p9 = scmp.lt.s32.totalorder %s6570_s14, %s6351_s3 }
  0x38   : > { %p6348_p6 = pnand %p6346_p1, %p6334_p7  ;;  %p6354_p3 = scmp.lt.s32.totalorder %s6352_s20, %s6345_s23 }
  0x3a   : > { %p6349_p5 = pneg %p6348_p6  ;;  %p6355_p4 = por %p6354_p3, %p6353_p9 }
  0x3c   : > { %p6356_p8 = pnand %p6355_p4, %p6349_p5 }
  0x3e   : > { %6359 = shalt.err (!%p6356_p8)
}
  0x3f   : > { %s6434_s18 = smov 128   ;;  %s6435_s29 = smov 8  }
  0x40   : > { %6030 = dma.hbm_to_vmem [thread:$0]  (!%p6566_p11), %s6564_s19, 4096, %s6570_s14, %s6572_s17, %s6434_s18, %s6434_s18, %s6435_s29  }
  0x41   : > { %p8198_p1 = scmp.ne.s32.totalorder %s8192_s9, 0 }
  0x42   : > { %s6596_s10 = sand.u32 (!%p8198_p1), 1, %s6420_s25   ;;  %p8199_p4 = scmp.ne.s32.totalorder (!%p8198_p1), %s8190_s30, 0 }
  0x43   : > { %271 = sbr.rel (%p8198_p1) target bundleno = 1107 (0x453), region = 48  ;;  %s5014_s3 = sshll.u32 (!%p8198_p1), %s6596_s10, 8 }
  0x44   : > { %s274_s12 = scalar_lea.sflag (!%p8198_p1), [#allocation4], %s6596_s10  ;;  %s6602_s16 = scalar_lea.vmem (!%p8198_p1), [#allocation3], %s5014_s3 }
  0x48   : > { %6403 = dma.done.wait (%p8199_p4), %s274_s12, 4096  }
  0x49   : > { %6405 = vsyncadd (%p8199_p4), %s274_s12, 4294963200  ;;  %p8200_p6 = scmp.eq.s32.totalorder %s6501_s28, 0 }
  0x4b   : > { %6407 = dma.done.wait (%p8200_p6), [#allocation7], 9216   ;;  %p8201_p8 = pmov %p8200_p6 }
  0x4c   : > { %v6079_v0 = vld [vmem:[%s8178_s1 + $0x8] sm:$0xff]   ;;  %v6080_v1 = vld [vmem:[%s8178_s1] sm:$0xff]   ;;  %v313_v2 = vld [vmem:[%s6602_s16] sm:$0xff]  ;;  %vm384_vm0 = vcmask 261120   ;;  %vm722_vm1 = vsmask.f32 256 }
  0x4d   : > { %6409 = vsyncadd (%p8201_p8), [#allocation7], 4294958080  ;;  %5783 = vmatprep.subr.bf16.mxu0 %v6079_v0  ;;  %v314_v3 = vld [vmem:[%s6602_s16 + $0x8] sm:$0xff]  ;;  %6011 = vmatprep.subr.bf16.mxu1 %v6079_v0  ;;  %v315_v5 = vld [vmem:[%s6602_s16 + $0x10] sm:$0xff]  ;;  %vm1046_vm2 = vcmask 1043456   ;;  %vm1053_vm4 = vcmask 1040384  }
  0x4e   : > { %5784 = vmatpush3.bf16.msra.mxu0 %v6079_v0  ;;  %v345_v4 = vpack.c.bf16 %v314_v3, %v313_v2  ;;  %v316_v6 = vld [vmem:[%s6602_s16 + $0x18] sm:$0xff]  ;;  %6013 = vmatpush3.bf16.msra.mxu1 %v6079_v0  ;;  %v317_v7 = vld [vmem:[%s6602_s16 + $0x20] sm:$0xff]  ;;  %v318_v8 = vld [vmem:[%s6602_s16 + $0x28] sm:$0xff]  ;;  %vm1047_vm3 = vsmask.f32 7938  ;;  %vm1732_vm10 = vcmask 1046528  }
  0x4f   : > { %5785 = vmatprep.subr.bf16.mxu0 %v6080_v1  ;;  %6012 = vmatprep.subr.bf16.mxu1 %v6080_v1  ;;  %v346_v9 = vpack.c.bf16 %v316_v6, %v315_v5  ;;  %v347_v10 = vpack.c.bf16 %v318_v8, %v317_v7  ;;  %v329_v11 = vld [vmem:[%s6602_s16 + $0x80] sm:$0xff]  ;;  %v330_v12 = vld [vmem:[%s6602_s16 + $0x88] sm:$0xff]  ;;  %v331_v14 = vld [vmem:[%s6602_s16 + $0x90] sm:$0xff]  ;;  %vm723_vm5 = vsmask.f32 4368  ;;  %s8004_s30 = scalar_lea.vmem [#allocation8], %s5014_s3 }
  0x50   : > { %5787 = vmatprep.mubr.msk.bf16.mxu0 %vm384_vm0, %v345_v4  ;;  %v353_v13 = vpack.c.bf16 %v330_v12, %v329_v11  ;;  %v332_v15 = vld [vmem:[%s6602_s16 + $0x98] sm:$0xff]  ;;  %v333_v16 = vld [vmem:[%s6602_s16 + $0xa0] sm:$0xff]  ;;  %v334_v18 = vld [vmem:[%s6602_s16 + $0xa8] sm:$0xff]  ;;  %vm1475_vm11 = vsmask.f32 7424  ;;  %s5332_s3 = sshll.u32 %s6501_s28, 12 }
  0x51   : > { %v354_v17 = vpack.c.bf16 %v332_v15, %v331_v14  ;;  %v319_v19 = vld [vmem:[%s6602_s16 + $0x30] sm:$0xff]  ;;  %v320_v20 = vld [vmem:[%s6602_s16 + $0x38] sm:$0xff]  ;;  %v321_v21 = vld [vmem:[%s6602_s16 + $0x40] sm:$0xff]  ;;  %v355_v22 = vpack.c.bf16 %v334_v18, %v333_v16  ;;  %s4923_s17 = sshll.u32 %s8004_s30, 4  ;;  %s8128_s20 = scalar_lea.hbm %s8184_s7, %s5332_s3  ;;  %s8130_s17 = int_to_ptr.vmem [resolvable:$true] %s4923_s17 }
  0x52   : > { %5786 = vmatpush3.bf16.msra.mxu0 %v6080_v1  ;;  %6014 = vmatpush3.bf16.msra.mxu1 %v6080_v1  ;;  %v322_v23 = vld [vmem:[%s6602_s16 + $0x48] sm:$0xff]  ;;  %v335_v24 = vld [vmem:[%s6602_s16 + $0xb0] sm:$0xff]  ;;  %v336_v25 = vld [vmem:[%s6602_s16 + $0xb8] sm:$0xff]  ;;  %v348_v28 = vpack.c.bf16 %v320_v20, %v319_v19  ;;  %s4910_s28 = scalar_lea.sflag [#allocation5], %s6596_s10  ;;  %p8210_p11 = scmp.ne.s32.totalorder %s8196_s22, 0 }
  0x53   : > { %5803 = vmatprep.mubr.msk.bf16.mxu1 %vm384_vm0, %v353_v13  ;;  %v337_v26 = vld [vmem:[%s6602_s16 + $0xc0] sm:$0xff]  ;;  %v338_v27 = vld [vmem:[%s6602_s16 + $0xc8] sm:$0xff]  ;;  %v349_v29 = vpack.c.bf16 %v322_v23, %v321_v21  ;;  %v356_v30 = vpack.c.bf16 %v336_v25, %v335_v24  ;;  %v323_v32 = vld [vmem:[%s6602_s16 + $0x50] sm:$0xff]  ;;  %s6437_s18 = smov [#allocation8]  }
  0x54   : > { %v357_v31 = vpack.c.bf16 %v338_v27, %v337_v26  ;;  %v324_v33 = vld [vmem:[%s6602_s16 + $0x58] sm:$0xff]  ;;  %v325_v34 = vld [vmem:[%s6602_s16 + $0x60] sm:$0xff]  ;;  %v326_v35 = vld [vmem:[%s6602_s16 + $0x68] sm:$0xff]  ;;  %s6364_s29 = sshll.u32 %s6437_s18, 4  ;;  %s6365_s29 = int_to_ptr.vmem [resolvable:$false] %s6364_s29 }
  0x55   : > { %5788 = vmatmul.mubr.msk.bf16.vlgmr.msra.gmra.mxu0 %vm384_vm0, %v346_v9  ;;  %5804 = vmatmul.mubr.msk.bf16.vlgmr.msra.gmra.mxu1 %vm384_vm0, %v354_v17  ;;  %v339_v36 = vld [vmem:[%s6602_s16 + $0xd0] sm:$0xff]  ;;  %v340_v37 = vld [vmem:[%s6602_s16 + $0xd8] sm:$0xff]  ;;  %v341_v38 = vld [vmem:[%s6602_s16 + $0xe0] sm:$0xff]  ;;  %v350_v40 = vpack.c.bf16 %v324_v33, %v323_v32  ;;  %v351_v41 = vpack.c.bf16 %v326_v35, %v325_v34  ;;  %s6366_s12 = scalar_lea.vmem %s6365_s29, 8192  ;;  %p6367_p10 = scmp.lt.s32.totalorder %s8130_s17, %s6365_s29 }
  0x56   : > { %5791 = vmatprep.mubr.msk.bf16.mxu0 %vm384_vm0, %v347_v10  ;;  %5807 = vmatprep.mubr.msk.bf16.mxu1 %vm384_vm0, %v355_v22  ;;  %v342_v39 = vld [vmem:[%s6602_s16 + $0xe8] sm:$0xff]  ;;  %v358_v42 = vpack.c.bf16 %v340_v37, %v339_v36  ;;  %v327_v44 = vld [vmem:[%s6602_s16 + $0x70] sm:$0xff]  ;;  %v328_v45 = vld [vmem:[%s6602_s16 + $0x78] sm:$0xff] }
  0x57   : > { %v359_v43 = vpack.c.bf16 %v342_v39, %v341_v38  ;;  %v343_v46 = vld [vmem:[%s6602_s16 + $0xf0] sm:$0xff]  ;;  %v344_v47 = vld [vmem:[%s6602_s16 + $0xf8] sm:$0xff]  ;;  %v352_v48 = vpack.c.bf16 %v328_v45, %v327_v44  ;;  %v6087_v56 = vld [vmem:[#allocation6 + $0x168] sm:$0xff]  }
  0x58   : > { %v360_v49 = vpack.c.bf16 %v344_v47, %v343_v46  ;;  %v6081_v50 = vld [vmem:[#allocation6 + $0x178] sm:$0xff]   ;;  %v6084_v53 = vld [vmem:[#allocation6 + $0x170] sm:$0xff]   ;;  %v6088_v57 = vld [vmem:[#allocation6 + $0x128] sm:$0xff]  }
  0x59   : > { %5819 = vmatprep.subr.bf16.mxu0 %v6081_v50  ;;  %v6082_v51 = vld [vmem:[#allocation6 + $0x138] sm:$0xff]   ;;  %v6085_v54 = vld [vmem:[#allocation6 + $0x130] sm:$0xff]   ;;  %v6089_v58 = vld [vmem:[#allocation6 + $0xe8] sm:$0xff]  }
  0x5a   : > { %5820 = vmatpush3.bf16.msra.mxu0 %v6081_v50  ;;  %v6083_v52 = vld [vmem:[#allocation6 + $0xf8] sm:$0xff]   ;;  %5351 = vmatprep.subr.bf16.mxu1 %v6082_v51  ;;  %v6086_v55 = vld [vmem:[#allocation6 + $0xf0] sm:$0xff]   ;;  %v6090_v59 = vld [vmem:[#allocation6 + $0x160] sm:$0xff]  }
  0x5b   : > { %5352 = vmatpush3.bf16.msra.mxu1 %v6083_v52  ;;  %5821 = vmatprep.subr.bf16.mxu0 %v6084_v53  ;;  %v6091_v60 = vld [vmem:[#allocation6 + $0x120] sm:$0xff]   ;;  %v6093_v62 = vld [vmem:[#allocation6 + $0x158] sm:$0xff]   ;;  %v6096_v1 = vld [vmem:[#allocation6 + $0x150] sm:$0xff]  }
  0x5c   : > { %5353 = vmatprep.subr.bf16.mxu1 %v6085_v54  ;;  %v6092_v61 = vld [vmem:[#allocation6 + $0xe0] sm:$0xff]   ;;  %v6094_v63 = vld [vmem:[#allocation6 + $0x118] sm:$0xff]   ;;  %v6097_v2 = vld [vmem:[#allocation6 + $0x110] sm:$0xff]  }
  0x5d   : > { %5792 = vmatmul.mubr.msk.bf16.gmra.mxu0 %vm384_vm0, %v348_v28  ;;  %5808 = vmatmul.mubr.msk.bf16.gmra.mxu1 %vm384_vm0, %v356_v30  ;;  %v6095_v0 = vld [vmem:[#allocation6 + $0xd8] sm:$0xff]   ;;  %v6098_v3 = vld [vmem:[#allocation6 + $0xd0] sm:$0xff]   ;;  %v6099_v4 = vld [vmem:[#allocation6 + $0x148] sm:$0xff]  }
  0x5e   : > { %5795 = vmatprep.mubr.msk.bf16.mxu0 %vm384_vm0, %v349_v29  ;;  %5811 = vmatprep.mubr.msk.bf16.mxu1 %vm384_vm0, %v357_v31  ;;  %v6100_v5 = vld [vmem:[#allocation6 + $0x108] sm:$0xff]   ;;  %v6102_v7 = vld [vmem:[#allocation6 + $0x140] sm:$0xff]   ;;  %v6666_v10 = vld [vmem:[#allocation6 + $0xb8] sm:$0xff]  }
  0x5f   : > { %5822 = vmatpush3.bf16.msra.mxu0 %v6084_v53  ;;  %5354 = vmatpush3.bf16.msra.mxu1 %v6086_v55  ;;  %v6101_v6 = vld [vmem:[#allocation6 + $0xc8] sm:$0xff]   ;;  %v6103_v8 = vld [vmem:[#allocation6 + $0x100] sm:$0xff]   ;;  %v6137_v11 = vld [vmem:[#allocation6 + $0x78] sm:$0xff]  }
  0x60   : > { %5823 = vmatprep.subr.bf16.mxu0 %v6087_v56  ;;  %5355 = vmatprep.subr.bf16.mxu1 %v6088_v57  ;;  %v6104_v9 = vld [vmem:[#allocation6 + $0xc0] sm:$0xff]   ;;  %v6672_v12 = vld [vmem:[%s8179_s2] ss:$0 sm:$0xff]  ;;  %vm6691_vm6 = vmand %vm1046_vm2, %vm1047_vm3 }
  0x61   : > { %v1058_v46 = vld [vmem:[#allocation2 + $0x18] sm:$0xf]  ;;  %vm6702_vm7 = vmand %vm1053_vm4, %vm722_vm1 }
  0x62   : > { %vm6710_vm8 = vmor %vm722_vm1, %vm723_vm5 }
  0x63   : > { %5824 = vmatpush3.bf16.msra.mxu0 %v6087_v56  ;;  %5356 = vmatpush3.bf16.msra.mxu1 %v6089_v58  ;;  %v1049_v56 = vld [vmem:[#allocation2 + $0xc] sm:$0xf]  ;;  %vm6734_vm9 = vmand %vm1053_vm4, %vm1047_vm3 }
  0x64   : > { %5825 = vmatprep.subr.bf16.mxu0 %v6090_v59  ;;  %5357 = vmatprep.subr.bf16.mxu1 %v6091_v60 }
  0x65   : > { %5796 = vmatmul.mubr.msk.bf16.gmra.mxu0 %vm384_vm0, %v350_v40  ;;  %5812 = vmatmul.mubr.msk.bf16.gmra.mxu1 %vm384_vm0, %v358_v42 }
  0x66   : > { %5799 = vmatprep.mubr.msk.bf16.mxu0 %vm384_vm0, %v351_v41  ;;  %5815 = vmatprep.mubr.msk.bf16.mxu1 %vm384_vm0, %v359_v43 }
  0x67   : > { %5826 = vmatpush3.bf16.msra.mxu0 %v6090_v59  ;;  %5358 = vmatpush3.bf16.msra.mxu1 %v6092_v61 }
  0x68   : > { %5827 = vmatprep.subr.bf16.mxu0 %v6093_v62  ;;  %5359 = vmatprep.subr.bf16.mxu1 %v6094_v63 }
  0x6b   : > { %5828 = vmatpush3.bf16.msra.mxu0 %v6093_v62  ;;  %5360 = vmatpush3.bf16.msra.mxu1 %v6095_v0 }
  0x6c   : > { %5829 = vmatprep.subr.bf16.mxu0 %v6096_v1  ;;  %5361 = vmatprep.subr.bf16.mxu1 %v6097_v2 }
  0x6d   : > { %5800 = vmatmul.mubr.msk.bf16.gmra.mxu0 %vm384_vm0, %v352_v48  ;;  %5816 = vmatmul.mubr.msk.bf16.gmra.mxu1 %vm384_vm0, %v360_v49 }
  0x6f   : > { %5830 = vmatpush3.bf16.msra.mxu0 %v6096_v1  ;;  %5362 = vmatpush3.bf16.msra.mxu1 %v6098_v3 }
  0x70   : > { %5831 = vmatprep.subr.bf16.mxu0 %v6099_v4  ;;  %5363 = vmatprep.subr.bf16.mxu1 %v6100_v5 }
  0x73   : > { %5832 = vmatpush3.bf16.msra.mxu0 %v6099_v4  ;;  %5364 = vmatpush3.bf16.msra.mxu1 %v6101_v6  ;;  %v1062_v4 = vld [vmem:[#allocation2 + $0x20] sm:$0x1] }
  0x74   : > { %5833 = vmatprep.subr.bf16.mxu0 %v6102_v7  ;;  %5365 = vmatprep.subr.bf16.mxu1 %v6103_v8 }
  0x77   : > { %5834 = vmatpush3.bf16.msra.mxu0 %v6102_v7  ;;  %5366 = vmatpush3.bf16.msra.mxu1 %v6104_v9 }
  0x78   : > { %5867 = vmatprep.subr.bf16.mxu1 %v6666_v10  ;;  %5487 = vmatprep.subr.bf16.mxu0 %v6137_v11 }
 0x115   : > { %v5789_v13 = vpop.f32.mrf.mxu0  ;;  %v5805_v15 = vpop.f32.mrf.mxu1 }
 0x116   : > { %v476_v14 = vadd.f32 %v5789_v13, %v6672_v12  ;;  %v540_v17 = vadd.f32 %v5805_v15, %v6672_v12 }
 0x117   : > { %v467_v16 = vpop.f32.mrf.mxu0  ;;  %v531_v20 = vpop.f32.mrf.mxu1 }
 0x118   : > { %v596_v18 = vmax.f32 %v476_v14, 0.0  ;;  %v468_v19 = vadd.f32 %v6672_v12, %v467_v16  ;;  %v612_v22 = vmax.f32 %v540_v17, 0.0  ;;  %v532_v23 = vadd.f32 %v6672_v12, %v531_v20 }
 0x119   : > { %v5790_v21 = vpop.f32.mrf.mxu0  ;;  %v5806_v27 = vpop.f32.mrf.mxu1 }
 0x11a   : > { %v5302_v24 = vpack.c.bf16 %v596_v18, %v596_v18  ;;  %v594_v25 = vmax.f32 %v468_v19, 0.0  ;;  %v479_v26 = vadd.f32 %v5790_v21, %v6672_v12  ;;  %v6679_v29 = vpack.c.bf16 %v612_v22, %v612_v22 }
 0x11b   : > { %v470_v28 = vpop.f32.mrf.mxu0  ;;  %v610_v30 = vmax.f32 %v532_v23, 0.0  ;;  %v6682_v31 = vadd.f32 %v5806_v27, %v6672_v12  ;;  %v1055_v23 = vld [vmem:[#allocation2 + $0x14] sm:$0x1] }
 0x11c   : > { %v743_v32 = vshrl.u32 %v5302_v24, 16  ;;  %v746_v33 = vshll.u32 %v5302_v24, 16  ;;  %v5300_v34 = vpack.c.bf16 %v594_v25, %v594_v25  ;;  %v597_v35 = vmax.f32 %v479_v26, 0.0 }
 0x11d   : > { %v471_v36 = vadd.f32 %v6672_v12, %v470_v28  ;;  %v5793_v37 = vpop.f32.mrf.mxu0  ;;  %v879_v38 = vshrl.u32 %v6679_v29, 16  ;;  %v882_v39 = vshll.u32 %v6679_v29, 16  ;;  %v6687_v40 = vpack.c.bf16 %v610_v30, %v610_v30 }
 0x11e   : > { %v745_v41 = vrot.slane %v743_v32, 7  ;;  %v726_v42 = vshrl.u32 %v5300_v34, 16  ;;  %v729_v43 = vshll.u32 %v5300_v34, 16  ;;  %v5303_v44 = vpack.c.bf16 %v597_v35, %v597_v35 }
 0x11f   : > { %v595_v47 = vmax.f32 %v471_v36, 0.0  ;;  %v492_v48 = vadd.f32 %v5793_v37, %v6672_v12  ;;  %v483_v49 = vpop.f32.mrf.mxu0  ;;  %v6696_v50 = vrot.slane %v879_v38, 7  ;;  %v862_v51 = vshrl.u32 %v6687_v40, 16 }
 0x120   : > { %v748_v52 = vor.u32 %v746_v33, %v745_v41  ;;  %v749_v53 = vrot.slane %v745_v41, 4  ;;  %v728_v54 = vrot.slane %v726_v42, 7  ;;  %v751_v55 = vshrl.u32 %v5303_v44, 16  ;;  %v1072_v33 = vld [vmem:[#allocation2 + $0x30] sm:$0xf] }
 0x121   : > { %v754_v57 = vshll.u32 %v5303_v44, 16  ;;  %v5301_v58 = vpack.c.bf16 %v595_v47, %v595_v47  ;;  %v600_v59 = vmax.f32 %v492_v48, 0.0  ;;  %v484_v60 = vadd.f32 %v6672_v12, %v483_v49  ;;  %v5794_v61 = vpop.f32.mrf.mxu0 }
 0x122   : > { %v1059_v63 = vsel %vm6691_vm6, %v748_v52, %v1058_v46  ;;  %v731_v0 = vor.u32 %v729_v43, %v728_v54  ;;  %v732_v1 = vrot.slane %v728_v54, 4  ;;  %v753_v2 = vrot.slane %v751_v55, 7  ;;  %v1065_v55 = vld [vmem:[#allocation2 + $0x24] sm:$0xf] }
 0x123   : > { %1060 = vst [vmem:[#allocation2 + $0x18] sm:$0xf] %v1059_v63  ;;  %v734_v5 = vshrl.u32 %v5301_v58, 16  ;;  %v737_v6 = vshll.u32 %v5301_v58, 16  ;;  %v5306_v7 = vpack.c.bf16 %v600_v59, %v600_v59  ;;  %v598_v8 = vmax.f32 %v484_v60, 0.0  ;;  %v486_v9 = vpop.f32.mrf.mxu0 }
 0x124   : > { %v1050_v11 = vsel %vm6691_vm6, %v731_v0, %v1049_v56  ;;  %v756_v13 = vor.u32 %v754_v57, %v753_v2  ;;  %v758_v14 = vrot.slane %v753_v2, 4  ;;  %v495_v15 = vadd.f32 %v5794_v61, %v6672_v12 }
 0x125   : > { %1051 = vst [vmem:[#allocation2 + $0xc] sm:$0xf] %v1050_v11  ;;  %v736_v16 = vrot.slane %v734_v5, 7  ;;  %v777_v17 = vshrl.u32 %v5306_v7, 16  ;;  %v780_v18 = vshll.u32 %v5306_v7, 16  ;;  %v5304_v19 = vpack.c.bf16 %v598_v8, %v598_v8  ;;  %v5797_v20 = vpop.f32.mrf.mxu0 }
 0x126   : > { %v757_v21 = vsel %vm6710_vm8, %v749_v53, %v756_v13  ;;  %v1063_v22 = vsel %vm6702_vm7, %v758_v14, %v1062_v4  ;;  %v601_v24 = vmax.f32 %v495_v15, 0.0  ;;  %v487_v25 = vadd.f32 %v6672_v12, %v486_v9  ;;  %v1076_v4 = vld [vmem:[#allocation2 + $0x38] sm:$0x1] }
 0x127   : > { %1061 = vst [vmem:[#allocation2 + $0x1c] sm:$0xf] %v757_v21  ;;  %1064 = vst [vmem:[#allocation2 + $0x20] sm:$0x1] %v1063_v22  ;;  %v739_v26 = vor.u32 %v737_v6, %v736_v16  ;;  %v741_v27 = vrot.slane %v736_v16, 4  ;;  %v779_v28 = vrot.slane %v777_v17, 7  ;;  %v499_v32 = vpop.f32.mrf.mxu0  ;;  %v508_v37 = vadd.f32 %v5797_v20, %v6672_v12 }
 0x128   : > { %v760_v30 = vshrl.u32 %v5304_v19, 16  ;;  %v763_v34 = vshll.u32 %v5304_v19, 16  ;;  %v5307_v35 = vpack.c.bf16 %v601_v24, %v601_v24  ;;  %v599_v36 = vmax.f32 %v487_v25, 0.0  ;;  %v1069_v17 = vld [vmem:[#allocation2 + $0x2c] sm:$0x1] }
 0x129   : > { %v740_v38 = vsel %vm6710_vm8, %v732_v1, %v739_v26  ;;  %v1056_v41 = vsel %vm6702_vm7, %v741_v27, %v1055_v23  ;;  %v782_v42 = vor.u32 %v780_v18, %v779_v28  ;;  %v783_v43 = vrot.slane %v779_v28, 4  ;;  %v5798_v44 = vpop.f32.mrf.mxu0 }
 0x12a   : > { %v1173_v46 = vld [vmem:[#allocation2 + $0x18] sm:$0x1]  ;;  %1052 = vst [vmem:[#allocation2 + $0x10] sm:$0xf] %v740_v38  ;;  %1057 = vst [vmem:[#allocation2 + $0x14] sm:$0x1] %v1056_v41  ;;  %v5305_v52 = vpack.c.bf16 %v599_v36, %v599_v36  ;;  %v500_v57 = vadd.f32 %v6672_v12, %v499_v32  ;;  %v511_v32 = vadd.f32 %v5798_v44, %v6672_v12 }
 0x12b   : > { %v762_v47 = vrot.slane %v760_v30, 7  ;;  %v785_v48 = vshrl.u32 %v5307_v35, 16  ;;  %v788_v49 = vshll.u32 %v5307_v35, 16  ;;  %v1174_v53 = vsel %vm6702_vm7, 0, %v1173_v46  ;;  %v502_v58 = vpop.f32.mrf.mxu0  ;;  %v1086_v36 = vld [vmem:[#allocation2 + $0x48] sm:$0xf] }
 0x12c   : > { %v1073_v54 = vsel %vm6691_vm6, %v782_v42, %v1072_v33  ;;  %v604_v56 = vmax.f32 %v508_v37, 0.0  ;;  %1175 = vst [vmem:[#allocation2 + $0x18] sm:$0x1] %v1174_v53  ;;  %v1170_v60 = vld [vmem:[#allocation2 + $0xc] sm:$0x1]  ;;  %v768_v1 = vshrl.u32 %v5305_v52, 16  ;;  %v503_v37 = vadd.f32 %v6672_v12, %v502_v58 }
 0x12d   : > { %1074 = vst [vmem:[#allocation2 + $0x30] sm:$0xf] %v1073_v54  ;;  %v765_v61 = vor.u32 %v763_v34, %v762_v47  ;;  %v766_v63 = vrot.slane %v762_v47, 4  ;;  %v787_v0 = vrot.slane %v785_v48, 7  ;;  %v1171_v2 = vsel %vm6702_vm7, 0, %v1170_v60  ;;  %v5801_v8 = vpop.f32.mrf.mxu0 }
 0x12e   : > { %v771_v5 = vshll.u32 %v5305_v52, 16  ;;  %v5310_v6 = vpack.c.bf16 %v604_v56, %v604_v56  ;;  %v602_v7 = vmax.f32 %v500_v57, 0.0  ;;  %1172 = vst [vmem:[#allocation2 + $0xc] sm:$0x1] %v1171_v2  ;;  %v1222_v9 = vld [vmem:[#allocation2 + $0x20] sm:$0x1]  ;;  %v524_v52 = vadd.f32 %v5801_v8, %v6672_v12 }
 0x12f   : > { %v1066_v11 = vsel %vm6691_vm6, %v765_v61, %v1065_v55  ;;  %v790_v13 = vor.u32 %v788_v49, %v787_v0  ;;  %v792_v14 = vrot.slane %v787_v0, 4  ;;  %v770_v15 = vrot.slane %v768_v1, 7  ;;  %v515_v21 = vpop.f32.mrf.mxu0  ;;  %v1079_v48 = vld [vmem:[#allocation2 + $0x3c] sm:$0xf]  ;;  %v1090_v8 = vld [vmem:[#allocation2 + $0x50] sm:$0x1] }
 0x130   : > { %v1223_v16 = vsel %vm6734_vm9, 0, %v1222_v9  ;;  %1067 = vst [vmem:[#allocation2 + $0x24] sm:$0xf] %v1066_v11  ;;  %v811_v18 = vshrl.u32 %v5310_v6, 16  ;;  %v814_v19 = vshll.u32 %v5310_v6, 16  ;;  %v5308_v20 = vpack.c.bf16 %v602_v7, %v602_v7 }
 0x131   : > { %1224 = vst [vmem:[#allocation2 + $0x20] sm:$0x1] %v1223_v16  ;;  %v791_v22 = vsel %vm6710_vm8, %v783_v43, %v790_v13  ;;  %v1077_v23 = vsel %vm6702_vm7, %v792_v14, %v1076_v4  ;;  %v773_v24 = vor.u32 %v771_v5, %v770_v15  ;;  %v775_v25 = vrot.slane %v770_v15, 4  ;;  %v1219_v26 = vld [vmem:[#allocation2 + $0x14] sm:$0x1]  ;;  %v5802_v38 = vpop.f32.mrf.mxu0 }
 0x132   : > { %1075 = vst [vmem:[#allocation2 + $0x34] sm:$0xf] %v791_v22  ;;  %1078 = vst [vmem:[#allocation2 + $0x38] sm:$0x1] %v1077_v23  ;;  %v6748_v27 = vrot.slane %v811_v18, 7  ;;  %v794_v28 = vshrl.u32 %v5308_v20, 16  ;;  %v516_v53 = vadd.f32 %v6672_v12, %v515_v21  ;;  %v527_v0 = vadd.f32 %v5802_v38, %v6672_v12 }
 0x133   : > { %v797_v30 = vshll.u32 %v5308_v20, 16  ;;  %v1220_v33 = vsel %vm6734_vm9, 0, %v1219_v26  ;;  %v774_v34 = vsel %vm6710_vm8, %v766_v63, %v773_v24  ;;  %v1070_v35 = vsel %vm6702_vm7, %v775_v25, %v1069_v17  ;;  %v518_v1 = vpop.f32.mrf.mxu0  ;;  %v1083_v17 = vld [vmem:[#allocation2 + $0x44] sm:$0x1]  ;;  %v1100_v38 = vld [vmem:[#allocation2 + $0x60] sm:$0xf] }
 0x134   : > { %1221 = vst [vmem:[#allocation2 + $0x14] sm:$0x1] %v1220_v33  ;;  %v1179_v41 = vld [vmem:[#allocation2 + $0x30] sm:$0x1]  ;;  %1068 = vst [vmem:[#allocation2 + $0x28] sm:$0xf] %v774_v34  ;;  %v816_v42 = vor.u32 %v814_v19, %v6748_v27  ;;  %v519_v19 = vadd.f32 %v6672_v12, %v518_v1 }
 0x135   : > { %1071 = vst [vmem:[#allocation2 + $0x2c] sm:$0x1] %v1070_v35  ;;  %v817_v43 = vrot.slane %v6748_v27, 4  ;;  %v796_v44 = vrot.slane %v794_v28, 7  ;;  %v605_v46 = vmax.f32 %v511_v32, 0.0  ;;  %v1180_v47 = vsel %vm6702_vm7, 0, %v1179_v41 }
 0x136   : > { %v603_v49 = vmax.f32 %v503_v37, 0.0  ;;  %1181 = vst [vmem:[#allocation2 + $0x30] sm:$0x1] %v1180_v47  ;;  %v1087_v54 = vsel %vm6691_vm6, %v816_v42, %v1086_v36  ;;  %v608_v61 = vmax.f32 %v524_v52, 0.0  ;;  %v606_v63 = vmax.f32 %v516_v53, 0.0 }
 0x137   : > { %v799_v55 = vor.u32 %v797_v30, %v796_v44  ;;  %v800_v56 = vrot.slane %v796_v44, 4  ;;  %v5311_v57 = vpack.c.bf16 %v605_v46, %v605_v46  ;;  %v1176_v58 = vld [vmem:[#allocation2 + $0x24] sm:$0x1]  ;;  %1088 = vst [vmem:[#allocation2 + $0x48] sm:$0xf] %v1087_v54  ;;  %v609_v18 = vmax.f32 %v527_v0, 0.0 }
 0x138   : > { %v5309_v60 = vpack.c.bf16 %v603_v49, %v603_v49  ;;  %v1177_v2 = vsel %vm6702_vm7, 0, %v1176_v58  ;;  %v5314_v13 = vpack.c.bf16 %v608_v61, %v608_v61  ;;  %v5312_v14 = vpack.c.bf16 %v606_v63, %v606_v63  ;;  %v1093_v49 = vld [vmem:[#allocation2 + $0x54] sm:$0xf]  ;;  %v1104_v61 = vld [vmem:[#allocation2 + $0x68] sm:$0x1] }
 0x139   : > { %v1080_v4 = vsel %vm6691_vm6, %v799_v55, %v1079_v48  ;;  %v819_v5 = vshrl.u32 %v5311_v57, 16  ;;  %v822_v6 = vshll.u32 %v5311_v57, 16  ;;  %1178 = vst [vmem:[#allocation2 + $0x24] sm:$0x1] %v1177_v2  ;;  %v1228_v7 = vld [vmem:[#allocation2 + $0x38] sm:$0x1]  ;;  %v5315_v41 = vpack.c.bf16 %v609_v18, %v609_v18 }
 0x13a   : > { %1081 = vst [vmem:[#allocation2 + $0x3c] sm:$0xf] %v1080_v4  ;;  %v802_v9 = vshrl.u32 %v5309_v60, 16  ;;  %v805_v11 = vshll.u32 %v5309_v60, 16  ;;  %v1229_v15 = vsel %vm6734_vm9, 0, %v1228_v7  ;;  %v845_v22 = vshrl.u32 %v5314_v13, 16 }
 0x13b   : > { %v821_v16 = vrot.slane %v819_v5, 7  ;;  %1230 = vst [vmem:[#allocation2 + $0x38] sm:$0x1] %v1229_v15  ;;  %v848_v23 = vshll.u32 %v5314_v13, 16  ;;  %v828_v24 = vshrl.u32 %v5312_v14, 16  ;;  %v831_v28 = vshll.u32 %v5312_v14, 16 }
 0x13c   : > { %v1225_v20 = vld [vmem:[#allocation2 + $0x2c] sm:$0x1]  ;;  %v804_v21 = vrot.slane %v802_v9, 7  ;;  %v847_v33 = vrot.slane %v845_v22, 7  ;;  %v607_v42 = vmax.f32 %v519_v19, 0.0  ;;  %v853_v57 = vshrl.u32 %v5315_v41, 16 }
 0x13d   : > { %v1226_v25 = vsel %vm6734_vm9, 0, %v1225_v20  ;;  %v824_v26 = vor.u32 %v822_v6, %v821_v16  ;;  %v826_v27 = vrot.slane %v821_v16, 4  ;;  %v6776_v34 = vrot.slane %v828_v24, 7  ;;  %v1114_v0 = vld [vmem:[#allocation2 + $0x78] sm:$0xf] }
 0x13e   : > { %1227 = vst [vmem:[#allocation2 + $0x2c] sm:$0x1] %v1226_v25  ;;  %v807_v30 = vor.u32 %v805_v11, %v804_v21  ;;  %v809_v32 = vrot.slane %v804_v21, 4  ;;  %v1185_v35 = vld [vmem:[#allocation2 + $0x48] sm:$0x1]  ;;  %v850_v48 = vor.u32 %v848_v23, %v847_v33  ;;  %v851_v53 = vrot.slane %v847_v33, 4 }
 0x13f   : > { %v825_v36 = vsel %vm6710_vm8, %v817_v43, %v824_v26  ;;  %v1091_v37 = vsel %vm6702_vm7, %v826_v27, %v1090_v8  ;;  %v1186_v44 = vsel %vm6702_vm7, 0, %v1185_v35  ;;  %v534_v43 = vpop.f32.mrf.mxu1  ;;  %v833_v54 = vor.u32 %v831_v28, %v6776_v34  ;;  %v1107_v11 = vld [vmem:[#allocation2 + $0x6c] sm:$0xf]  ;;  %v1097_v21 = vld [vmem:[#allocation2 + $0x5c] sm:$0x1] }
 0x140   : > { %1089 = vst [vmem:[#allocation2 + $0x4c] sm:$0xf] %v825_v36  ;;  %1092 = vst [vmem:[#allocation2 + $0x50] sm:$0x1] %v1091_v37  ;;  %v808_v46 = vsel %vm6710_vm8, %v800_v56, %v807_v30  ;;  %v1084_v47 = vsel %vm6702_vm7, %v809_v32, %v1083_v17  ;;  %v834_v55 = vrot.slane %v6776_v34, 4  ;;  %v1101_v56 = vsel %vm6691_vm6, %v850_v48, %v1100_v38 }
 0x141   : > { %1187 = vst [vmem:[#allocation2 + $0x48] sm:$0x1] %v1186_v44  ;;  %v1182_v52 = vld [vmem:[#allocation2 + $0x3c] sm:$0x1]  ;;  %1082 = vst [vmem:[#allocation2 + $0x40] sm:$0xf] %v808_v46  ;;  %v5313_v63 = vpack.c.bf16 %v607_v42, %v607_v42  ;;  %v1094_v1 = vsel %vm6691_vm6, %v833_v54, %v1093_v49  ;;  %v884_v4 = vor.u32 %v882_v39, %v6696_v50  ;;  %v5809_v13 = vpop.f32.mrf.mxu1 }
 0x142   : > { %1085 = vst [vmem:[#allocation2 + $0x44] sm:$0x1] %v1084_v47  ;;  %v1183_v58 = vsel %vm6702_vm7, 0, %v1182_v52  ;;  %v856_v60 = vshll.u32 %v5315_v41, 16  ;;  %1102 = vst [vmem:[#allocation2 + $0x60] sm:$0xf] %v1101_v56  ;;  %v556_v23 = vadd.f32 %v5809_v13, %v6672_v12 }
 0x143   : > { %1184 = vst [vmem:[#allocation2 + $0x3c] sm:$0x1] %v1183_v58  ;;  %v855_v2 = vrot.slane %v853_v57, 7  ;;  %v885_v5 = vrot.slane %v6696_v50, 4  ;;  %1095 = vst [vmem:[#allocation2 + $0x54] sm:$0xf] %v1094_v1  ;;  %v1115_v16 = vsel %vm6691_vm6, %v884_v4, %v1114_v0  ;;  %v547_v28 = vpop.f32.mrf.mxu1 }
 0x144   : > { %v836_v6 = vshrl.u32 %v5313_v63, 16  ;;  %v839_v7 = vshll.u32 %v5313_v63, 16  ;;  %v6802_v8 = vrot.slane %v862_v51, 7  ;;  %v865_v9 = vshll.u32 %v6687_v40, 16  ;;  %1116 = vst [vmem:[#allocation2 + $0x78] sm:$0xf] %v1115_v16 }
 0x145   : > { %v858_v14 = vor.u32 %v856_v60, %v855_v2  ;;  %v860_v15 = vrot.slane %v855_v2, 4  ;;  %v613_v29 = vmax.f32 %v6682_v31, 0.0  ;;  %v535_v51 = vadd.f32 %v6672_v12, %v534_v43  ;;  %v1845_v30 = vld [vmem:[#allocation2 + $0xc] sm:$0xf]  ;;  %v1846_v36 = vld [vmem:[#allocation2 + $0x10] sm:$0xf]  ;;  %v5810_v60 = vpop.f32.mrf.mxu1 }
 0x146   : > { %v838_v39 = vrot.slane %v836_v6, 7  ;;  %v867_v17 = vor.u32 %v865_v9, %v6802_v8  ;;  %v868_v18 = vrot.slane %v6802_v8, 4  ;;  %v1118_v42 = vld [vmem:[#allocation2 + $0x80] sm:$0x1]  ;;  %v616_v44 = vmax.f32 %v556_v23, 0.0 }
 0x147   : > { %v1234_v19 = vld [vmem:[#allocation2 + $0x50] sm:$0x1]  ;;  %v859_v40 = vsel %vm6710_vm8, %v851_v53, %v858_v14  ;;  %v1105_v20 = vsel %vm6702_vm7, %v860_v15, %v1104_v61  ;;  %v5319_v22 = vpack.c.bf16 %v613_v29, %v613_v29  ;;  %v611_v35 = vmax.f32 %v535_v51, 0.0  ;;  %v1893_v52 = vld [vmem:[#allocation2 + $0xc] sm:$0xe] }
 0x148   : > { %v1235_v31 = vsel %vm6734_vm9, 0, %v1234_v19  ;;  %1103 = vst [vmem:[#allocation2 + $0x64] sm:$0xf] %v859_v40  ;;  %1106 = vst [vmem:[#allocation2 + $0x68] sm:$0x1] %v1105_v20  ;;  %v841_v25 = vor.u32 %v839_v7, %v838_v39  ;;  %v843_v26 = vrot.slane %v838_v39, 4  ;;  %v1108_v27 = vsel %vm6691_vm6, %v867_v17, %v1107_v11 }
 0x149   : > { %v1231_v24 = vld [vmem:[#allocation2 + $0x44] sm:$0x1]  ;;  %1236 = vst [vmem:[#allocation2 + $0x50] sm:$0x1] %v1235_v31  ;;  %1109 = vst [vmem:[#allocation2 + $0x6c] sm:$0xf] %v1108_v27  ;;  %v548_v46 = vadd.f32 %v6672_v12, %v547_v28  ;;  %v5317_v43 = vpack.c.bf16 %v611_v35, %v611_v35  ;;  %v6829_v53 = vcombine.low %v1845_v30, %v1846_v36 }
 0x14a   : > { %v1232_v32 = vsel %vm6734_vm9, 0, %v1231_v24  ;;  %v887_v33 = vshrl.u32 %v5319_v22, 16  ;;  %v890_v34 = vshll.u32 %v5319_v22, 16  ;;  %v1191_v37 = vld [vmem:[#allocation2 + $0x60] sm:$0x1]  ;;  %v842_v38 = vsel %vm6710_vm8, %v834_v55, %v841_v25  ;;  %v550_v22 = vpop.f32.mrf.mxu1 }
 0x14b   : > { %1233 = vst [vmem:[#allocation2 + $0x44] sm:$0x1] %v1232_v32  ;;  %v1098_v41 = vsel %vm6702_vm7, %v843_v26, %v1097_v21  ;;  %v1192_v47 = vsel %vm6702_vm7, 0, %v1191_v37  ;;  %v1188_v48 = vld [vmem:[#allocation2 + $0x54] sm:$0x1]  ;;  %v5322_v55 = vpack.c.bf16 %v616_v44, %v616_v44  ;;  %v614_v57 = vmax.f32 %v548_v46, 0.0 }
 0x14c   : > { %1096 = vst [vmem:[#allocation2 + $0x58] sm:$0xf] %v842_v38  ;;  %1099 = vst [vmem:[#allocation2 + $0x5c] sm:$0x1] %v1098_v41  ;;  %v889_v49 = vrot.slane %v887_v33, 7  ;;  %v1189_v54 = vsel %vm6702_vm7, 0, %v1188_v48  ;;  %v5148_v56 = vcombine.low %v1893_v52, %v1846_v36  ;;  %v559_v46 = vadd.f32 %v5810_v60, %v6672_v12 }
 0x14d   : > { %1193 = vst [vmem:[#allocation2 + $0x60] sm:$0x1] %v1192_v47  ;;  %v6833_v58 = vld [vmem:[#allocation2 + $0x14] ss:$0 sps:$4 sm:$0x11]   ;;  %v870_v1 = vshrl.u32 %v5317_v43, 16  ;;  %v5320_v11 = vpack.c.bf16 %v614_v57, %v614_v57 }
 0x14e   : > { %1190 = vst [vmem:[#allocation2 + $0x54] sm:$0x1] %v1189_v54  ;;  %v1197_v61 = vld [vmem:[#allocation2 + $0x78] sm:$0x1]  ;;  %v892_v63 = vor.u32 %v890_v34, %v889_v49  ;;  %v894_v0 = vrot.slane %v889_v49, 4  ;;  %v873_v2 = vshll.u32 %v5317_v43, 16  ;;  %v551_v54 = vadd.f32 %v6672_v12, %v550_v22 }
 0x14f   : > { %v1198_v4 = vsel %vm6702_vm7, 0, %v1197_v61  ;;  %v1111_v6 = vld [vmem:[#allocation2 + $0x74] sm:$0x1]  ;;  %v913_v7 = vshrl.u32 %v5322_v55, 16  ;;  %v916_v9 = vshll.u32 %v5322_v55, 16  ;;  %v872_v16 = vrot.slane %v870_v1, 7 }
 0x150   : > { %v1240_v13 = vld [vmem:[#allocation2 + $0x68] sm:$0x1]  ;;  %1199 = vst [vmem:[#allocation2 + $0x78] sm:$0x1] %v1198_v4  ;;  %v893_v14 = vsel %vm6710_vm8, %v885_v5, %v892_v63  ;;  %v1119_v15 = vsel %vm6702_vm7, %v894_v0, %v1118_v42  ;;  %v1128_v29 = vld [vmem:[#allocation2 + $0x90] sm:$0xf] }
 0x151   : > { %v2309_v39 = vrot.slane %v5148_v56, 1  ;;  %v1848_v17 = vld [vmem:[#allocation2 + $0x1c] sm:$0xf]  ;;  %v1894_v51 = vld [vmem:[#allocation2 + $0x18] sm:$0xe]  ;;  %v1241_v40 = vsel %vm6734_vm9, 0, %v1240_v13  ;;  %v875_v31 = vor.u32 %v873_v2, %v872_v16 }
 0x152   : > { %v6843_v19 = vld [vmem:[#allocation2 + $0x20] ss:$0 sps:$4 sm:$0x11]   ;;  %v1194_v20 = vld [vmem:[#allocation2 + $0x6c] sm:$0x1]  ;;  %v6847_v50 = vrot.slane %v913_v7, 7  ;;  %v5149_v30 = vcombine.low %v1894_v51, %v1848_v17 }
 0x153   : > { %1117 = vst [vmem:[#allocation2 + $0x7c] sm:$0xf] %v893_v14  ;;  %1120 = vst [vmem:[#allocation2 + $0x80] sm:$0x1] %v1119_v15  ;;  %v896_v21 = vshrl.u32 %v5320_v11, 16  ;;  %v899_v5 = vshll.u32 %v5320_v11, 16  ;;  %v876_v33 = vsel %vm6710_vm8, %v868_v18, %v875_v31  ;;  %v5813_v18 = vpop.f32.mrf.mxu1 }
 0x154   : > { %1242 = vst [vmem:[#allocation2 + $0x68] sm:$0x1] %v1241_v40  ;;  %v1195_v23 = vsel %vm6702_vm7, 0, %v1194_v20  ;;  %v877_v24 = vrot.slane %v872_v16, 4  ;;  %v2310_v25 = vrot.slane %v6833_v58, 1  ;;  %v918_v27 = vor.u32 %v916_v9, %v6847_v50  ;;  %v6138_v49 = vld [vmem:[#allocation6 + $0x38] sm:$0xff]  }
 0x155   : > { %v1237_v26 = vld [vmem:[#allocation2 + $0x5c] sm:$0x1]  ;;  %1196 = vst [vmem:[#allocation2 + $0x6c] sm:$0x1] %v1195_v23  ;;  %v6853_v28 = vrot.slane %v896_v21, 7  ;;  %v919_v38 = vrot.slane %v6847_v50, 4  ;;  %v572_v51 = vadd.f32 %v5813_v18, %v6672_v12 }
 0x156   : > { %v1238_v32 = vsel %vm6734_vm9, 0, %v1237_v26  ;;  %v1112_v34 = vsel %vm6702_vm7, %v877_v24, %v1111_v6  ;;  %v1121_v35 = vld [vmem:[#allocation2 + $0x84] sm:$0xf]  ;;  %v2311_v36 = vsel %vm1732_vm10, %v2309_v39, %v2310_v25  ;;  %v1847_v37 = vld [vmem:[#allocation2 + $0x18] sm:$0xf]  ;;  %v1129_v41 = vsel %vm6691_vm6, %v918_v27, %v1128_v29  ;;  %v6140_v57 = vld [vmem:[#allocation6 + $0x70] sm:$0xff]   ;;  %v563_v6 = vpop.f32.mrf.mxu1 }
 0x157   : > { %1239 = vst [vmem:[#allocation2 + $0x5c] sm:$0x1] %v1238_v32  ;;  %1110 = vst [vmem:[#allocation2 + $0x70] sm:$0xf] %v876_v33  ;;  %v901_v8 = vor.u32 %v899_v5, %v6853_v28  ;;  %5835 = vmatprep.mubr.bf16.mxu0 %v2311_v36  ;;  %v2312_v42 = vrot.slane %v5149_v30, 1  ;;  %v2313_v44 = vrot.slane %v6843_v19, 1  ;;  %v6876_v55 = vcombine.low %v1847_v37, %v1848_v17 }
 0x158   : > { %1113 = vst [vmem:[#allocation2 + $0x74] sm:$0x1] %v1112_v34  ;;  %1130 = vst [vmem:[#allocation2 + $0x90] sm:$0xf] %v1129_v41  ;;  %v2054_v47 = vshrl.u32 %v6829_v53, 16  ;;  %v2056_v48 = vshll.u32 %v6829_v53, 16  ;;  %v6896_v34 = vpop.f32.mrf.mxu1 }
 0x159   : > { %v1122_v43 = vsel %vm6691_vm6, %v901_v8, %v1121_v35  ;;  %v2061_v52 = vshll.u32 %v6833_v58, 16  ;;  %v2314_v61 = vsel %vm1732_vm10, %v2312_v42, %v2313_v44  ;;  %v617_v60 = vmax.f32 %v559_v46, 0.0  ;;  %v6885_v14 = vld [vmem:[#allocation2 + $0x24] sm:$0xe]  ;;  %v6887_v15 = vld [vmem:[#allocation6 + $0xb0] sm:$0xff]   ;;  %v6150_v42 = vld [vmem:[#allocation6 + $0x60] sm:$0xff]  }
 0x15a   : > { %v1246_v56 = vld [vmem:[#allocation2 + $0x80] sm:$0x1]  ;;  %1123 = vst [vmem:[#allocation2 + $0x84] sm:$0xf] %v1122_v43  ;;  %v2058_v63 = vrot.slane %v2056_v48, 1  ;;  %v2073_v0 = vshll.u32 %v6843_v19, 16  ;;  %5836 = vmatmul.mubr.bf16.vlgmr.msra.gmra.mxu0 %v2314_v61  ;;  %v564_v19 = vadd.f32 %v6672_v12, %v563_v6 }
 0x15b   : > { %v1247_v1 = vsel %vm6734_vm9, 0, %v1246_v56  ;;  %v902_v2 = vrot.slane %v6853_v28, 4  ;;  %v2063_v58 = vrot.slane %v2061_v52, 1  ;;  %v615_v4 = vmax.f32 %v551_v54, 0.0  ;;  %5488 = vmatpush3.bf16.msra.mxu0 %v6138_v49  ;;  %v6141_v16 = vld [vmem:[#allocation6 + $0x30] sm:$0xff]   ;;  %v6148_v29 = vld [vmem:[#allocation6 + $0x68] sm:$0xff]  }
 0x15c   : > { %1248 = vst [vmem:[#allocation2 + $0x80] sm:$0x1] %v1247_v1  ;;  %v5323_v7 = vpack.c.bf16 %v617_v60, %v617_v60  ;;  %v2059_v9 = vor.u32 %v2058_v63, %v2054_v47  ;;  %v2066_v11 = vshrl.u32 %v6876_v55, 16  ;;  %v2068_v13 = vshll.u32 %v6876_v55, 16  ;;  %v1850_v40 = vld [vmem:[#allocation2 + $0x28] sm:$0xf]  ;;  %5489 = vmatprep.subr.bf16.mxu0 %v6140_v57 }
 0x15d   : > { %v5321_v39 = vpack.c.bf16 %v615_v4, %v615_v4  ;;  %v2075_v17 = vrot.slane %v2073_v0, 1  ;;  %v6891_v20 = vld [vmem:[#allocation2 + $0x2c] ss:$0 sps:$4 sm:$0x11]   ;;  %v6149_v24 = vld [vmem:[#allocation6 + $0x28] sm:$0xff]   ;;  %v620_v33 = vmax.f32 %v572_v51, 0.0  ;;  %v5150_v48 = vcombine.low %v6885_v14, %v1850_v40 }
 0x15e   : > { %v921_v5 = vshrl.u32 %v5323_v7, 16  ;;  %v924_v22 = vshll.u32 %v5323_v7, 16  ;;  %v2064_v23 = vsel %vm1475_vm11, %v2059_v9, %v2063_v58  ;;  %v2070_v31 = vrot.slane %v2068_v13, 1  ;;  %v1132_v27 = vld [vmem:[#allocation2 + $0x98] sm:$0x1]  ;;  %v566_v58 = vpop.f32.mrf.mxu1 }
 0x15f   : > { %v1243_v21 = vld [vmem:[#allocation2 + $0x74] sm:$0x1]  ;;  %v1203_v26 = vld [vmem:[#allocation2 + $0x90] sm:$0x1]  ;;  %2598 = vmatprep.mubr.bf16.mxu1 %v2064_v23  ;;  %v904_v30 = vshrl.u32 %v5321_v39, 16  ;;  %v907_v32 = vshll.u32 %v5321_v39, 16  ;;  %5490 = vmatpush3.bf16.msra.mxu0 %v6141_v16  ;;  %v5326_v46 = vpack.c.bf16 %v620_v33, %v620_v33 }
 0x160   : > { %v1244_v25 = vsel %vm6734_vm9, 0, %v1243_v21  ;;  %v1204_v35 = vsel %vm6702_vm7, 0, %v1203_v26  ;;  %v923_v36 = vrot.slane %v921_v5, 7  ;;  %2599 = vmatmul.mubr.bf16.vlgmr.msra.gmra.mxu1 %v6829_v53  ;;  %v1125_v37 = vld [vmem:[#allocation2 + $0x8c] sm:$0x1]  ;;  %v2071_v41 = vor.u32 %v2070_v31, %v2066_v11  ;;  %5491 = vmatprep.subr.bf16.mxu0 %v6148_v29  ;;  %v6151_v11 = vld [vmem:[#allocation6 + $0x20] sm:$0xff]   ;;  %v5817_v5 = vpop.f32.mrf.mxu1 }
 0x161   : > { %1245 = vst [vmem:[#allocation2 + $0x74] sm:$0x1] %v1244_v25  ;;  %v618_v8 = vmax.f32 %v564_v19, 0.0  ;;  %1205 = vst [vmem:[#allocation2 + $0x90] sm:$0x1] %v1204_v35  ;;  %5868 = vmatpush3.bf16.msra.mxu1 %v6666_v10  ;;  %v906_v44 = vrot.slane %v904_v30, 7 }
 0x162   : > { %v1200_v18 = vld [vmem:[#allocation2 + $0x84] sm:$0x1]  ;;  %v2316_v49 = vrot.slane %v6891_v20, 1  ;;  %v1852_v43 = vld [vmem:[#allocation2 + $0x34] sm:$0xf]  ;;  %v926_v54 = vor.u32 %v924_v22, %v923_v36  ;;  %v928_v57 = vrot.slane %v923_v36, 4  ;;  %v2076_v56 = vsel %vm1475_vm11, %v2071_v41, %v2075_v17  ;;  %5869 = vmatprep.subr.bf16.mxu1 %v6887_v15 }
 0x163   : > { %v1849_v47 = vld [vmem:[#allocation2 + $0x24] sm:$0xf]  ;;  %v1896_v52 = vld [vmem:[#allocation2 + $0x30] sm:$0xe]  ;;  %v1201_v53 = vsel %vm6702_vm7, 0, %v1200_v18  ;;  %v909_v60 = vor.u32 %v907_v32, %v906_v44  ;;  %v911_v63 = vrot.slane %v906_v44, 4  ;;  %2606 = vmatprep.mubr.bf16.mxu1 %v2076_v56  ;;  %v5324_v7 = vpack.c.bf16 %v618_v8, %v618_v8  ;;  %5492 = vmatpush3.bf16.msra.mxu0 %v6149_v24 }
 0x164   : > { %v6907_v61 = vld [vmem:[#allocation2 + $0x38] ss:$0 sps:$4 sm:$0x11]   ;;  %v6139_v10 = vld [vmem:[#allocation6 + $0xa8] sm:$0xff]   ;;  %1202 = vst [vmem:[#allocation2 + $0x84] sm:$0x1] %v1201_v53  ;;  %v927_v4 = vsel %vm6710_vm8, %v919_v38, %v926_v54  ;;  %v1133_v6 = vsel %vm6702_vm7, %v928_v57, %v1132_v27  ;;  %v6924_v38 = vcombine.low %v1849_v47, %v1850_v40  ;;  %5493 = vmatprep.subr.bf16.mxu0 %v6150_v42 }
 0x165   : > { %v947_v0 = vshrl.u32 %v5326_v46, 16  ;;  %v950_v1 = vshll.u32 %v5326_v46, 16  ;;  %v2315_v9 = vrot.slane %v5150_v48, 1  ;;  %1131 = vst [vmem:[#allocation2 + $0x94] sm:$0xf] %v927_v4  ;;  %v910_v13 = vsel %vm6710_vm8, %v902_v2, %v909_v60  ;;  %5870 = vmatpush3.bf16.msra.mxu1 %v6887_v15  ;;  %v6158_v29 = vld [vmem:[#allocation6 + $0x58] sm:$0xff]   ;;  %v579_v46 = vpop.f32.mrf.mxu1 }
 0x166   : > { %1134 = vst [vmem:[#allocation2 + $0x98] sm:$0x1] %v1133_v6  ;;  %v1126_v50 = vsel %vm6702_vm7, %v911_v63, %v1125_v37  ;;  %v1851_v16 = vld [vmem:[#allocation2 + $0x30] sm:$0xf]  ;;  %1124 = vst [vmem:[#allocation2 + $0x88] sm:$0xf] %v910_v13  ;;  %v5151_v2 = vcombine.low %v1896_v52, %v1852_v43  ;;  %5871 = vmatprep.subr.bf16.mxu1 %v6139_v10  ;;  %v575_v15 = vadd.f32 %v6896_v34, %v6672_v12 }
 0x167   : > { %v6922_v14 = vrot.slane %v947_v0, 7  ;;  %1127 = vst [vmem:[#allocation2 + $0x8c] sm:$0x1] %v1126_v50  ;;  %v1142_v39 = vld [vmem:[#allocation2 + $0xa8] sm:$0xf]  ;;  %v930_v17 = vshrl.u32 %v5324_v7, 16  ;;  %v2317_v51 = vsel %vm1732_vm10, %v2315_v9, %v2316_v49  ;;  %v6934_v23 = vcombine.low %v1851_v16, %v1852_v43  ;;  %5494 = vmatpush3.bf16.msra.mxu0 %v6151_v11 }
 0x168   : > { %v933_v28 = vshll.u32 %v5324_v7, 16  ;;  %v6160_v19 = vld [vmem:[#allocation6 + $0xa0] sm:$0xff]   ;;  %5839 = vmatprep.mubr.bf16.mxu0 %v2317_v51  ;;  %v2319_v40 = vrot.slane %v6907_v61, 1  ;;  %v2318_v31 = vrot.slane %v5151_v2, 1  ;;  %2607 = vmatmul.mubr.bf16.gmra.mxu1 %v6876_v55  ;;  %v567_v24 = vadd.f32 %v6672_v12, %v566_v58  ;;  %v6159_v25 = vld [vmem:[#allocation6 + $0x18] sm:$0xff]   ;;  %v6161_v34 = vld [vmem:[#allocation6 + $0x50] sm:$0xff]  }
 0x169   : > { %v952_v21 = vor.u32 %v950_v1, %v6922_v14  ;;  %v6932_v22 = vrot.slane %v930_v17, 7  ;;  %v1135_v27 = vld [vmem:[#allocation2 + $0x9c] sm:$0xf]  ;;  %v621_v30 = vmax.f32 %v575_v15, 0.0  ;;  %v2080_v32 = vshll.u32 %v6924_v38, 16  ;;  %5872 = vmatpush3.bf16.msra.mxu1 %v6139_v10  ;;  %5495 = vmatprep.subr.bf16.mxu0 %v6158_v29  ;;  %v6162_v37 = vld [vmem:[#allocation6 + $0x10] sm:$0xff]  }
 0x16a   : > { %v2085_v33 = vshll.u32 %v6891_v20, 16  ;;  %v2320_v55 = vsel %vm1732_vm10, %v2318_v31, %v2319_v40  ;;  %v619_v12 = vmax.f32 %v567_v24, 0.0  ;;  %v2078_v36 = vshrl.u32 %v6924_v38, 16  ;;  %5873 = vmatprep.subr.bf16.mxu1 %v6160_v19  ;;  %v6945_v41 = vld [vmem:[#allocation6 + $0x98] sm:$0xff]   ;;  %v6950_v20 = vld [vmem:[%s8179_s2] ss:$0 sm:$0xff] }
 0x16b   : > { %v1143_v26 = vsel %vm6691_vm6, %v952_v21, %v1142_v39  ;;  %v935_v35 = vor.u32 %v933_v28, %v6932_v22  ;;  %5840 = vmatmul.mubr.bf16.gmra.mxu0 %v2320_v55  ;;  %v5327_v8 = vpack.c.bf16 %v621_v30, %v621_v30  ;;  %v2082_v42 = vrot.slane %v2080_v32, 1  ;;  %v1897_v47 = vld [vmem:[#allocation2 + $0x3c] sm:$0xe]  ;;  %v6957_v54 = vld [vmem:[#allocation2 + $0x44] ss:$0 sps:$4 sm:$0x11]   ;;  %v5818_v21 = vpop.f32.mrf.mxu1 }
 0x16c   : > { %1144 = vst [vmem:[#allocation2 + $0xa8] sm:$0xf] %v1143_v26  ;;  %v2087_v18 = vrot.slane %v2085_v33, 1  ;;  %v588_v44 = vadd.f32 %v6950_v20, %v5817_v5  ;;  %v953_v49 = vrot.slane %v6922_v14, 4  ;;  %v5325_v52 = vpack.c.bf16 %v619_v12, %v619_v12  ;;  %5496 = vmatpush3.bf16.msra.mxu0 %v6159_v25  ;;  %v6169_v0 = vld [vmem:[#allocation6 + $0x48] sm:$0xff]   ;;  %v6182_v39 = vld [vmem:[#allocation6 + $0x90] sm:$0xff]  }
 0x16d   : > { %v1252_v48 = vld [vmem:[#allocation2 + $0x98] sm:$0x1]  ;;  %v1136_v43 = vsel %vm6691_vm6, %v935_v35, %v1135_v27  ;;  %v580_v53 = vadd.f32 %v6950_v20, %v579_v46  ;;  %v955_v10 = vshrl.u32 %v5327_v8, 16  ;;  %v958_v60 = vshll.u32 %v5327_v8, 16  ;;  %5874 = vmatpush3.bf16.msra.mxu1 %v6160_v19  ;;  %5497 = vmatprep.subr.bf16.mxu0 %v6161_v34  ;;  %v1146_v58 = vld [vmem:[#allocation2 + $0xb0] sm:$0x1] }
 0x16e   : > { %v1253_v57 = vsel %vm6734_vm9, 0, %v1252_v48  ;;  %v1249_v56 = vld [vmem:[#allocation2 + $0x8c] sm:$0x1]  ;;  %1137 = vst [vmem:[#allocation2 + $0x9c] sm:$0xf] %v1136_v43  ;;  %v2083_v63 = vor.u32 %v2082_v42, %v2078_v36  ;;  %v938_v4 = vshrl.u32 %v5325_v52, 16  ;;  %5875 = vmatprep.subr.bf16.mxu1 %v6945_v41 }
 0x16f   : > { %1254 = vst [vmem:[#allocation2 + $0x98] sm:$0x1] %v1253_v57  ;;  %v1250_v1 = vsel %vm6734_vm9, 0, %v1249_v56  ;;  %v941_v6 = vshll.u32 %v5325_v52, 16  ;;  %v624_v7 = vmax.f32 %v588_v44, 0.0  ;;  %v957_v11 = vrot.slane %v955_v10, 7 }
 0x170   : > { %v6963_v9 = vld [vmem:[#allocation2 + $0x40] sm:$0xf]  ;;  %1251 = vst [vmem:[#allocation2 + $0x8c] sm:$0x1] %v1250_v1  ;;  %v1139_v13 = vld [vmem:[#allocation2 + $0xa4] sm:$0x1]  ;;  %v2088_v50 = vsel %vm1475_vm11, %v2083_v63, %v2087_v18  ;;  %5498 = vmatpush3.bf16.msra.mxu0 %v6162_v37 }
 0x171   : > { %v622_v14 = vmax.f32 %v580_v53, 0.0  ;;  %v5152_v16 = vcombine.low %v1897_v47, %v6963_v9  ;;  %v6170_v29 = vld [vmem:[#allocation6 + $0x8] sm:$0xff]   ;;  %v936_v17 = vrot.slane %v6932_v22, 4  ;;  %v940_v28 = vrot.slane %v938_v4, 7  ;;  %2614 = vmatprep.mubr.bf16.mxu1 %v2088_v50  ;;  %v1898_v19 = vld [vmem:[#allocation2 + $0x48] sm:$0xe]  ;;  %5499 = vmatprep.subr.bf16.mxu0 %v6169_v0 }
 0x172   : > { %v5330_v51 = vpack.c.bf16 %v624_v7, %v624_v7  ;;  %v2322_v2 = vrot.slane %v6957_v54, 1  ;;  %v6171_v40 = vld [vmem:[#allocation6 + $0x40] sm:$0xff]   ;;  %v960_v5 = vor.u32 %v958_v60, %v957_v11  ;;  %v962_v31 = vrot.slane %v957_v11, 4  ;;  %2615 = vmatmul.mubr.bf16.gmra.mxu1 %v6924_v38  ;;  %v1855_v33 = vld [vmem:[#allocation2 + $0x48] sm:$0xf]  ;;  %v6187_v8 = vld [vmem:[#allocation6 + $0x88] sm:$0xff]  }
 0x173   : > { %v1209_v15 = vld [vmem:[#allocation2 + $0xa8] sm:$0x1]  ;;  %v5328_v24 = vpack.c.bf16 %v622_v14, %v622_v14  ;;  %v1853_v25 = vld [vmem:[#allocation2 + $0x3c] sm:$0xf]  ;;  %v2321_v26 = vrot.slane %v5152_v16, 1  ;;  %v943_v27 = vor.u32 %v941_v6, %v940_v28  ;;  %v945_v30 = vrot.slane %v940_v28, 4  ;;  %5876 = vmatpush3.bf16.msra.mxu1 %v6945_v41 }
 0x174   : > { %v1210_v22 = vsel %vm6702_vm7, 0, %v1209_v15  ;;  %v981_v32 = vshrl.u32 %v5330_v51, 16  ;;  %v6973_v34 = vld [vmem:[#allocation2 + $0x50] ss:$0 sps:$4 sm:$0x11]   ;;  %v961_v35 = vsel %vm6710_vm8, %v953_v49, %v960_v5  ;;  %v1147_v55 = vsel %vm6702_vm7, %v962_v31, %v1146_v58  ;;  %v6172_v37 = vld [vmem:[#allocation6] sm:$0xff]   ;;  %5877 = vmatprep.subr.bf16.mxu1 %v6182_v39  ;;  %v582_v49 = vpop.f32.mrf.mxu1  ;;  %5500 = vmatpush3.bf16.msra.mxu0 %v6170_v29 }
 0x175   : > { %1211 = vst [vmem:[#allocation2 + $0xa8] sm:$0x1] %v1210_v22  ;;  %v984_v38 = vshll.u32 %v5330_v51, 16  ;;  %v1156_v12 = vld [vmem:[#allocation2 + $0xc0] sm:$0xf]  ;;  %v964_v36 = vshrl.u32 %v5328_v24, 16  ;;  %v944_v18 = vsel %vm6710_vm8, %v936_v17, %v943_v27  ;;  %v1140_v41 = vsel %vm6702_vm7, %v945_v30, %v1139_v13  ;;  %5501 = vmatprep.subr.bf16.mxu0 %v6171_v40 }
 0x176   : > { %v1206_v42 = vld [vmem:[#allocation2 + $0x9c] sm:$0x1]  ;;  %1145 = vst [vmem:[#allocation2 + $0xac] sm:$0xf] %v961_v35  ;;  %1148 = vst [vmem:[#allocation2 + $0xb0] sm:$0x1] %v1147_v55  ;;  %v2323_v53 = vsel %vm1732_vm10, %v2321_v26, %v2322_v2  ;;  %v6993_v60 = vcombine.low %v1853_v25, %v6963_v9  ;;  %v591_v0 = vadd.f32 %v6950_v20, %v5818_v21 }
 0x177   : > { %v6984_v44 = vrot.slane %v981_v32, 7  ;;  %v967_v46 = vshll.u32 %v5328_v24, 16  ;;  %v1149_v47 = vld [vmem:[#allocation2 + $0xb4] sm:$0xf]  ;;  %v1856_v48 = vld [vmem:[#allocation2 + $0x4c] sm:$0xf]  ;;  %5843 = vmatprep.mubr.bf16.mxu0 %v2323_v53  ;;  %5878 = vmatpush3.bf16.msra.mxu1 %v6182_v39  ;;  %v583_v7 = vadd.f32 %v6950_v20, %v582_v49 }
 0x178   : > { %v1207_v43 = vsel %vm6702_vm7, 0, %v1206_v42  ;;  %1138 = vst [vmem:[#allocation2 + $0xa0] sm:$0xf] %v944_v18  ;;  %1141 = vst [vmem:[#allocation2 + $0xa4] sm:$0x1] %v1140_v41  ;;  %v6988_v52 = vrot.slane %v964_v36, 7  ;;  %v5153_v57 = vcombine.low %v1898_v19, %v1856_v48  ;;  %v7000_v4 = vcombine.low %v1855_v33, %v1856_v48  ;;  %5879 = vmatprep.subr.bf16.mxu1 %v6187_v8 }
 0x179   : > { %v1899_v56 = vld [vmem:[#allocation2 + $0x54] sm:$0xe]  ;;  %1208 = vst [vmem:[#allocation2 + $0x9c] sm:$0x1] %v1207_v43  ;;  %v986_v10 = vor.u32 %v984_v38, %v6984_v44  ;;  %v2325_v63 = vrot.slane %v6973_v34, 1  ;;  %v6192_v9 = vld [vmem:[#allocation6 + $0x80] sm:$0xff]   ;;  %5502 = vmatpush3.bf16.msra.mxu0 %v6172_v37 }
 0x17a   : > { %v6997_v1 = vld [vmem:[#allocation2 + $0x58] sm:$0xf]  ;;  %v969_v58 = vor.u32 %v967_v46, %v6988_v52  ;;  %v2324_v6 = vrot.slane %v5153_v57, 1  ;;  %v7003_v11 = vld [vmem:[#allocation2 + $0x5c] ss:$0 sps:$4 sm:$0x11]  }
 0x17b   : > { %v7005_v13 = vld [vmem:[#allocation6 + $0x238] sm:$0xff]   ;;  %v987_v50 = vrot.slane %v6984_v44, 4  ;;  %v1157_v14 = vsel %vm6691_vm6, %v986_v10, %v1156_v12  ;;  %v625_v16 = vmax.f32 %v591_v0, 0.0  ;;  %v2092_v29 = vshll.u32 %v6934_v23, 16  ;;  %v1900_v51 = vld [vmem:[#allocation2 + $0x60] sm:$0xe]  ;;  %5880 = vmatpush3.bf16.msra.mxu1 %v6187_v8 }
 0x17c   : > { %1158 = vst [vmem:[#allocation2 + $0xc0] sm:$0xf] %v1157_v14  ;;  %v1150_v39 = vsel %vm6691_vm6, %v969_v58, %v1149_v47  ;;  %v2326_v20 = vsel %vm1732_vm10, %v2324_v6, %v2325_v63  ;;  %v623_v17 = vmax.f32 %v583_v7, 0.0  ;;  %v2097_v28 = vshll.u32 %v6907_v61, 16  ;;  %5915 = vmatprep.subr.bf16.mxu0 %v7005_v13  ;;  %v7020_v45 = vld [vmem:[#allocation2 + $0x64] sm:$0xf]  ;;  %5881 = vmatprep.subr.bf16.mxu1 %v6192_v9 }
 0x17d   : > { %v7015_v2 = vld [vmem:[#allocation2 + $0x68] ss:$0 sps:$4 sm:$0x11]   ;;  %1151 = vst [vmem:[#allocation2 + $0xb4] sm:$0xf] %v1150_v39  ;;  %5844 = vmatmul.mubr.bf16.gmra.mxu0 %v2326_v20  ;;  %v5331_v19 = vpack.c.bf16 %v625_v16, %v625_v16  ;;  %v2090_v21 = vshrl.u32 %v6934_v23, 16  ;;  %v5154_v15 = vcombine.low %v1899_v56, %v6997_v1  ;;  %v5155_v18 = vcombine.low %v1900_v51, %v7020_v45 }
 0x17e   : > { %v2094_v40 = vrot.slane %v2092_v29, 1  ;;  %v1258_v5 = vld [vmem:[#allocation2 + $0xb0] sm:$0x1]  ;;  %v970_v31 = vrot.slane %v6988_v52, 4  ;;  %v5329_v61 = vpack.c.bf16 %v623_v17, %v623_v17  ;;  %v2099_v24 = vrot.slane %v2097_v28, 1 }
 0x17f   : > { %v2328_v25 = vrot.slane %v7003_v11, 1  ;;  %v6198_v26 = vld [vmem:[#allocation6 + $0x1f8] sm:$0xff]   ;;  %v1259_v22 = vsel %vm6734_vm9, 0, %v1258_v5  ;;  %v1255_v27 = vld [vmem:[#allocation2 + $0xa4] sm:$0x1]  ;;  %v989_v30 = vshrl.u32 %v5331_v19, 16  ;;  %5882 = vmatpush3.bf16.msra.mxu1 %v6192_v9 }
 0x180   : > { %v992_v32 = vshll.u32 %v5331_v19, 16  ;;  %v2095_v33 = vor.u32 %v2094_v40, %v2090_v21  ;;  %1260 = vst [vmem:[#allocation2 + $0xb0] sm:$0x1] %v1259_v22  ;;  %v1256_v35 = vsel %vm6734_vm9, 0, %v1255_v27  ;;  %v972_v55 = vshrl.u32 %v5329_v61, 16  ;;  %5623 = vmatprep.subr.bf16.mxu1 %v6198_v26 }
 0x181   : > { %v975_v38 = vshll.u32 %v5329_v61, 16  ;;  %v2327_v12 = vrot.slane %v5154_v15, 1  ;;  %1257 = vst [vmem:[#allocation2 + $0xa4] sm:$0x1] %v1256_v35  ;;  %v991_v36 = vrot.slane %v989_v30, 7  ;;  %v2331_v41 = vrot.slane %v7015_v2, 1 }
 0x182   : > { %v1160_v37 = vld [vmem:[#allocation2 + $0xc8] sm:$0x1]  ;;  %v1153_v8 = vld [vmem:[#allocation2 + $0xbc] sm:$0x1]  ;;  %v2100_v42 = vsel %vm1475_vm11, %v2095_v33, %v2099_v24  ;;  %v974_v46 = vrot.slane %v972_v55, 7  ;;  %v2102_v48 = vshrl.u32 %v6993_v60, 16 }
 0x183   : > { %2622 = vmatprep.mubr.bf16.mxu1 %v2100_v42  ;;  %v2329_v47 = vsel %vm1732_vm10, %v2327_v12, %v2328_v25  ;;  %v2104_v49 = vshll.u32 %v6993_v60, 16  ;;  %v7034_v43 = vld [vmem:[#allocation2 + $0x70] sm:$0xf]  ;;  %v1901_v52 = vld [vmem:[#allocation2 + $0x6c] sm:$0xe]  ;;  %v994_v10 = vor.u32 %v992_v32, %v991_v36  ;;  %v996_v63 = vrot.slane %v991_v36, 4 }
 0x184   : > { %v7036_v53 = vld [vmem:[#allocation2 + $0x74] ss:$0 sps:$4 sm:$0x11]   ;;  %v7038_v57 = vld [vmem:[#allocation2 + $0x80] ss:$0 sps:$4 sm:$0x11]   ;;  %5847 = vmatprep.mubr.bf16.mxu0 %v2329_v47  ;;  %2623 = vmatmul.mubr.bf16.gmra.mxu1 %v6934_v23  ;;  %v977_v16 = vor.u32 %v975_v38, %v974_v46  ;;  %v5156_v61 = vcombine.low %v1901_v52, %v7034_v43 }
 0x185   : > { %v1215_v56 = vld [vmem:[#allocation2 + $0xc0] sm:$0x1]  ;;  %v1857_v0 = vld [vmem:[#allocation2 + $0x54] sm:$0xf]  ;;  %v2330_v58 = vrot.slane %v5155_v18, 1  ;;  %v2109_v6 = vshll.u32 %v6957_v54, 16  ;;  %v995_v17 = vsel %vm6710_vm8, %v987_v50, %v994_v10  ;;  %v1161_v23 = vsel %vm6702_vm7, %v996_v63, %v1160_v37 }
 0x186   : > { %v1902_v7 = vld [vmem:[#allocation2 + $0x78] sm:$0xe]  ;;  %v1216_v9 = vsel %vm6702_vm7, 0, %v1215_v56  ;;  %v1212_v14 = vld [vmem:[#allocation2 + $0xb4] sm:$0x1]  ;;  %v979_v29 = vrot.slane %v974_v46, 4  ;;  %v978_v19 = vsel %vm6710_vm8, %v970_v31, %v977_v16  ;;  %v7066_v3 = vcombine.low %v1857_v0, %v6997_v1 }
 0x187   : > { %v2106_v39 = vrot.slane %v2104_v49, 1  ;;  %1217 = vst [vmem:[#allocation2 + $0xc0] sm:$0x1] %v1216_v9  ;;  %v1213_v20 = vsel %vm6702_vm7, 0, %v1212_v14  ;;  %v2332_v54 = vsel %vm1732_vm10, %v2330_v58, %v2331_v41  ;;  %v7053_v28 = vld [vmem:[#allocation2 + $0x7c] sm:$0xf] }
 0x188   : > { %v1903_v51 = vld [vmem:[#allocation2 + $0x84] sm:$0xe]  ;;  %1214 = vst [vmem:[#allocation2 + $0xb4] sm:$0x1] %v1213_v20  ;;  %1159 = vst [vmem:[#allocation2 + $0xc4] sm:$0xf] %v995_v17  ;;  %v1154_v44 = vsel %vm6702_vm7, %v979_v29, %v1153_v8  ;;  %5848 = vmatmul.mubr.bf16.gmra.mxu0 %v2332_v54  ;;  %v5157_v31 = vcombine.low %v1902_v7, %v7053_v28 }
 0x189   : > { %1162 = vst [vmem:[#allocation2 + $0xc8] sm:$0x1] %v1161_v23  ;;  %v2107_v21 = vor.u32 %v2106_v39, %v2102_v48  ;;  %v2111_v50 = vrot.slane %v2109_v6, 1  ;;  %v7059_v40 = vld [vmem:[#allocation2 + $0x8c] ss:$0 sps:$4 sm:$0x11]  }
 0x18a   : > { %v1904_v15 = vld [vmem:[#allocation2 + $0x90] sm:$0xe]  ;;  %1152 = vst [vmem:[#allocation2 + $0xb8] sm:$0xf] %v978_v19  ;;  %1155 = vst [vmem:[#allocation2 + $0xbc] sm:$0x1] %v1154_v44 }
 0x18b   : > { %v1859_v5 = vld [vmem:[#allocation2 + $0x60] sm:$0xf]  ;;  %v2334_v24 = vrot.slane %v7036_v53, 1  ;;  %v7063_v25 = vld [vmem:[#allocation2 + $0x88] sm:$0xf]  ;;  %v2112_v62 = vsel %vm1475_vm11, %v2107_v21, %v2111_v50  ;;  %v2337_v26 = vrot.slane %v7038_v57, 1 }
 0x18c   : > { %v7071_v22 = vld [vmem:[#allocation2 + $0x94] sm:$0xf]  ;;  %2630 = vmatprep.mubr.bf16.mxu1 %v2112_v62  ;;  %v2333_v27 = vrot.slane %v5156_v61, 1  ;;  %v2114_v30 = vshrl.u32 %v7000_v4, 16  ;;  %v2116_v32 = vshll.u32 %v7000_v4, 16  ;;  %v2121_v33 = vshll.u32 %v6973_v34, 16 }
 0x18d   : > { %v1905_v35 = vld [vmem:[#allocation2 + $0x9c] sm:$0xe]  ;;  %v2336_v55 = vrot.slane %v5157_v31, 1  ;;  %v5158_v1 = vcombine.low %v1903_v51, %v7063_v25  ;;  %v2340_v38 = vrot.slane %v7059_v40, 1  ;;  %2631 = vmatmul.mubr.bf16.gmra.mxu1 %v6993_v60  ;;  %v5159_v42 = vcombine.low %v1904_v15, %v7071_v22  ;;  %v7083_v18 = vld [vmem:[#allocation2 + $0xa0] sm:$0xf] }
 0x18e   : > { %v7078_v12 = vld [vmem:[#allocation2 + $0x98] ss:$0 sps:$4 sm:$0x11]   ;;  %v2335_v36 = vsel %vm1732_vm10, %v2333_v27, %v2334_v24  ;;  %v2118_v37 = vrot.slane %v2116_v32, 1  ;;  %v2123_v8 = vrot.slane %v2121_v33, 1  ;;  %v7086_v34 = vcombine.low %v1859_v5, %v7020_v45 }
 0x18f   : > { %5851 = vmatprep.mubr.bf16.mxu0 %v2335_v36  ;;  %v2338_v41 = vsel %vm1732_vm10, %v2336_v55, %v2337_v26  ;;  %v2339_v46 = vrot.slane %v5158_v1, 1  ;;  %v7089_v47 = vld [vmem:[#allocation2 + $0xa4] ss:$0 sps:$4 sm:$0x11]   ;;  %v1861_v49 = vld [vmem:[#allocation2 + $0x6c] sm:$0xf]  ;;  %v5160_v6 = vcombine.low %v1905_v35, %v7083_v18 }
 0x190   : > { %v1264_v48 = vld [vmem:[#allocation2 + $0xc8] sm:$0x1]  ;;  %v2119_v52 = vor.u32 %v2118_v37, %v2114_v30  ;;  %v2126_v60 = vshrl.u32 %v7066_v3, 16  ;;  %v2128_v56 = vshll.u32 %v7066_v3, 16  ;;  %v2133_v10 = vshll.u32 %v7003_v11, 16  ;;  %5852 = vmatmul.mubr.bf16.gmra.mxu0 %v2338_v41 }
 0x191   : > { %v1265_v63 = vsel %vm6734_vm9, 0, %v1264_v48  ;;  %v1261_v45 = vld [vmem:[#allocation2 + $0xbc] sm:$0x1]  ;;  %v2341_v0 = vsel %vm1732_vm10, %v2339_v46, %v2340_v38  ;;  %v2343_v58 = vrot.slane %v7078_v12, 1  ;;  %v1906_v7 = vld [vmem:[#allocation2 + $0xa8] sm:$0xe]  ;;  %v7108_v59 = vcombine.low %v1861_v49, %v7034_v43 }
 0x192   : > { %1266 = vst [vmem:[#allocation2 + $0xc8] sm:$0x1] %v1265_v63  ;;  %v1262_v9 = vsel %vm6734_vm9, 0, %v1261_v45  ;;  %v2124_v14 = vsel %vm1475_vm11, %v2119_v52, %v2123_v8  ;;  %5855 = vmatprep.mubr.bf16.mxu0 %v2341_v0  ;;  %v2342_v11 = vrot.slane %v5159_v42, 1  ;;  %v2130_v16 = vrot.slane %v2128_v56, 1 }
 0x193   : > { %v7102_v29 = vld [vmem:[#allocation2 + $0xac] sm:$0xf]  ;;  %1263 = vst [vmem:[#allocation2 + $0xbc] sm:$0x1] %v1262_v9  ;;  %2638 = vmatprep.mubr.bf16.mxu1 %v2124_v14  ;;  %v2135_v39 = vrot.slane %v2133_v10, 1  ;;  %v2345_v20 = vrot.slane %v5160_v6, 1 }
 0x194   : > { %v2346_v17 = vrot.slane %v7089_v47, 1  ;;  %v2131_v23 = vor.u32 %v2130_v16, %v2126_v60  ;;  %v7105_v54 = vld [vmem:[#allocation2 + $0xb8] sm:$0xf]  ;;  %v1907_v51 = vld [vmem:[#allocation2 + $0xb4] sm:$0xe]  ;;  %v5161_v44 = vcombine.low %v1906_v7, %v7102_v29  ;;  %v2140_v21 = vshll.u32 %v7086_v34, 16 }
 0x195   : > { %v7110_v19 = vld [vmem:[#allocation2 + $0xb0] ss:$0 sps:$4 sm:$0x11]   ;;  %v2344_v50 = vsel %vm1732_vm10, %v2342_v11, %v2343_v58  ;;  %2639 = vmatmul.mubr.bf16.gmra.mxu1 %v7000_v4  ;;  %v2138_v5 = vshrl.u32 %v7086_v34, 16  ;;  %v2145_v61 = vshll.u32 %v7015_v2, 16  ;;  %v5162_v62 = vcombine.low %v1907_v51, %v7105_v54 }
 0x196   : > { %v2136_v15 = vsel %vm1475_vm11, %v2131_v23, %v2135_v39  ;;  %v2347_v43 = vsel %vm1732_vm10, %v2345_v20, %v2346_v17  ;;  %v2142_v24 = vrot.slane %v2140_v21, 1  ;;  %v7121_v31 = vld [vmem:[#allocation2 + $0xc4] sm:$0xf]  ;;  %v1908_v26 = vld [vmem:[#allocation2 + $0xc0] sm:$0xe]  ;;  %v2348_v27 = vrot.slane %v5161_v44, 1 }
 0x197   : > { %2646 = vmatprep.mubr.bf16.mxu1 %v2136_v15  ;;  %v2349_v30 = vrot.slane %v7110_v19, 1  ;;  %v2152_v4 = vshll.u32 %v7108_v59, 16  ;;  %v2147_v33 = vrot.slane %v2145_v61, 1  ;;  %v1863_v2 = vld [vmem:[#allocation2 + $0x78] sm:$0xf]  ;;  %v2351_v55 = vrot.slane %v5162_v62, 1 }
 0x198   : > { %5856 = vmatmul.mubr.bf16.gmra.mxu0 %v2344_v50  ;;  %v2143_v32 = vor.u32 %v2142_v24, %v2138_v5  ;;  %v6436_v38 = vmov 0   ;;  %v1269_v36 = vld [vmem:[#allocation2 + $0xc] sm:$0xf]  ;;  %v5163_v8 = vcombine.low %v1908_v26, %v7121_v31  ;;  %v2150_v42 = vshrl.u32 %v7108_v59, 16  ;;  %v7140_v56 = vld [vmem:[#allocation2 + $0x10] sm:$0xf] }
 0x199   : > { %5859 = vmatprep.mubr.bf16.mxu0 %v2347_v43  ;;  %1163 = vst [vmem:[#allocation2] sm:$0xf] %v6436_v38  ;;  %1164 = vst [vmem:[#allocation2 + $0x4] sm:$0xf] %v6436_v38  ;;  %v2154_v41 = vrot.slane %v2152_v4, 1  ;;  %v2157_v46 = vshll.u32 %v7036_v53, 16  ;;  %v7134_v48 = vcombine.low %v1863_v2, %v7053_v28  ;;  %v2350_v49 = vsel %vm1732_vm10, %v2348_v27, %v2349_v30 }
 0x19a   : > { %v7125_v35 = vld [vmem:[#allocation2 + $0xbc] ss:$0 sps:$4 sm:$0x11]   ;;  %1165 = vst [vmem:[#allocation2 + $0x8] sm:$0x1] %v6436_v38  ;;  %v2148_v52 = vsel %vm1475_vm11, %v2143_v32, %v2147_v33  ;;  %v7143_v10 = vcombine.low %v1269_v36, %v7140_v56  ;;  %v2354_v53 = vrot.slane %v5163_v8, 1 }
 0x19b   : > { %v2352_v1 = vrot.slane %v7125_v35, 1  ;;  %1167 = vst [vmem:[#allocation2 + $0xcc] sm:$0xf] %v6436_v38  ;;  %1168 = vst [vmem:[#allocation2 + $0xd0] sm:$0xf] %v6436_v38  ;;  %v2155_v45 = vor.u32 %v2154_v41, %v2150_v42  ;;  %v2159_v0 = vrot.slane %v2157_v46, 1 }
 0x19c   : > { %1169 = vst [vmem:[#allocation2 + $0xd4] sm:$0x1] %v6436_v38  ;;  %v7128_v37 = vld [vmem:[#allocation2 + $0xc8] ss:$0 sps:$4 sm:$0x11]   ;;  %v1491_v11 = vshll.u32 %v7143_v10, 16 }
 0x19d   : > { %2647 = vmatmul.mubr.bf16.gmra.mxu1 %v7066_v3  ;;  %v2353_v60 = vsel %vm1732_vm10, %v2351_v55, %v2352_v1  ;;  %v1865_v63 = vld [vmem:[#allocation2 + $0x84] sm:$0xf]  ;;  %v2355_v28 = vrot.slane %v7128_v37, 1  ;;  %v2164_v3 = vshll.u32 %v7134_v48, 16  ;;  %v2160_v39 = vsel %vm1475_vm11, %v2155_v45, %v2159_v0  ;;  %v1271_v50 = vld [vmem:[#allocation2 + $0x18] sm:$0xf] }
 0x19e   : > { %2654 = vmatprep.mubr.bf16.mxu1 %v2148_v52  ;;  %v7150_v7 = vcombine.low %v1865_v63, %v7063_v25  ;;  %v7158_v20 = vld [vmem:[#allocation2 + $0x14] ss:$0 sps:$4 sm:$0x11]   ;;  %v2162_v17 = vshrl.u32 %v7134_v48, 16  ;;  %v2169_v23 = vshll.u32 %v7038_v57, 16  ;;  %v1493_v43 = vrot.slane %v1491_v11, 1 }
 0x19f   : > { %v2356_v16 = vsel %vm1732_vm10, %v2354_v53, %v2355_v28  ;;  %v2166_v21 = vrot.slane %v2164_v3, 1  ;;  %v7164_v61 = vld [vmem:[#allocation2 + $0x1c] sm:$0xf]  ;;  %v1496_v24 = vshll.u32 %v7158_v20, 16  ;;  %v1867_v57 = vld [vmem:[#allocation2 + $0x90] sm:$0xf] }
 0x1a0   : > { %5860 = vmatmul.mubr.bf16.gmra.mxu0 %v2350_v49  ;;  %v1267_v58 = vld [vmem:[#allocation2] sm:$0xf]  ;;  %v7147_v6 = vld [vmem:[#allocation2 + $0x4] sm:$0xf]  ;;  %v7168_v62 = vcombine.low %v1271_v50, %v7164_v61  ;;  %v2171_v27 = vrot.slane %v2169_v23, 1  ;;  %v2176_v30 = vshll.u32 %v7150_v7, 16  ;;  %v7174_v33 = vcombine.low %v1867_v57, %v7071_v22 }
 0x1a1   : > { %5863 = vmatprep.mubr.bf16.mxu0 %v2353_v60  ;;  %v5068_v9 = vcombine.low %v1267_v58, %v7147_v6  ;;  %v7153_v14 = vld [vmem:[#allocation2 + $0x8] ss:$0 sps:$4 sm:$0x11]   ;;  %v2167_v26 = vor.u32 %v2166_v21, %v2162_v17  ;;  %v1489_v4 = vshrl.u32 %v7143_v10, 16  ;;  %v1498_v55 = vrot.slane %v1496_v24, 1  ;;  %v6227_v3 = vld [vmem:[#allocation6 + $0x228] sm:$0xff]  }
 0x1a2   : > { %v1484_v44 = vshll.u32 %v7153_v14, 16  ;;  %v7176_v1 = vld [vmem:[#allocation2 + $0x20] ss:$0 sps:$4 sm:$0x11]   ;;  %v1503_v38 = vshll.u32 %v7168_v62, 16  ;;  %v2174_v8 = vshrl.u32 %v7150_v7, 16 }
 0x1a3   : > { %v1477_v25 = vshrl.u32 %v5068_v9, 16  ;;  %v1479_v51 = vshll.u32 %v5068_v9, 16  ;;  %v1494_v2 = vor.u32 %v1493_v43, %v1489_v4  ;;  %v2172_v36 = vsel %vm1475_vm11, %v2167_v26, %v2171_v27  ;;  %v1273_v46 = vld [vmem:[#allocation2 + $0x24] sm:$0xf]  ;;  %v6214_v22 = vld [vmem:[#allocation6 + $0x230] sm:$0xff]  }
 0x1a4   : > { %v1486_v5 = vrot.slane %v1484_v44, 1  ;;  %v2178_v42 = vrot.slane %v2176_v30, 1  ;;  %v2181_v41 = vshll.u32 %v7059_v40, 16  ;;  %v7183_v49 = vld [vmem:[#allocation2 + $0x28] sm:$0xf]  ;;  %v1505_v60 = vrot.slane %v1503_v38, 1 }
 0x1a5   : > { %2655 = vmatmul.mubr.bf16.gmra.mxu1 %v7086_v34  ;;  %v1481_v15 = vrot.slane %v1479_v51, 1  ;;  %v1499_v52 = vsel %vm1475_vm11, %v1494_v2, %v1498_v55  ;;  %v1508_v63 = vshll.u32 %v7176_v1, 16  ;;  %v1869_v53 = vld [vmem:[#allocation2 + $0x9c] sm:$0xf]  ;;  %v2188_v40 = vshll.u32 %v7174_v33, 16 }
 0x1a6   : > { %2662 = vmatprep.mubr.bf16.mxu1 %v2160_v39  ;;  %v2179_v28 = vor.u32 %v2178_v42, %v2174_v8  ;;  %v2183_v45 = vrot.slane %v2181_v41, 1  ;;  %v1501_v0 = vshrl.u32 %v7168_v62, 16  ;;  %v1275_v58 = vld [vmem:[#allocation2 + $0x30] sm:$0xf]  ;;  %v2193_v51 = vshll.u32 %v7078_v12, 16 }
 0x1a7   : > { %v1482_v34 = vor.u32 %v1481_v15, %v1477_v25  ;;  %v7196_v39 = vld [vmem:[#allocation2 + $0x2c] ss:$0 sps:$4 sm:$0x11]   ;;  %v2190_v25 = vrot.slane %v2188_v40, 1  ;;  %v7203_v44 = vld [vmem:[#allocation2 + $0x34] sm:$0xf] }
 0x1a8   : > { %5864 = vmatmul.mubr.bf16.gmra.mxu0 %v2356_v16  ;;  %v1506_v11 = vor.u32 %v1505_v60, %v1501_v0  ;;  %v1510_v16 = vrot.slane %v1508_v63, 1  ;;  %v2184_v23 = vsel %vm1475_vm11, %v2179_v28, %v2183_v45  ;;  %v7209_v15 = vcombine.low %v1275_v58, %v7203_v44  ;;  %v7223_v8 = vld [vmem:[#allocation2 + $0x40] sm:$0xf]  ;;  %v7233_v28 = vld [vmem:[#allocation2 + $0x4c] sm:$0xf] }
 0x1a9   : > { %v1487_v32 = vsel %vm1475_vm11, %v1482_v34, %v1486_v5  ;;  %v1871_v5 = vld [vmem:[#allocation2 + $0xa8] sm:$0xf]  ;;  %v2195_v12 = vrot.slane %v2193_v51, 1  ;;  %v6236_v34 = vld [vmem:[#allocation6 + $0x218] sm:$0xff]  }
 0x1aa   : > { %3064 = vmatprep.mubr.bf16.mxu0 %v1487_v32  ;;  %v1511_v21 = vsel %vm1475_vm11, %v1506_v11, %v1510_v16  ;;  %v7216_v26 = vcombine.low %v1871_v5, %v7102_v29  ;;  %v1527_v4 = vshll.u32 %v7209_v15, 16  ;;  %v1277_v32 = vld [vmem:[#allocation2 + $0x3c] sm:$0xf]  ;;  %v6243_v29 = vld [vmem:[#allocation6 + $0x210] sm:$0xff]   ;;  %v1525_v63 = vshrl.u32 %v7209_v15, 16 }
 0x1ab   : > { %v7253_v5 = vld [vmem:[#allocation2 + $0x50] ss:$0 sps:$4 sm:$0x11]  }
 0x1ac   : > { %v1529_v41 = vrot.slane %v1527_v4, 1  ;;  %v2212_v60 = vshll.u32 %v7216_v26, 16  ;;  %v2210_v16 = vshrl.u32 %v7216_v26, 16 }
 0x1ad   : > { %2663 = vmatmul.mubr.bf16.gmra.mxu1 %v7108_v59  ;;  %v7188_v59 = vcombine.low %v1273_v46, %v7183_v49  ;;  %v7229_v46 = vcombine.low %v1277_v32, %v7223_v8  ;;  %v2229_v32 = vshll.u32 %v7125_v35, 16  ;;  %v7273_v35 = vld [vmem:[#allocation2 + $0x5c] ss:$0 sps:$4 sm:$0x11]  }
 0x1ae   : > { %2670 = vmatprep.mubr.bf16.mxu1 %v2172_v36  ;;  %v2205_v36 = vshll.u32 %v7089_v47, 16  ;;  %v1530_v40 = vor.u32 %v1529_v41, %v1525_v63  ;;  %v2241_v63 = vshll.u32 %v7128_v37, 16  ;;  %v7289_v37 = vld [vmem:[#allocation2 + $0x68] ss:$0 sps:$4 sm:$0x11]  }
 0x1af   : > { %v1515_v17 = vshll.u32 %v7188_v59, 16  ;;  %v1513_v57 = vshrl.u32 %v7188_v59, 16  ;;  %v1539_v58 = vshll.u32 %v7229_v46, 16 }
 0x1b0   : > { %3065 = vmatmul.mubr.bf16.vlgmr.msra.gmra.mxu0 %v5068_v9  ;;  %v7194_v9 = vcombine.low %v1869_v53, %v7083_v18  ;;  %v6235_v18 = vld [vmem:[#allocation6 + $0x220] sm:$0xff]   ;;  %v2207_v47 = vrot.slane %v2205_v36, 1  ;;  %v6244_v53 = vld [vmem:[#allocation6 + $0x208] sm:$0xff]  }
 0x1b1   : > { %3072 = vmatprep.mubr.bf16.mxu0 %v1499_v52  ;;  %5916 = vmatpush3.bf16.msra.mxu0 %v7005_v13  ;;  %v2186_v13 = vshrl.u32 %v7174_v33, 16  ;;  %v1517_v50 = vrot.slane %v1515_v17, 1  ;;  %v2214_v17 = vrot.slane %v2212_v60, 1  ;;  %v1541_v51 = vrot.slane %v1539_v58, 1 }
 0x1b2   : > { %5917 = vmatprep.subr.bf16.mxu0 %v6214_v22  ;;  %v2200_v24 = vshll.u32 %v7194_v9, 16  ;;  %v2198_v55 = vshrl.u32 %v7194_v9, 16  ;;  %v1568_v58 = vshll.u32 %v7273_v35, 16 }
 0x1b3   : > { %v2191_v43 = vor.u32 %v2190_v25, %v2186_v13  ;;  %v1518_v27 = vor.u32 %v1517_v50, %v1513_v57  ;;  %v2215_v50 = vor.u32 %v2214_v17, %v2210_v16  ;;  %v1281_v57 = vld [vmem:[#allocation2 + $0x54] sm:$0xf]  ;;  %v2243_v17 = vrot.slane %v2241_v63, 1 }
 0x1b4   : > { %v2202_v38 = vrot.slane %v2200_v24, 1 }
 0x1b5   : > { %2671 = vmatmul.mubr.bf16.gmra.mxu1 %v7134_v48  ;;  %5918 = vmatpush3.bf16.msra.mxu0 %v6214_v22  ;;  %v1520_v48 = vshll.u32 %v7196_v39, 16  ;;  %v2196_v2 = vsel %vm1475_vm11, %v2191_v43, %v2195_v12  ;;  %v1873_v22 = vld [vmem:[#allocation2 + $0xb4] sm:$0xf] }
 0x1b6   : > { %2678 = vmatprep.mubr.bf16.mxu1 %v2184_v23  ;;  %5919 = vmatprep.subr.bf16.mxu0 %v6227_v3  ;;  %v2203_v52 = vor.u32 %v2202_v38, %v2198_v55  ;;  %v7236_v45 = vcombine.low %v1873_v22, %v7105_v54  ;;  %v2217_v23 = vshll.u32 %v7110_v19, 16  ;;  %v6251_v54 = vld [vmem:[#allocation6 + $0x200] sm:$0xff]  }
 0x1b7   : > { %v1522_v30 = vrot.slane %v1520_v48, 1 }
 0x1b8   : > { %3073 = vmatmul.mubr.bf16.gmra.mxu0 %v7143_v10  ;;  %v7213_v10 = vld [vmem:[#allocation2 + $0x38] ss:$0 sps:$4 sm:$0x11]   ;;  %v2208_v11 = vsel %vm1475_vm11, %v2203_v52, %v2207_v47  ;;  %v2219_v19 = vrot.slane %v2217_v23, 1  ;;  %v2224_v48 = vshll.u32 %v7236_v45, 16 }
 0x1b9   : > { %3080 = vmatprep.mubr.bf16.mxu0 %v1511_v21  ;;  %5920 = vmatpush3.bf16.msra.mxu0 %v6227_v3  ;;  %v1523_v42 = vsel %vm1475_vm11, %v1518_v27, %v1522_v30  ;;  %v7238_v3 = vld [vmem:[#allocation2 + $0x44] ss:$0 sps:$4 sm:$0x11]   ;;  %v1875_v21 = vld [vmem:[#allocation2 + $0xc0] sm:$0xf]  ;;  %v2222_v30 = vshrl.u32 %v7236_v45, 16 }
 0x1ba   : > { %5921 = vmatprep.subr.bf16.mxu0 %v6235_v18  ;;  %v7256_v43 = vcombine.low %v1875_v21, %v7121_v31  ;;  %v2220_v27 = vsel %vm1475_vm11, %v2215_v50, %v2219_v19  ;;  %v2226_v4 = vrot.slane %v2224_v48, 1  ;;  %v1283_v52 = vld [vmem:[#allocation2 + $0x60] sm:$0xf]  ;;  %v1734_v19 = vrot.slane %v7153_v14, 1  ;;  %v1316_v14 = vld [vmem:[#allocation2 + $0xc] sm:$0xe] }
 0x1bc   : > { %v2227_v36 = vor.u32 %v2226_v4, %v2222_v30  ;;  %v2234_v47 = vshrl.u32 %v7256_v43, 16  ;;  %v7310_v4 = vld [vmem:[#allocation2 + $0x7c] sm:$0xf] }
 0x1bd   : > { %2679 = vmatmul.mubr.bf16.gmra.mxu1 %v7150_v7  ;;  %5922 = vmatpush3.bf16.msra.mxu0 %v6235_v18  ;;  %v1532_v7 = vshll.u32 %v7213_v10, 16  ;;  %v1544_v18 = vshll.u32 %v7238_v3, 16 }
 0x1be   : > { %2686 = vmatprep.mubr.bf16.mxu1 %v2196_v2  ;;  %5923 = vmatprep.subr.bf16.mxu0 %v6236_v34 }
 0x1bf   : > { %v1534_v0 = vrot.slane %v1532_v7, 1  ;;  %v1546_v12 = vrot.slane %v1544_v18, 1 }
 0x1c0   : > { %3081 = vmatmul.mubr.bf16.gmra.mxu0 %v7168_v62  ;;  %v1279_v62 = vld [vmem:[#allocation2 + $0x48] sm:$0xf] }
 0x1c1   : > { %3088 = vmatprep.mubr.bf16.mxu0 %v1523_v42  ;;  %5924 = vmatpush3.bf16.msra.mxu0 %v6236_v34  ;;  %v7246_v13 = vcombine.low %v1279_v62, %v7233_v28  ;;  %v1535_v25 = vsel %vm1475_vm11, %v1530_v40, %v1534_v0  ;;  %v7259_v34 = vld [vmem:[#allocation2 + $0x58] sm:$0xf]  ;;  %v2236_v42 = vshll.u32 %v7256_v43, 16 }
 0x1c2   : > { %5925 = vmatprep.subr.bf16.mxu0 %v6243_v29  ;;  %v7266_v31 = vcombine.low %v1281_v57, %v7259_v34 }
 0x1c3   : > { %v1551_v24 = vshll.u32 %v7246_v13, 16  ;;  %v1549_v55 = vshrl.u32 %v7246_v13, 16  ;;  %v2238_v60 = vrot.slane %v2236_v42, 1 }
 0x1c4   : > { %v1563_v22 = vshll.u32 %v7266_v31, 16  ;;  %v1561_v62 = vshrl.u32 %v7266_v31, 16 }
 0x1c5   : > { %2687 = vmatmul.mubr.bf16.gmra.mxu1 %v7174_v33  ;;  %5926 = vmatpush3.bf16.msra.mxu0 %v6243_v29  ;;  %v1537_v33 = vshrl.u32 %v7229_v46, 16  ;;  %v1553_v38 = vrot.slane %v1551_v24, 1  ;;  %v2231_v29 = vrot.slane %v2229_v32, 1  ;;  %v2239_v16 = vor.u32 %v2238_v60, %v2234_v47  ;;  %v1318_v60 = vld [vmem:[#allocation2 + $0x24] sm:$0xe] }
 0x1c6   : > { %2694 = vmatprep.mubr.bf16.mxu1 %v2208_v11  ;;  %5927 = vmatprep.subr.bf16.mxu0 %v6244_v53  ;;  %v1565_v0 = vrot.slane %v1563_v22, 1  ;;  %v1315_v11 = vld [vmem:[#allocation2] sm:$0xe]  ;;  %v5101_v32 = vcombine.low %v1316_v14, %v7140_v56  ;;  %v1740_v56 = vrot.slane %v7176_v1, 1  ;;  %v5103_v1 = vcombine.low %v1318_v60, %v7183_v49  ;;  %v7348_v14 = vld [vmem:[#allocation2 + $0x94] sm:$0xf] }
 0x1c7   : > { %v1554_v41 = vor.u32 %v1553_v38, %v1549_v55  ;;  %v5100_v23 = vcombine.low %v1315_v11, %v7147_v6  ;;  %v2244_v18 = vsel %vm1475_vm11, %v2239_v16, %v2243_v17  ;;  %v7323_v22 = vld [vmem:[#allocation2 + $0x80] ss:$0 sps:$4 sm:$0x11]   ;;  %v1746_v49 = vrot.slane %v7213_v10, 1 }
 0x1c8   : > { %3089 = vmatmul.mubr.bf16.gmra.mxu0 %v7188_v59  ;;  %v1542_v59 = vor.u32 %v1541_v51, %v1537_v33  ;;  %v1285_v33 = vld [vmem:[#allocation2 + $0x6c] sm:$0xf]  ;;  %v7293_v51 = vld [vmem:[#allocation2 + $0x70] sm:$0xf]  ;;  %v1604_v16 = vshll.u32 %v7323_v22, 16 }
 0x1c9   : > { %3096 = vmatprep.mubr.bf16.mxu0 %v1535_v25  ;;  %5928 = vmatpush3.bf16.msra.mxu0 %v6244_v53  ;;  %v7280_v53 = vld [vmem:[#allocation2 + $0x64] sm:$0xf]  ;;  %v1570_v25 = vrot.slane %v1568_v58, 1  ;;  %v7298_v21 = vcombine.low %v1285_v33, %v7293_v51  ;;  %v1733_v50 = vrot.slane %v5100_v23, 1  ;;  %v6207_v58 = vld [vmem:[#allocation6 + $0x1b0] sm:$0xff]  }
 0x1ca   : > { %5929 = vmatprep.subr.bf16.mxu0 %v6251_v54  ;;  %v1547_v2 = vsel %vm1475_vm11, %v1542_v59, %v1546_v12  ;;  %v1580_v12 = vshll.u32 %v7289_v37, 16  ;;  %v6211_v23 = vld [vmem:[#allocation6 + $0x1e8] sm:$0xff]  }
 0x1cb   : > { %v1587_v24 = vshll.u32 %v7298_v21, 16  ;;  %v1735_v57 = vsel %vm1732_vm10, %v1733_v50, %v1734_v19  ;;  %v1585_v55 = vshrl.u32 %v7298_v21, 16  ;;  %v1742_v50 = vrot.slane %v5103_v1, 1  ;;  %v6213_v19 = vld [vmem:[#allocation6 + $0x1a8] sm:$0xff]  }
 0x1cc   : > { %v1582_v30 = vrot.slane %v1580_v12, 1 }
 0x1cd   : > { %2695 = vmatmul.mubr.bf16.gmra.mxu1 %v7194_v9  ;;  %5930 = vmatpush3.bf16.msra.mxu0 %v6251_v54  ;;  %v1556_v9 = vshll.u32 %v7253_v5, 16  ;;  %v1566_v54 = vor.u32 %v1565_v0, %v1561_v62  ;;  %v1589_v38 = vrot.slane %v1587_v24, 1  ;;  %v7328_v0 = vld [vmem:[#allocation2 + $0x88] sm:$0xf] }
 0x1ce   : > { %2702 = vmatprep.mubr.bf16.mxu1 %v2220_v27 }
 0x1cf   : > { %v1558_v7 = vrot.slane %v1556_v9, 1  ;;  %v1571_v6 = vsel %vm1475_vm11, %v1566_v54, %v1570_v25 }
 0x1d0   : > { %3097 = vmatmul.mubr.bf16.gmra.mxu0 %v7209_v15  ;;  %v2232_v15 = vsel %vm1475_vm11, %v2227_v36, %v2231_v29 }
 0x1d1   : > { %3104 = vmatprep.mubr.bf16.mxu0 %v1547_v2  ;;  %v1559_v40 = vsel %vm1475_vm11, %v1554_v41, %v1558_v7  ;;  %v1317_v2 = vld [vmem:[#allocation2 + $0x18] sm:$0xe]  ;;  %v1736_v41 = vrot.slane %v5101_v32, 1  ;;  %v6200_v7 = vld [vmem:[#allocation6 + $0x1b8] sm:$0xff]  }
 0x1d2   : > { %v5102_v36 = vcombine.low %v1317_v2, %v7164_v61  ;;  %v6205_v61 = vld [vmem:[#allocation6 + $0x1f0] sm:$0xff]  }
 0x1d4   : > { %v1739_v47 = vrot.slane %v5102_v36, 1 }
 0x1d5   : > { %2703 = vmatmul.mubr.bf16.gmra.mxu1 %v7216_v26  ;;  %v7287_v26 = vcombine.low %v1283_v52, %v7280_v53  ;;  %v1590_v52 = vor.u32 %v1589_v38, %v1585_v55  ;;  %v1749_v55 = vrot.slane %v7238_v3, 1  ;;  %v6224_v38 = vld [vmem:[#allocation6 + $0x1d8] sm:$0xff]  }
 0x1d6   : > { %2710 = vmatprep.mubr.bf16.mxu1 %v2232_v15  ;;  %v1741_v62 = vsel %vm1732_vm10, %v1739_v47, %v1740_v56  ;;  %v1322_v56 = vld [vmem:[#allocation2 + $0x54] sm:$0xe] }
 0x1d7   : > { %v1573_v48 = vshrl.u32 %v7287_v26, 16  ;;  %v5107_v60 = vcombine.low %v1322_v56, %v7259_v34  ;;  %v1297_v56 = vld [vmem:[#allocation2 + $0xb4] sm:$0xf] }
 0x1d8   : > { %3105 = vmatmul.mubr.bf16.gmra.mxu0 %v7229_v46  ;;  %v1575_v46 = vshll.u32 %v7287_v26, 16 }
 0x1d9   : > { %3112 = vmatprep.mubr.bf16.mxu0 %v1559_v40  ;;  %v1289_v40 = vld [vmem:[#allocation2 + $0x84] sm:$0xf] }
 0x1da   : > { %v1577_v59 = vrot.slane %v1575_v46, 1  ;;  %v1743_v46 = vrot.slane %v7196_v39, 1  ;;  %v7338_v33 = vcombine.low %v1289_v40, %v7328_v0 }
 0x1dc   : > { %v1578_v27 = vor.u32 %v1577_v59, %v1573_v48  ;;  %v7341_v59 = vld [vmem:[#allocation2 + $0x8c] ss:$0 sps:$4 sm:$0x11]   ;;  %v1744_v39 = vsel %vm1732_vm10, %v1742_v50, %v1743_v46  ;;  %v1611_v24 = vshll.u32 %v7338_v33, 16  ;;  %v1609_v32 = vshrl.u32 %v7338_v33, 16 }
 0x1dd   : > { %2711 = vmatmul.mubr.bf16.gmra.mxu1 %v7236_v45  ;;  %v7305_v45 = vld [vmem:[#allocation2 + $0x74] ss:$0 sps:$4 sm:$0x11]   ;;  %v1616_v2 = vshll.u32 %v7341_v59, 16  ;;  %v1325_v46 = vld [vmem:[#allocation2 + $0x78] sm:$0xe] }
 0x1de   : > { %2718 = vmatprep.mubr.bf16.mxu1 %v2244_v18  ;;  %v1592_v9 = vshll.u32 %v7305_v45, 16  ;;  %v1583_v29 = vsel %vm1475_vm11, %v1578_v27, %v1582_v30  ;;  %v1320_v18 = vld [vmem:[#allocation2 + $0x3c] sm:$0xe]  ;;  %v1291_v30 = vld [vmem:[#allocation2 + $0x90] sm:$0xf] }
 0x1df   : > { %v7356_v36 = vcombine.low %v1291_v30, %v7348_v14  ;;  %v1618_v3 = vrot.slane %v1616_v2, 1  ;;  %v1764_v2 = vrot.slane %v7323_v22, 1 }
 0x1e0   : > { %3113 = vmatmul.mubr.bf16.gmra.mxu0 %v7246_v13  ;;  %v1287_v13 = vld [vmem:[#allocation2 + $0x78] sm:$0xf]  ;;  %v1594_v15 = vrot.slane %v1592_v9, 1  ;;  %v1613_v9 = vrot.slane %v1611_v24, 1 }
 0x1e1   : > { %3120 = vmatprep.mubr.bf16.mxu0 %v1571_v6  ;;  %v7320_v42 = vcombine.low %v1287_v13, %v7310_v4  ;;  %v1321_v6 = vld [vmem:[#allocation2 + $0x48] sm:$0xe]  ;;  %v6220_v13 = vld [vmem:[#allocation6 + $0x1a0] sm:$0xff]   ;;  %v1621_v40 = vshrl.u32 %v7356_v36, 16 }
 0x1e2   : > { %v1595_v11 = vsel %vm1475_vm11, %v1590_v52, %v1594_v15  ;;  %v5106_v27 = vcombine.low %v1321_v6, %v7233_v28  ;;  %v7359_v52 = vld [vmem:[#allocation2 + $0x98] ss:$0 sps:$4 sm:$0x11]   ;;  %v1614_v15 = vor.u32 %v1613_v9, %v1609_v32 }
 0x1e3   : > { %v1599_v63 = vshll.u32 %v7320_v42, 16  ;;  %v1597_v54 = vshrl.u32 %v7320_v42, 16  ;;  %v1628_v1 = vshll.u32 %v7359_v52, 16 }
 0x1e4   : > { %v1619_v34 = vsel %vm1475_vm11, %v1614_v15, %v1618_v3  ;;  %v1767_v15 = vrot.slane %v7341_v59, 1 }
 0x1e5   : > { %2719 = vmatmul.mubr.bf16.gmra.mxu1 %v7256_v43  ;;  %v1737_v43 = vrot.slane %v7158_v20, 1  ;;  %v1319_v20 = vld [vmem:[#allocation2 + $0x30] sm:$0xe]  ;;  %v1601_v25 = vrot.slane %v1599_v63, 1  ;;  %v1293_v63 = vld [vmem:[#allocation2 + $0x9c] sm:$0xf] }
 0x1e6   : > { %5883 = vmatprep.mubr.bf16.mxu1 %v1735_v57  ;;  %v5104_v17 = vcombine.low %v1319_v20, %v7203_v44  ;;  %v1606_v44 = vrot.slane %v1604_v16, 1  ;;  %v5105_v57 = vcombine.low %v1320_v18, %v7223_v8  ;;  %v7366_v20 = vld [vmem:[#allocation2 + $0xa0] sm:$0xf]  ;;  %v7377_v18 = vld [vmem:[#allocation2 + $0xa4] ss:$0 sps:$4 sm:$0x11]  }
 0x1e7   : > { %v1602_v12 = vor.u32 %v1601_v25, %v1597_v54  ;;  %v1758_v54 = vrot.slane %v7289_v37, 1  ;;  %v1324_v25 = vld [vmem:[#allocation2 + $0x6c] sm:$0xe]  ;;  %v5110_v37 = vcombine.low %v1325_v46, %v7310_v4  ;;  %v6247_v46 = vld [vmem:[#allocation2 + $0x20] ss:$0 sps:$4 sm:$0x11]  }
 0x1e8   : > { %3121 = vmatmul.mubr.bf16.gmra.mxu0 %v7266_v31  ;;  %v1738_v31 = vsel %vm1732_vm10, %v1736_v41, %v1737_v43  ;;  %v1745_v48 = vrot.slane %v5104_v17, 1  ;;  %v1748_v28 = vrot.slane %v5105_v57, 1  ;;  %v1752_v43 = vrot.slane %v7253_v5, 1  ;;  %v1323_v41 = vld [vmem:[#allocation2 + $0x60] sm:$0xe] }
 0x1e9   : > { %3128 = vmatprep.mubr.bf16.mxu0 %v1583_v29  ;;  %v1607_v8 = vsel %vm1475_vm11, %v1602_v12, %v1606_v44  ;;  %v1751_v29 = vrot.slane %v5106_v27, 1  ;;  %v5108_v5 = vcombine.low %v1323_v41, %v7280_v53  ;;  %v1754_v53 = vrot.slane %v5107_v60, 1  ;;  %v7384_v12 = vld [vmem:[#allocation2 + $0xac] sm:$0xf]  ;;  %v1298_v41 = vld [vmem:[#allocation2 + $0xb8] sm:$0xf] }
 0x1ea   : > { %v1747_v10 = vsel %vm1732_vm10, %v1745_v48, %v1746_v49  ;;  %v1750_v47 = vsel %vm1732_vm10, %v1748_v28, %v1749_v55  ;;  %v7374_v17 = vcombine.low %v1293_v63, %v7366_v20  ;;  %v6241_v49 = vld [vmem:[#allocation6 + $0x188] sm:$0xff]   ;;  %v5109_v44 = vcombine.low %v1324_v25, %v7293_v51  ;;  %v1327_v55 = vld [vmem:[#allocation2 + $0x90] sm:$0xe]  ;;  %v1328_v60 = vld [vmem:[#allocation2 + $0x9c] sm:$0xe] }
 0x1eb   : > { %v1640_v57 = vshll.u32 %v7377_v18, 16  ;;  %v1763_v32 = vrot.slane %v5110_v37, 1 }
 0x1ec   : > { %v1635_v6 = vshll.u32 %v7374_v17, 16  ;;  %v1633_v24 = vshrl.u32 %v7374_v17, 16  ;;  %v1760_v30 = vrot.slane %v5109_v44, 1 }
 0x1ed   : > { %5884 = vmatmul.mubr.bf16.vlgmr.msra.gmra.mxu1 %v1738_v31  ;;  %v1753_v31 = vsel %vm1732_vm10, %v1751_v29, %v1752_v43  ;;  %v1642_v9 = vrot.slane %v1640_v57, 1  ;;  %v1765_v29 = vsel %vm1732_vm10, %v1763_v32, %v1764_v2  ;;  %v5112_v43 = vcombine.low %v1327_v55, %v7348_v14  ;;  %v6252_v2 = vld [vmem:[#allocation2 + $0x2c] ss:$0 sps:$4 sm:$0x11]  }
 0x1ee   : > { %5624 = vmatpush3.bf16.msra.mxu1 %v6200_v7  ;;  %5887 = vmatprep.mubr.bf16.mxu1 %v1741_v62  ;;  %v6226_v7 = vld [vmem:[#allocation6 + $0x198] sm:$0xff]   ;;  %v6233_v62 = vld [vmem:[#allocation6 + $0x190] sm:$0xff]   ;;  %v1637_v27 = vrot.slane %v1635_v6, 1  ;;  %v1770_v14 = vrot.slane %v7359_v52, 1 }
 0x1ef   : > { %5625 = vmatprep.subr.bf16.mxu1 %v6205_v61  ;;  %v1623_v61 = vshll.u32 %v7356_v36, 16 }
 0x1f0   : > { %3129 = vmatmul.mubr.bf16.gmra.mxu0 %v7287_v26  ;;  %v6218_v26 = vld [vmem:[#allocation6 + $0x1e0] sm:$0xff]  }
 0x1f1   : > { %3136 = vmatprep.mubr.bf16.mxu0 %v1595_v11  ;;  %v6239_v11 = vld [vmem:[#allocation6 + $0x1c8] sm:$0xff]   ;;  %v1625_v16 = vrot.slane %v1623_v61, 1  ;;  %v1769_v61 = vrot.slane %v5112_v43, 1 }
 0x1f2   : > { %5626 = vmatpush3.bf16.msra.mxu1 %v6207_v58  ;;  %v1755_v58 = vrot.slane %v7273_v35, 1  ;;  %v1630_v35 = vrot.slane %v1628_v1, 1 }
 0x1f3   : > { %5627 = vmatprep.subr.bf16.mxu1 %v6211_v23  ;;  %v1757_v23 = vrot.slane %v5108_v5, 1  ;;  %v1626_v50 = vor.u32 %v1625_v16, %v1621_v40  ;;  %v3355_v5 = vld [vmem:[#allocation2 + $0x18] sm:$0xf]  ;;  %v1771_v59 = vsel %vm1732_vm10, %v1769_v61, %v1770_v14 }
 0x1f4   : > { %v6255_v14 = vld [vmem:[#allocation2 + $0x38] ss:$0 sps:$4 sm:$0x11]  }
 0x1f5   : > { %5888 = vmatmul.mubr.bf16.gmra.mxu1 %v1744_v39  ;;  %v1759_v48 = vsel %vm1732_vm10, %v1757_v23, %v1758_v54  ;;  %v6250_v39 = vld [vmem:[#allocation6 + $0x180] sm:$0xff]   ;;  %v1631_v51 = vsel %vm1475_vm11, %v1626_v50, %v1630_v35 }
 0x1f6   : > { %5891 = vmatprep.mubr.bf16.mxu1 %v1747_v10  ;;  %5628 = vmatpush3.bf16.msra.mxu1 %v6213_v19  ;;  %v1756_v19 = vsel %vm1732_vm10, %v1754_v53, %v1755_v58  ;;  %v1761_v10 = vrot.slane %v7305_v45, 1  ;;  %v5113_v58 = vcombine.low %v1328_v60, %v7366_v20  ;;  %v1773_v20 = vrot.slane %v7377_v18, 1 }
 0x1f7   : > { %5629 = vmatprep.subr.bf16.mxu1 %v6218_v26  ;;  %v1295_v26 = vld [vmem:[#allocation2 + $0xa8] sm:$0xf] }
 0x1f8   : > { %3137 = vmatmul.mubr.bf16.gmra.mxu0 %v7298_v21  ;;  %v6231_v21 = vld [vmem:[#allocation6 + $0x1d0] sm:$0xff]   ;;  %v7392_v4 = vcombine.low %v1295_v26, %v7384_v12  ;;  %v1772_v25 = vrot.slane %v5113_v58, 1  ;;  %v3361_v58 = vld [vmem:[#allocation2 + $0x3c] sm:$0xf] }
 0x1f9   : > { %3144 = vmatprep.mubr.bf16.mxu0 %v1607_v8  ;;  %v1638_v8 = vor.u32 %v1637_v27, %v1633_v24 }
 0x1fa   : > { %5630 = vmatpush3.bf16.msra.mxu1 %v6220_v13  ;;  %v1326_v13 = vld [vmem:[#allocation2 + $0x84] sm:$0xe]  ;;  %v1647_v28 = vshll.u32 %v7392_v4, 16  ;;  %v1645_v22 = vshrl.u32 %v7392_v4, 16 }
 0x1fb   : > { %5631 = vmatprep.subr.bf16.mxu1 %v6224_v38  ;;  %v6230_v38 = vld [vmem:[#allocation2 + $0xb0] ss:$0 sps:$4 sm:$0x11]   ;;  %v5111_v45 = vcombine.low %v1326_v13, %v7328_v0  ;;  %v1643_v0 = vsel %vm1475_vm11, %v1638_v8, %v1642_v9  ;;  %v3820_v8 = vrot.slane %v6247_v46, 1 }
 0x1fc   : > { %v1776_v35 = vrot.slane %v6230_v38, 1 }
 0x1fd   : > { %5892 = vmatmul.mubr.bf16.gmra.mxu1 %v1750_v47  ;;  %v1766_v3 = vrot.slane %v5111_v45, 1  ;;  %v7404_v47 = vcombine.low %v1297_v56, %v1298_v41  ;;  %v3359_v45 = vld [vmem:[#allocation2 + $0x30] sm:$0xf] }
 0x1fe   : > { %5895 = vmatprep.mubr.bf16.mxu1 %v1753_v31  ;;  %5632 = vmatpush3.bf16.msra.mxu1 %v6226_v7  ;;  %v1652_v7 = vshll.u32 %v6230_v38, 16  ;;  %v1329_v31 = vld [vmem:[#allocation2 + $0xa8] sm:$0xe] }
 0x1ff   : > { %5633 = vmatprep.subr.bf16.mxu1 %v6231_v21  ;;  %v1649_v21 = vrot.slane %v1647_v28, 1  ;;  %v1768_v1 = vsel %vm1732_vm10, %v1766_v3, %v1767_v15  ;;  %v1657_v52 = vshrl.u32 %v7404_v47, 16  ;;  %v3405_v3 = vld [vmem:[#allocation2 + $0x30] sm:$0xe] }
 0x200   : > { %3145 = vmatmul.mubr.bf16.gmra.mxu0 %v7320_v42  ;;  %v6245_v42 = vld [vmem:[#allocation6 + $0x1c0] sm:$0xff]   ;;  %v1654_v63 = vrot.slane %v1652_v7, 1 }
 0x201   : > { %3152 = vmatprep.mubr.bf16.mxu0 %v1619_v34  ;;  %v1650_v40 = vor.u32 %v1649_v21, %v1645_v22  ;;  %v5114_v34 = vcombine.low %v1329_v31, %v7384_v12  ;;  %v3583_v22 = vshll.u32 %v6252_v2, 16 }
 0x202   : > { %5634 = vmatpush3.bf16.msra.mxu1 %v6233_v62  ;;  %v6238_v62 = vld [vmem:[#allocation2 + $0xbc] ss:$0 sps:$4 sm:$0x11]  }
 0x203   : > { %5635 = vmatprep.subr.bf16.mxu1 %v6239_v11  ;;  %v3356_v11 = vld [vmem:[#allocation2 + $0x1c] sm:$0xf]  ;;  %v1664_v53 = vshll.u32 %v6238_v62, 16  ;;  %v1655_v23 = vsel %vm1475_vm11, %v1650_v40, %v1654_v63  ;;  %v1779_v27 = vrot.slane %v6238_v62, 1  ;;  %v3585_v63 = vrot.slane %v3583_v22, 1 }
 0x204   : > { %v7412_v16 = vcombine.low %v3355_v5, %v3356_v11 }
 0x205   : > { %5896 = vmatmul.mubr.bf16.gmra.mxu1 %v1756_v19  ;;  %v3357_v19 = vld [vmem:[#allocation2 + $0x24] sm:$0xf]  ;;  %v1666_v44 = vrot.slane %v1664_v53, 1 }
 0x206   : > { %5899 = vmatprep.mubr.bf16.mxu1 %v1759_v48  ;;  %5636 = vmatpush3.bf16.msra.mxu1 %v6241_v49  ;;  %v1775_v49 = vrot.slane %v5114_v34, 1  ;;  %v3566_v50 = vshll.u32 %v7412_v16, 16  ;;  %v1774_v48 = vsel %vm1732_vm10, %v1772_v25, %v1773_v20  ;;  %v3564_v24 = vshrl.u32 %v7412_v16, 16 }
 0x207   : > { %5637 = vmatprep.subr.bf16.mxu1 %v6245_v42  ;;  %v1330_v42 = vld [vmem:[#allocation2 + $0xb4] sm:$0xe] }
 0x208   : > { %3153 = vmatmul.mubr.bf16.gmra.mxu0 %v7338_v33  ;;  %v1762_v33 = vsel %vm1732_vm10, %v1760_v30, %v1761_v10  ;;  %v5115_v37 = vcombine.low %v1330_v42, %v1298_v41  ;;  %v1777_v26 = vsel %vm1732_vm10, %v1775_v49, %v1776_v35  ;;  %v3568_v12 = vrot.slane %v3566_v50, 1  ;;  %v3403_v10 = vld [vmem:[#allocation2 + $0x18] sm:$0xe] }
 0x209   : > { %3160 = vmatprep.mubr.bf16.mxu0 %v1631_v51  ;;  %v5244_v38 = vcombine.low %v3403_v10, %v3356_v11  ;;  %v3362_v11 = vld [vmem:[#allocation2 + $0x40] sm:$0xf]  ;;  %v3595_v42 = vshll.u32 %v6255_v14, 16  ;;  %v3363_v10 = vld [vmem:[#allocation2 + $0x48] sm:$0xf] }
 0x20a   : > { %5638 = vmatpush3.bf16.msra.mxu1 %v6250_v39  ;;  %v3571_v39 = vshll.u32 %v6247_v46, 16  ;;  %v1778_v51 = vrot.slane %v5115_v37, 1  ;;  %v3569_v13 = vor.u32 %v3568_v12, %v3564_v24  ;;  %v7441_v20 = vcombine.low %v3361_v58, %v3362_v11  ;;  %v3407_v46 = vld [vmem:[#allocation2 + $0x48] sm:$0xe]  ;;  %v3364_v37 = vld [vmem:[#allocation2 + $0x4c] sm:$0xf] }
 0x20b   : > { %v3819_v7 = vrot.slane %v5244_v38, 1  ;;  %v5248_v24 = vcombine.low %v3407_v46, %v3364_v37 }
 0x20c   : > { %v3573_v32 = vrot.slane %v3571_v39, 1  ;;  %v1780_v9 = vsel %vm1732_vm10, %v1778_v51, %v1779_v27  ;;  %v7450_v39 = vld [vmem:[#allocation2 + $0x50] ss:$0 sps:$4 sm:$0x11]   ;;  %v3597_v27 = vrot.slane %v3595_v42, 1  ;;  %v3600_v22 = vshrl.u32 %v7441_v20, 16 }
 0x20d   : > { %5900 = vmatmul.mubr.bf16.gmra.mxu1 %v1762_v33  ;;  %v3360_v33 = vld [vmem:[#allocation2 + $0x34] sm:$0xf]  ;;  %v3821_v15 = vsel %vm1732_vm10, %v3819_v7, %v3820_v8 }
 0x20e   : > { %5903 = vmatprep.mubr.bf16.mxu1 %v1765_v29  ;;  %v3574_v28 = vsel %vm1475_vm11, %v3569_v13, %v3573_v32  ;;  %v3404_v29 = vld [vmem:[#allocation2 + $0x24] sm:$0xe]  ;;  %v7431_v43 = vcombine.low %v3359_v45, %v3360_v33  ;;  %v3602_v32 = vshll.u32 %v7441_v20, 16 }
 0x210   : > { %3161 = vmatmul.mubr.bf16.gmra.mxu0 %v7356_v36  ;;  %v1659_v36 = vshll.u32 %v7404_v47, 16  ;;  %v3590_v40 = vshll.u32 %v7431_v43, 16 }
 0x211   : > { %3168 = vmatprep.mubr.bf16.mxu0 %v1643_v0 }
 0x212   : > { %v1661_v54 = vrot.slane %v1659_v36, 1  ;;  %v3592_v35 = vrot.slane %v3590_v40, 1 }
 0x214   : > { %v1662_v6 = vor.u32 %v1661_v54, %v1657_v52  ;;  %v3826_v52 = vrot.slane %v6255_v14, 1  ;;  %v3406_v54 = vld [vmem:[#allocation2 + $0x3c] sm:$0xe]  ;;  %v7467_v14 = vld [vmem:[#allocation2 + $0x5c] ss:$0 sps:$4 sm:$0x11]  }
 0x215   : > { %5904 = vmatmul.mubr.bf16.gmra.mxu1 %v1768_v1  ;;  %v5246_v1 = vcombine.low %v3405_v3, %v3360_v33  ;;  %v3831_v33 = vrot.slane %v5248_v24, 1 }
 0x216   : > { %5907 = vmatprep.mubr.bf16.mxu1 %v1771_v59  ;;  %v1667_v57 = vsel %vm1475_vm11, %v1662_v6, %v1666_v44  ;;  %v3823_v59 = vrot.slane %v6252_v2, 1  ;;  %v6259_v44 = vld [vmem:[#allocation2 + $0x44] ss:$0 sps:$4 sm:$0x11]  }
 0x217   : > { %v3825_v50 = vrot.slane %v5246_v1, 1  ;;  %v3829_v38 = vrot.slane %v6259_v44, 1  ;;  %v3607_v7 = vshll.u32 %v6259_v44, 16  ;;  %v3411_v44 = vld [vmem:[#allocation2 + $0x78] sm:$0xe] }
 0x218   : > { %3169 = vmatmul.mubr.bf16.gmra.mxu0 %v7374_v17  ;;  %v3358_v17 = vld [vmem:[#allocation2 + $0x28] sm:$0xf] }
 0x219   : > { %3176 = vmatprep.mubr.bf16.mxu0 %v1655_v23  ;;  %v7421_v18 = vcombine.low %v3357_v19, %v3358_v17  ;;  %v5245_v61 = vcombine.low %v3404_v29, %v3358_v17  ;;  %v3588_v17 = vshrl.u32 %v7431_v43, 16  ;;  %v3408_v29 = vld [vmem:[#allocation2 + $0x54] sm:$0xe]  ;;  %v3609_v58 = vrot.slane %v3607_v7, 1 }
 0x21a   : > { %v7426_v30 = vpop.f32.mrf.mxu0 }
 0x21b   : > { %v3578_v55 = vshll.u32 %v7421_v18, 16  ;;  %v3576_v0 = vshrl.u32 %v7421_v18, 16  ;;  %v3593_v51 = vor.u32 %v3592_v35, %v3588_v17  ;;  %v3410_v35 = vld [vmem:[#allocation2 + $0x6c] sm:$0xe]  ;;  %v3370_v17 = vld [vmem:[#allocation2 + $0x70] sm:$0xf] }
 0x21d   : > { %5908 = vmatmul.mubr.bf16.gmra.mxu1 %v1774_v48  ;;  %v3580_v41 = vrot.slane %v3578_v55, 1  ;;  %v5247_v48 = vcombine.low %v3406_v54, %v3362_v11 }
 0x21e   : > { %5911 = vmatprep.mubr.bf16.mxu1 %v1777_v26  ;;  %v3827_v26 = vsel %vm1732_vm10, %v3825_v50, %v3826_v52 }
 0x21f   : > { %v3581_v5 = vor.u32 %v3580_v41, %v3576_v0  ;;  %v3828_v55 = vrot.slane %v5247_v48, 1  ;;  %v3409_v41 = vld [vmem:[#allocation2 + $0x60] sm:$0xe]  ;;  %v3366_v0 = vld [vmem:[#allocation2 + $0x58] sm:$0xf] }
 0x220   : > { %3177 = vmatmul.mubr.bf16.gmra.mxu0 %v7392_v4  ;;  %v2761_v4 = vpop.f32.mrf.mxu0  ;;  %v5367_v56 = vpop.f32.mrf.mxu1 }
 0x221   : > { %3184 = vmatprep.mubr.bf16.mxu0 %v1667_v57  ;;  %v3586_v25 = vsel %vm1475_vm11, %v3581_v5, %v3585_v63  ;;  %v7470_v63 = vld [vmem:[#allocation2 + $0x68] ss:$0 sps:$4 sm:$0x11]  }
 0x222   : > { %v5368_v21 = vpop.f32.mrf.mxu1  ;;  %v5838_v31 = vpop.f32.mrf.mxu0  ;;  %v3838_v46 = vrot.slane %v7470_v63, 1 }
 0x223   : > { %v5369_v60 = vadd.f32 %v5368_v21, %v5367_v56  ;;  %v3598_v56 = vsel %vm1475_vm11, %v3593_v51, %v3597_v27  ;;  %v7490_v51 = vld [vmem:[#allocation2 + $0x7c] sm:$0xf]  ;;  %v7493_v27 = vld [vmem:[#allocation2 + $0x80] ss:$0 sps:$4 sm:$0x11]  }
 0x224   : > { %v5370_v62 = vpop.f32.mrf.mxu1  ;;  %v2764_v53 = vpop.f32.mrf.mxu0 }
 0x225   : > { %5912 = vmatmul.mubr.bf16.gmra.mxu1 %v1780_v9  ;;  %v7437_v36 = vadd.f32 %v5369_v60, %v2761_v4  ;;  %v7456_v9 = vcombine.low %v3363_v10, %v3364_v37  ;;  %v3832_v4 = vrot.slane %v7450_v39, 1  ;;  %v5249_v60 = vcombine.low %v3408_v29, %v3366_v0 }
 0x226   : > { %4108 = vmatprep.mubr.bf16.mxu1 %v3574_v28  ;;  %v5371_v34 = vpop.f32.mrf.mxu1  ;;  %v3619_v37 = vshll.u32 %v7450_v39, 16  ;;  %v5251_v10 = vcombine.low %v3410_v35, %v3370_v17  ;;  %v5252_v39 = vcombine.low %v3411_v44, %v7490_v51 }
 0x227   : > { %v5372_v23 = vadd.f32 %v5371_v34, %v5370_v62  ;;  %v3833_v5 = vsel %vm1732_vm10, %v3831_v33, %v3832_v4  ;;  %v3834_v52 = vrot.slane %v5249_v60, 1  ;;  %v3612_v42 = vshrl.u32 %v7456_v9, 16 }
 0x228   : > { %3185 = vmatmul.mubr.bf16.gmra.mxu0 %v7404_v47  ;;  %v3822_v47 = vrot.slane %v5245_v61, 1  ;;  %v5373_v49 = vpop.f32.mrf.mxu1  ;;  %v3840_v33 = vrot.slane %v5251_v10, 1  ;;  %v3843_v29 = vrot.slane %v5252_v39, 1  ;;  %v3631_v60 = vshll.u32 %v7467_v14, 16  ;;  %v3414_v10 = vld [vmem:[#allocation2 + $0x9c] sm:$0xe] }
 0x229   : > { %5931 = vmatprep.mubr.bf16.mxu0 %v3821_v15  ;;  %v7443_v19 = vadd.f32 %v5372_v23, %v2764_v53  ;;  %v3830_v15 = vsel %vm1732_vm10, %v3828_v55, %v3829_v38  ;;  %v3835_v53 = vrot.slane %v7467_v14, 1  ;;  %v3621_v38 = vrot.slane %v3619_v37, 1 }
 0x22a   : > { %v3824_v6 = vsel %vm1732_vm10, %v3822_v47, %v3823_v59  ;;  %v3614_v59 = vshll.u32 %v7456_v9, 16 }
 0x22b   : > { %v7448_v12 = vpop.f32.mrf.mxu0 }
 0x22c   : > { %v3616_v48 = vrot.slane %v3614_v59, 1  ;;  %v7522_v59 = vld [vmem:[#allocation2 + $0x98] ss:$0 sps:$4 sm:$0x11]  }
 0x22d   : > { %4109 = vmatmul.mubr.bf16.vlgmr.msra.gmra.mxu1 %v7412_v16  ;;  %v5374_v16 = vpop.f32.mrf.mxu1  ;;  %v2777_v45 = vpop.f32.mrf.mxu0 }
 0x22e   : > { %4116 = vmatprep.mubr.bf16.mxu1 %v3586_v25  ;;  %v5375_v57 = vadd.f32 %v5374_v16, %v5373_v49  ;;  %v3617_v55 = vor.u32 %v3616_v48, %v3612_v42 }
 0x22f   : > { %v5376_v13 = vpop.f32.mrf.mxu1  ;;  %v7465_v61 = vpop.f32.mrf.mxu0 }
 0x230   : > { %5932 = vmatmul.mubr.bf16.vlgmr.msra.gmra.mxu0 %v3824_v6  ;;  %v7454_v2 = vadd.f32 %v7426_v30, %v5375_v57  ;;  %v3604_v30 = vrot.slane %v3602_v32, 1  ;;  %v7488_v57 = vld [vmem:[#allocation2 + $0x74] ss:$0 sps:$4 sm:$0x11]   ;;  %v3622_v7 = vsel %vm1475_vm11, %v3617_v55, %v3621_v38  ;;  %v3643_v38 = vshll.u32 %v7470_v63, 16 }
 0x231   : > { %5935 = vmatprep.mubr.bf16.mxu0 %v3827_v26  ;;  %v5377_v8 = vpop.f32.mrf.mxu1  ;;  %v2780_v47 = vpop.f32.mrf.mxu0  ;;  %v3836_v26 = vsel %vm1732_vm10, %v3834_v52, %v3835_v53  ;;  %v3841_v4 = vrot.slane %v7488_v57, 1  ;;  %v3633_v53 = vrot.slane %v3631_v60, 1 }
 0x232   : > { %v5378_v28 = vadd.f32 %v5377_v8, %v5376_v13  ;;  %v3605_v1 = vor.u32 %v3604_v30, %v3600_v22  ;;  %v3367_v13 = vld [vmem:[#allocation2 + $0x60] sm:$0xf] }
 0x233   : > { %v5379_v21 = vpop.f32.mrf.mxu1 }
 0x234   : > { %v7462_v3 = vadd.f32 %v5838_v31, %v5378_v28  ;;  %v3365_v31 = vld [vmem:[#allocation2 + $0x54] sm:$0xf]  ;;  %v3610_v50 = vsel %vm1475_vm11, %v3605_v1, %v3609_v58 }
 0x235   : > { %4117 = vmatmul.mubr.bf16.gmra.mxu1 %v7421_v18  ;;  %v3368_v18 = vld [vmem:[#allocation2 + $0x64] sm:$0xf]  ;;  %v5380_v40 = vpop.f32.mrf.mxu1  ;;  %v7476_v54 = vcombine.low %v3365_v31, %v3366_v0  ;;  %v3413_v0 = vld [vmem:[#allocation2 + $0x90] sm:$0xe]  ;;  %v7517_v1 = vld [vmem:[#allocation2 + $0x94] sm:$0xf] }
 0x236   : > { %4124 = vmatprep.mubr.bf16.mxu1 %v3598_v56  ;;  %v5250_v62 = vcombine.low %v3409_v41, %v3368_v18  ;;  %v5381_v11 = vadd.f32 %v5380_v40, %v5379_v21  ;;  %v7502_v28 = vcombine.low %v3367_v13, %v3368_v18  ;;  %v3844_v56 = vrot.slane %v7493_v27, 1  ;;  %v3412_v41 = vld [vmem:[#allocation2 + $0x84] sm:$0xe]  ;;  %v7511_v18 = vld [vmem:[#allocation2 + $0x88] sm:$0xf] }
 0x237   : > { %v5382_v34 = vpop.f32.mrf.mxu1  ;;  %v3624_v21 = vshrl.u32 %v7476_v54, 16  ;;  %v7514_v40 = vld [vmem:[#allocation2 + $0x8c] ss:$0 sps:$4 sm:$0x11]   ;;  %v5253_v31 = vcombine.low %v3412_v41, %v7511_v18  ;;  %v5254_v14 = vcombine.low %v3413_v0, %v7517_v1 }
 0x238   : > { %5936 = vmatmul.mubr.bf16.gmra.mxu0 %v3830_v15  ;;  %v7474_v23 = vadd.f32 %v5381_v11, %v2777_v45  ;;  %v3837_v25 = vrot.slane %v5250_v62, 1  ;;  %v3626_v45 = vshll.u32 %v7476_v54, 16  ;;  %v3845_v58 = vsel %vm1732_vm10, %v3843_v29, %v3844_v56  ;;  %v7552_v41 = vld [vmem:[#allocation2 + $0xac] sm:$0xf] }
 0x239   : > { %5939 = vmatprep.mubr.bf16.mxu0 %v3833_v5  ;;  %v5383_v49 = vpop.f32.mrf.mxu1  ;;  %v3842_v5 = vsel %vm1732_vm10, %v3840_v33, %v3841_v4  ;;  %v3846_v42 = vrot.slane %v5253_v31, 1  ;;  %v3849_v37 = vrot.slane %v5254_v14, 1  ;;  %v3636_v13 = vshrl.u32 %v7502_v28, 16  ;;  %v7546_v33 = vld [vmem:[#allocation2 + $0xa0] sm:$0xf] }
 0x23a   : > { %v5384_v6 = vadd.f32 %v5383_v49, %v5382_v34  ;;  %v3628_v15 = vrot.slane %v3626_v45, 1  ;;  %v3369_v34 = vld [vmem:[#allocation2 + $0x6c] sm:$0xf]  ;;  %v5255_v56 = vcombine.low %v3414_v10, %v7546_v33  ;;  %v3655_v10 = vshll.u32 %v7488_v57, 16 }
 0x23c   : > { %v7486_v24 = vadd.f32 %v5384_v6, %v2780_v47  ;;  %v3629_v52 = vor.u32 %v3628_v15, %v3624_v21  ;;  %v7532_v6 = vcombine.low %v3369_v34, %v3370_v17  ;;  %v3371_v21 = vld [vmem:[#allocation2 + $0x78] sm:$0xf]  ;;  %v3852_v14 = vrot.slane %v5255_v56, 1  ;;  %v7593_v56 = vld [vmem:[#allocation2 + $0xc8] ss:$0 sps:$4 sm:$0x11]  }
 0x23d   : > { %4125 = vmatmul.mubr.bf16.gmra.mxu1 %v7431_v43  ;;  %v7483_v16 = vpop.f32.mrf.mxu0  ;;  %v3839_v43 = vsel %vm1732_vm10, %v3837_v25, %v3838_v46  ;;  %v3638_v25 = vshll.u32 %v7502_v28, 16 }
 0x23e   : > { %4132 = vmatprep.mubr.bf16.mxu1 %v3610_v50  ;;  %v3847_v50 = vrot.slane %v7514_v40, 1  ;;  %v3634_v39 = vsel %vm1475_vm11, %v3629_v52, %v3633_v53 }
 0x23f   : > { %v7496_v32 = vpop.f32.mrf.mxu0  ;;  %v3640_v55 = vrot.slane %v3638_v25, 1 }
 0x240   : > { %5940 = vmatmul.mubr.bf16.gmra.mxu0 %v3836_v26  ;;  %v3850_v26 = vrot.slane %v7522_v59, 1  ;;  %v3848_v4 = vsel %vm1732_vm10, %v3846_v42, %v3847_v50  ;;  %v3416_v42 = vld [vmem:[#allocation2 + $0xb4] sm:$0xe] }
 0x241   : > { %5943 = vmatprep.mubr.bf16.mxu0 %v3839_v43  ;;  %v7499_v8 = vpop.f32.mrf.mxu0  ;;  %v3641_v60 = vor.u32 %v3640_v55, %v3636_v13 }
 0x242   : > { %v3851_v63 = vsel %vm1732_vm10, %v3849_v37, %v3850_v26  ;;  %v3648_v37 = vshrl.u32 %v7532_v6, 16 }
 0x243   : > { %v7505_v22 = vpop.f32.mrf.mxu0 }
 0x244   : > { %v5385_v30 = vpop.f32.mrf.mxu1 }
 0x245   : > { %4133 = vmatmul.mubr.bf16.gmra.mxu1 %v7441_v20 }
 0x246   : > { %4140 = vmatprep.mubr.bf16.mxu1 %v3622_v7  ;;  %v5386_v62 = vpop.f32.mrf.mxu1 }
 0x247   : > { %v5387_v11 = vadd.f32 %v5386_v62, %v5385_v30  ;;  %v3650_v62 = vshll.u32 %v7532_v6, 16 }
 0x248   : > { %v7519_v20 = vpop.f32.mrf.mxu0  ;;  %5944 = vmatmul.mubr.bf16.gmra.mxu0 %v3842_v5  ;;  %v5388_v47 = vpop.f32.mrf.mxu1  ;;  %v3645_v5 = vrot.slane %v3643_v38, 1  ;;  %v7588_v38 = vld [vmem:[#allocation2 + $0xc4] sm:$0xf] }
 0x249   : > { %5947 = vmatprep.mubr.bf16.mxu0 %v3845_v58  ;;  %v7529_v49 = vadd.f32 %v7448_v12, %v5387_v11  ;;  %v3415_v12 = vld [vmem:[#allocation2 + $0xa8] sm:$0xe]  ;;  %v3652_v26 = vrot.slane %v3650_v62, 1  ;;  %v7602_v62 = vld [vmem:[#allocation2 + $0xd0] sm:$0xf] }
 0x24a   : > { %v7526_v46 = vpop.f32.mrf.mxu0  ;;  %v5389_v35 = vpop.f32.mrf.mxu1  ;;  %v5256_v0 = vcombine.low %v3415_v12, %v7552_v41 }
 0x24b   : > { %v5390_v48 = vadd.f32 %v5389_v35, %v5388_v47  ;;  %v7568_v47 = vcombine.low %v3371_v21, %v7490_v51  ;;  %v3657_v21 = vrot.slane %v3655_v10, 1  ;;  %v7615_v10 = vld [vmem:[#allocation2 + $0xd4] ss:$0 sps:$4 sm:$0x11]  }
 0x24c   : > { %v7534_v44 = vpop.f32.mrf.mxu0  ;;  %v3855_v25 = vrot.slane %v5256_v0, 1  ;;  %v3653_v0 = vor.u32 %v3652_v26, %v3648_v37 }
 0x24d   : > { %v5391_v43 = vpop.f32.mrf.mxu1  ;;  %4141 = vmatmul.mubr.bf16.gmra.mxu1 %v7456_v9  ;;  %v7544_v45 = vadd.f32 %v7465_v61, %v5390_v48  ;;  %v7549_v9 = vld [vmem:[#allocation2 + $0xa4] ss:$0 sps:$4 sm:$0x11]   ;;  %v7557_v61 = vld [vmem:[#allocation2 + $0xb0] ss:$0 sps:$4 sm:$0x11]  }
 0x24e   : > { %v7541_v17 = vpop.f32.mrf.mxu0  ;;  %4148 = vmatprep.mubr.bf16.mxu1 %v3634_v39  ;;  %v3853_v34 = vrot.slane %v7549_v9, 1  ;;  %v3856_v35 = vrot.slane %v7557_v61, 1  ;;  %v3417_v48 = vld [vmem:[#allocation2 + $0xc0] sm:$0xe]  ;;  %v7582_v39 = vld [vmem:[#allocation2 + $0xb8] sm:$0xf]  ;;  %v3658_v37 = vsel %vm1475_vm11, %v3653_v0, %v3657_v21 }
 0x24f   : > { %v5392_v29 = vpop.f32.mrf.mxu1  ;;  %v5257_v55 = vcombine.low %v3416_v42, %v7582_v39 }
 0x250   : > { %v7554_v30 = vpop.f32.mrf.mxu0  ;;  %5948 = vmatmul.mubr.bf16.gmra.mxu0 %v3848_v4  ;;  %v5393_v7 = vadd.f32 %v5392_v29, %v5391_v43  ;;  %v3854_v12 = vsel %vm1732_vm10, %v3852_v14, %v3853_v34  ;;  %v3373_v4 = vld [vmem:[#allocation2 + $0x84] sm:$0xf]  ;;  %v3857_v57 = vsel %vm1732_vm10, %v3855_v25, %v3856_v35 }
 0x251   : > { %5951 = vmatprep.mubr.bf16.mxu0 %v3851_v63  ;;  %v5394_v15 = vpop.f32.mrf.mxu1  ;;  %v5258_v63 = vcombine.low %v3417_v48, %v7588_v38  ;;  %v7605_v14 = vcombine.low %v3373_v4, %v7511_v18  ;;  %v3660_v48 = vshrl.u32 %v7568_v47, 16  ;;  %v3667_v18 = vshll.u32 %v7493_v27, 16 }
 0x252   : > { %v7561_v31 = vpop.f32.mrf.mxu0  ;;  %v7564_v58 = vadd.f32 %v5393_v7, %v7496_v32  ;;  %v3646_v32 = vsel %vm1475_vm11, %v3641_v60, %v3645_v5 }
 0x253   : > { %v5395_v11 = vpop.f32.mrf.mxu1  ;;  %v3674_v27 = vshll.u32 %v7605_v14, 16 }
 0x254   : > { %v7570_v52 = vpop.f32.mrf.mxu0  ;;  %v5396_v53 = vadd.f32 %v5395_v11, %v5394_v15  ;;  %v3662_v15 = vshll.u32 %v7568_v47, 16  ;;  %v3418_v11 = vld [vmem:[#allocation2 + $0xcc] sm:$0xe] }
 0x255   : > { %v5397_v50 = vpop.f32.mrf.mxu1  ;;  %4149 = vmatmul.mubr.bf16.gmra.mxu1 %v7476_v54  ;;  %v7585_v54 = vld [vmem:[#allocation2 + $0xbc] ss:$0 sps:$4 sm:$0x11]  }
 0x256   : > { %v7577_v51 = vpop.f32.mrf.mxu0  ;;  %v7580_v43 = vadd.f32 %v5396_v53, %v7505_v22  ;;  %4156 = vmatprep.mubr.bf16.mxu1 %v3646_v32  ;;  %v3858_v53 = vrot.slane %v5257_v55, 1  ;;  %v3859_v25 = vrot.slane %v7585_v54, 1  ;;  %v3862_v32 = vrot.slane %v7593_v56, 1 }
 0x257   : > { %v5398_v13 = vpop.f32.mrf.mxu1  ;;  %v3664_v26 = vrot.slane %v3662_v15, 1  ;;  %v3669_v15 = vrot.slane %v3667_v18, 1  ;;  %v3679_v18 = vshll.u32 %v7514_v40, 16 }
 0x258   : > { %v7590_v29 = vpop.f32.mrf.mxu0  ;;  %5952 = vmatmul.mubr.bf16.gmra.mxu0 %v3854_v12  ;;  %v5399_v22 = vadd.f32 %v5398_v13, %v5397_v50  ;;  %v3861_v50 = vrot.slane %v5258_v63, 1  ;;  %v5259_v12 = vcombine.low %v3418_v11, %v7602_v62  ;;  %v3860_v4 = vsel %vm1732_vm10, %v3858_v53, %v3859_v25 }
 0x259   : > { %5955 = vmatprep.mubr.bf16.mxu0 %v3857_v57  ;;  %v5400_v7 = vpop.f32.mrf.mxu1  ;;  %v3665_v21 = vor.u32 %v3664_v26, %v3660_v48  ;;  %v3676_v26 = vrot.slane %v3674_v27, 1 }
 0x25a   : > { %v7597_v60 = vpop.f32.mrf.mxu0  ;;  %v7600_v5 = vadd.f32 %v7483_v16, %v5399_v22  ;;  %v3864_v11 = vrot.slane %v5259_v12, 1 }
 0x25b   : > { %v5401_v34 = vpop.f32.mrf.mxu1  ;;  %v3670_v48 = vsel %vm1475_vm11, %v3665_v21, %v3669_v15 }
 0x25c   : > { %v7608_v35 = vpop.f32.mrf.mxu0  ;;  %v5402_v42 = vadd.f32 %v5401_v34, %v5400_v7  ;;  %v3375_v7 = vld [vmem:[#allocation2 + $0x90] sm:$0xf] }
 0x25d   : > { %v5403_v16 = vpop.f32.mrf.mxu1  ;;  %4157 = vmatmul.mubr.bf16.gmra.mxu1 %v7502_v28  ;;  %v3863_v28 = vsel %vm1732_vm10, %v3861_v50, %v3862_v32 }
 0x25e   : > { %v7618_v13 = vpop.f32.mrf.mxu0  ;;  %v7621_v55 = vadd.f32 %v7499_v8, %v5402_v42  ;;  %4164 = vmatprep.mubr.bf16.mxu1 %v3658_v37  ;;  %v3865_v8 = vrot.slane %v7615_v10, 1  ;;  %v7635_v42 = vcombine.low %v3375_v7, %v7517_v1 }
 0x25f   : > { %v5404_v57 = vpop.f32.mrf.mxu1 }
 0x260   : > { %v7624_v22 = vpop.f32.mrf.mxu0  ;;  %5956 = vmatmul.mubr.bf16.gmra.mxu0 %v3860_v4  ;;  %v5405_v63 = vadd.f32 %v5404_v57, %v5403_v16  ;;  %v3672_v16 = vshrl.u32 %v7605_v14, 16  ;;  %v3686_v27 = vshll.u32 %v7635_v42, 16 }
 0x261   : > { %5959 = vmatprep.mubr.bf16.mxu0 %v3863_v28  ;;  %v5406_v0 = vpop.f32.mrf.mxu1 }
 0x262   : > { %v7629_v34 = vpop.f32.mrf.mxu0  ;;  %v7632_v53 = vadd.f32 %v5405_v63, %v7526_v46  ;;  %v3866_v46 = vsel %vm1732_vm10, %v3864_v11, %v3865_v8  ;;  %v3377_v63 = vld [vmem:[#allocation2 + $0x9c] sm:$0xf]  ;;  %v3677_v7 = vor.u32 %v3676_v26, %v3672_v16  ;;  %v3684_v16 = vshrl.u32 %v7635_v42, 16 }
 0x263   : > { %v5407_v25 = vpop.f32.mrf.mxu1 }
 0x264   : > { %v7637_v50 = vpop.f32.mrf.mxu0  ;;  %v5408_v32 = vadd.f32 %v5407_v25, %v5406_v0  ;;  %v3681_v0 = vrot.slane %v3679_v18, 1  ;;  %v6297_v18 = vld [vmem:[%s8182_s5 + $0x38] sm:$0xff]  }
 0x265   : > { %v5409_v37 = vpop.f32.mrf.mxu1  ;;  %4165 = vmatmul.mubr.bf16.gmra.mxu1 %v7532_v6  ;;  %5963 = vmatprep.subr.bf16.mxu0 %v6297_v18 }
 0x266   : > { %v7644_v12 = vpop.f32.mrf.mxu0  ;;  %v7647_v1 = vadd.f32 %v5408_v32, %v7541_v17  ;;  %4172 = vmatprep.mubr.bf16.mxu1 %v3670_v48  ;;  %v7658_v17 = vcombine.low %v3377_v63, %v7546_v33  ;;  %v3682_v32 = vsel %vm1475_vm11, %v3677_v7, %v3681_v0  ;;  %v3691_v48 = vshll.u32 %v7522_v59, 16  ;;  %5964 = vmatpush3.bf16.msra.mxu0 %v6297_v18 }
 0x267   : > { %v5410_v4 = vpop.f32.mrf.mxu1 }
 0x268   : > { %v7649_v57 = vpop.f32.mrf.mxu0  ;;  %v5411_v28 = vadd.f32 %v5410_v4, %v5409_v37  ;;  %5960 = vmatmul.mubr.bf16.gmra.mxu0 %v3866_v46  ;;  %v3688_v37 = vrot.slane %v3686_v27, 1  ;;  %v3379_v4 = vld [vmem:[#allocation2 + $0xa8] sm:$0xf]  ;;  %v3698_v7 = vshll.u32 %v7658_v17, 16 }
 0x269   : > { %v5412_v6 = vpop.f32.mrf.mxu1 }
 0x26a   : > { %v7652_v40 = vpop.f32.mrf.mxu0  ;;  %v7655_v21 = vadd.f32 %v7519_v20, %v5411_v28  ;;  %v3689_v63 = vor.u32 %v3688_v37, %v3684_v16  ;;  %v3696_v16 = vshrl.u32 %v7658_v17, 16 }
 0x26b   : > { %v5413_v15 = vpop.f32.mrf.mxu1 }
 0x26c   : > { %v7660_v11 = vpop.f32.mrf.mxu0  ;;  %v5414_v8 = vadd.f32 %v5413_v15, %v5412_v6  ;;  %v3693_v6 = vrot.slane %v3691_v48, 1  ;;  %v6298_v15 = vld [vmem:[%s8182_s5 + $0x30] sm:$0xff]   ;;  %v3700_v48 = vrot.slane %v3698_v7, 1 }
 0x26d   : > { %v5415_v25 = vpop.f32.mrf.mxu1  ;;  %4173 = vmatmul.mubr.bf16.gmra.mxu1 %v7568_v47  ;;  %5965 = vmatprep.subr.bf16.mxu0 %v6298_v15 }
 0x26e   : > { %v7666_v26 = vpop.f32.mrf.mxu0  ;;  %v7669_v20 = vadd.f32 %v7534_v44, %v5414_v8  ;;  %4180 = vmatprep.mubr.bf16.mxu1 %v3682_v32  ;;  %v7682_v8 = vcombine.low %v3379_v4, %v7552_v41  ;;  %v6299_v41 = vld [vmem:[%s8182_s5 + $0x28] sm:$0xff]   ;;  %5966 = vmatpush3.bf16.msra.mxu0 %v6298_v15  ;;  %v3701_v7 = vor.u32 %v3700_v48, %v3696_v16 }
 0x26f   : > { %v5416_v33 = vpop.f32.mrf.mxu1  ;;  %5967 = vmatprep.subr.bf16.mxu0 %v6299_v41 }
 0x270   : > { %v5503_v46 = vpop.f32.mrf.mxu0  ;;  %v5417_v47 = vadd.f32 %v5416_v33, %v5415_v25  ;;  %v3703_v33 = vshll.u32 %v7549_v9, 16 }
 0x271   : > { %v5418_v28 = vpop.f32.mrf.mxu1 }
 0x272   : > { %v5504_v59 = vpop.f32.mrf.mxu0  ;;  %v7676_v0 = vadd.f32 %v5417_v47, %v7561_v31  ;;  %v3694_v31 = vsel %vm1475_vm11, %v3689_v63, %v3693_v6  ;;  %v3381_v63 = vld [vmem:[#allocation2 + $0xb4] sm:$0xf]  ;;  %v3705_v9 = vrot.slane %v3703_v33, 1  ;;  %5968 = vmatpush3.bf16.msra.mxu0 %v6299_v41 }
 0x273   : > { %v5505_v44 = vadd.f32 %v5504_v59, %v5503_v46  ;;  %v5419_v27 = vpop.f32.mrf.mxu1  ;;  %v7707_v16 = vcombine.low %v3381_v63, %v7582_v39 }
 0x274   : > { %v5506_v25 = vpop.f32.mrf.mxu0  ;;  %v7684_v32 = vadd.f32 %v5419_v27, %v5418_v28 }
 0x275   : > { %v5421_v37 = vpop.f32.mrf.mxu1  ;;  %4181 = vmatmul.mubr.bf16.gmra.mxu1 %v7605_v14  ;;  %v7691_v18 = vadd.f32 %v5505_v44, %v7437_v36  ;;  %v3710_v36 = vshll.u32 %v7682_v8, 16  ;;  %v6300_v44 = vld [vmem:[%s8182_s5 + $0x20] sm:$0xff]  }
 0x276   : > { %v5507_v46 = vpop.f32.mrf.mxu0  ;;  %4188 = vmatprep.mubr.bf16.mxu1 %v3694_v31  ;;  %5969 = vmatprep.subr.bf16.mxu0 %v6300_v44 }
 0x277   : > { %v5508_v47 = vadd.f32 %v5507_v46, %v5506_v25  ;;  %v5422_v4 = vpop.f32.mrf.mxu1  ;;  %v3706_v46 = vsel %vm1475_vm11, %v3701_v7, %v3705_v9  ;;  %5970 = vmatpush3.bf16.msra.mxu0 %v6300_v44  ;;  %v3383_v7 = vld [vmem:[#allocation2 + $0xc0] sm:$0xf] }
 0x278   : > { %v5509_v14 = vpop.f32.mrf.mxu0  ;;  %v5423_v28 = vadd.f32 %v5422_v4, %v5421_v37 }
 0x279   : > { %v5424_v6 = vpop.f32.mrf.mxu1  ;;  %v7698_v59 = vadd.f32 %v5508_v47, %v7443_v19  ;;  %v3708_v19 = vshrl.u32 %v7682_v8, 16  ;;  %v3712_v47 = vrot.slane %v3710_v36, 1 }
 0x27a   : > { %v5510_v27 = vpop.f32.mrf.mxu0  ;;  %v7704_v15 = vadd.f32 %v7554_v30, %v5423_v28  ;;  %v3715_v30 = vshll.u32 %v7557_v61, 16 }
 0x27b   : > { %v5511_v25 = vadd.f32 %v5510_v27, %v5509_v14  ;;  %v5425_v37 = vpop.f32.mrf.mxu1  ;;  %v3713_v61 = vor.u32 %v3712_v47, %v3708_v19  ;;  %v3720_v19 = vshrl.u32 %v7707_v16, 16 }
 0x27c   : > { %v5512_v31 = vpop.f32.mrf.mxu0  ;;  %v5426_v48 = vadd.f32 %v5425_v37, %v5424_v6  ;;  %v3717_v36 = vrot.slane %v3715_v30, 1 }
 0x27d   : > { %v5427_v33 = vpop.f32.mrf.mxu1  ;;  %4189 = vmatmul.mubr.bf16.gmra.mxu1 %v7635_v42  ;;  %v7714_v41 = vadd.f32 %v5511_v25, %v7454_v2  ;;  %v6301_v42 = vld [vmem:[%s8182_s5 + $0x18] sm:$0xff]   ;;  %v3722_v2 = vshll.u32 %v7707_v16, 16 }
 0x27e   : > { %v5513_v4 = vpop.f32.mrf.mxu0  ;;  %v7717_v14 = vadd.f32 %v7570_v52, %v5426_v48  ;;  %4196 = vmatprep.mubr.bf16.mxu1 %v3706_v46  ;;  %5971 = vmatprep.subr.bf16.mxu0 %v6301_v42 }
 0x27f   : > { %v5514_v39 = vadd.f32 %v5513_v4, %v5512_v31  ;;  %v5428_v28 = vpop.f32.mrf.mxu1  ;;  %5972 = vmatpush3.bf16.msra.mxu0 %v6301_v42  ;;  %v7730_v31 = vcombine.low %v3383_v7, %v7588_v38  ;;  %v3724_v47 = vrot.slane %v3722_v2, 1  ;;  %v6302_v38 = vld [vmem:[%s8182_s5 + $0x10] sm:$0xff]   ;;  %v3385_v42 = vld [vmem:[#allocation2 + $0xcc] sm:$0xf] }
 0x280   : > { %v5515_v63 = vpop.f32.mrf.mxu0  ;;  %v5429_v6 = vadd.f32 %v5428_v28, %v5427_v33  ;;  %5973 = vmatprep.subr.bf16.mxu0 %v6302_v38 }
 0x281   : > { %v5430_v9 = vpop.f32.mrf.mxu1  ;;  %v7724_v27 = vadd.f32 %v5514_v39, %v7462_v3  ;;  %v3718_v3 = vsel %vm1475_vm11, %v3713_v61, %v3717_v36  ;;  %v6303_v39 = vld [vmem:[%s8182_s5 + $0x8] sm:$0xff]   ;;  %v3725_v7 = vor.u32 %v3724_v47, %v3720_v19 }
 0x282   : > { %v5516_v52 = vpop.f32.mrf.mxu0  ;;  %v7727_v44 = vadd.f32 %v5429_v6, %v7597_v60  ;;  %v3727_v60 = vshll.u32 %v7585_v54, 16 }
 0x283   : > { %v5517_v25 = vadd.f32 %v5516_v52, %v5515_v63  ;;  %v5431_v37 = vpop.f32.mrf.mxu1  ;;  %5974 = vmatpush3.bf16.msra.mxu0 %v6302_v38  ;;  %v6304_v52 = vld [vmem:[%s8182_s5] sm:$0xff]  }
 0x284   : > { %v5518_v48 = vpop.f32.mrf.mxu0  ;;  %v7732_v33 = vadd.f32 %v5431_v37, %v5430_v9  ;;  %v3734_v9 = vshll.u32 %v7730_v31, 16  ;;  %5975 = vmatprep.subr.bf16.mxu0 %v6303_v39 }
 0x285   : > { %v5433_v46 = vpop.f32.mrf.mxu1  ;;  %4197 = vmatmul.mubr.bf16.gmra.mxu1 %v7658_v17  ;;  %v7739_v30 = vadd.f32 %v5517_v25, %v7474_v23  ;;  %v3729_v23 = vrot.slane %v3727_v60, 1  ;;  %v3739_v60 = vshll.u32 %v7593_v56, 16 }
 0x286   : > { %v5519_v4 = vpop.f32.mrf.mxu0  ;;  %4204 = vmatprep.mubr.bf16.mxu1 %v3718_v3  ;;  %v3736_v47 = vrot.slane %v3734_v9, 1 }
 0x287   : > { %v5520_v28 = vadd.f32 %v5519_v4, %v5518_v48  ;;  %v5434_v17 = vpop.f32.mrf.mxu1  ;;  %v7758_v48 = vcombine.low %v3385_v42, %v7602_v62  ;;  %5976 = vmatpush3.bf16.msra.mxu0 %v6303_v39 }
 0x288   : > { %v5521_v63 = vpop.f32.mrf.mxu0  ;;  %v5435_v6 = vadd.f32 %v5434_v17, %v5433_v46  ;;  %5977 = vmatprep.subr.bf16.mxu0 %v6304_v52 }
 0x289   : > { %v5436_v54 = vpop.f32.mrf.mxu1  ;;  %v7749_v61 = vadd.f32 %v5520_v28, %v7486_v24  ;;  %v3732_v24 = vshrl.u32 %v7730_v31, 16  ;;  %v3744_v9 = vshrl.u32 %v7758_v48, 16 }
 0x28a   : > { %v5522_v36 = vpop.f32.mrf.mxu0  ;;  %v7752_v2 = vadd.f32 %v7590_v29, %v5435_v6  ;;  %v3730_v29 = vsel %vm1475_vm11, %v3725_v7, %v3729_v23  ;;  %v3741_v7 = vrot.slane %v3739_v60, 1 }
 0x28b   : > { %v5523_v25 = vadd.f32 %v5522_v36, %v5521_v63  ;;  %v5437_v37 = vpop.f32.mrf.mxu1  ;;  %v3746_v63 = vshll.u32 %v7758_v48, 16  ;;  %5978 = vmatpush3.bf16.msra.mxu0 %v6304_v52 }
 0x28c   : > { %v5524_v19 = vpop.f32.mrf.mxu0  ;;  %v5438_v46 = vadd.f32 %v5437_v37, %v5436_v54  ;;  %v3737_v54 = vor.u32 %v3736_v47, %v3732_v24 }
 0x28d   : > { %v5439_v3 = vpop.f32.mrf.mxu1  ;;  %4205 = vmatmul.mubr.bf16.gmra.mxu1 %v7682_v8  ;;  %v7765_v4 = vadd.f32 %v5523_v25, %v7529_v49  ;;  %v3748_v36 = vrot.slane %v3746_v63, 1  ;;  %v3751_v25 = vshll.u32 %v7615_v10, 16 }
 0x28e   : > { %v5525_v38 = vpop.f32.mrf.mxu0  ;;  %v7768_v62 = vadd.f32 %v7608_v35, %v5438_v46  ;;  %4212 = vmatprep.mubr.bf16.mxu1 %v3730_v29 }
 0x28f   : > { %v5526_v28 = vadd.f32 %v5525_v38, %v5524_v19  ;;  %v5440_v17 = vpop.f32.mrf.mxu1  ;;  %v3749_v29 = vor.u32 %v3748_v36, %v3744_v9  ;;  %v3753_v47 = vrot.slane %v3751_v25, 1 }
 0x290   : > { %v5527_v8 = vpop.f32.mrf.mxu0  ;;  %v5441_v6 = vadd.f32 %v5440_v17, %v5439_v3 }
 0x291   : > { %v5442_v42 = vpop.f32.mrf.mxu1  ;;  %v7772_v56 = vadd.f32 %v5526_v28, %v7544_v45  ;;  %v3742_v45 = vsel %vm1475_vm11, %v3737_v54, %v3741_v7 }
 0x292   : > { %v5528_v49 = vpop.f32.mrf.mxu0  ;;  %v7775_v39 = vadd.f32 %v5441_v6, %v7629_v34 }
 0x293   : > { %v5529_v35 = vadd.f32 %v5528_v49, %v5527_v8  ;;  %v5443_v23 = vpop.f32.mrf.mxu1 }
 0x294   : > { %v5530_v37 = vpop.f32.mrf.mxu0  ;;  %v7779_v19 = vadd.f32 %v5443_v23, %v5442_v42 }
 0x295   : > { %v5445_v46 = vpop.f32.mrf.mxu1  ;;  %4213 = vmatmul.mubr.bf16.gmra.mxu1 %v7707_v16  ;;  %v7784_v52 = vadd.f32 %v5529_v35, %v7564_v58  ;;  %v3754_v58 = vsel %vm1475_vm11, %v3749_v29, %v3753_v47 }
 0x296   : > { %v5531_v34 = vpop.f32.mrf.mxu0  ;;  %4220 = vmatprep.mubr.bf16.mxu1 %v3742_v45 }
 0x297   : > { %v5532_v24 = vadd.f32 %v5531_v34, %v5530_v37  ;;  %v5446_v3 = vpop.f32.mrf.mxu1 }
 0x298   : > { %v5533_v60 = vpop.f32.mrf.mxu0  ;;  %v5447_v38 = vadd.f32 %v5446_v3, %v5445_v46 }
 0x299   : > { %v5448_v10 = vpop.f32.mrf.mxu1  ;;  %v7787_v28 = vadd.f32 %v5532_v24, %v7580_v43 }
 0x29a   : > { %v5534_v17 = vpop.f32.mrf.mxu0  ;;  %v7790_v16 = vadd.f32 %v7624_v22, %v5447_v38 }
 0x29b   : > { %v5535_v63 = vadd.f32 %v5534_v17, %v5533_v60  ;;  %v5449_v8 = vpop.f32.mrf.mxu1 }
 0x29c   : > { %v5536_v6 = vpop.f32.mrf.mxu0  ;;  %v5450_v42 = vadd.f32 %v5449_v8, %v5448_v10 }
 0x29d   : > { %v5451_v54 = vpop.f32.mrf.mxu1  ;;  %4221 = vmatmul.mubr.bf16.gmra.mxu1 %v7730_v31  ;;  %v7795_v7 = vadd.f32 %v5535_v63, %v7600_v5 }
 0x29e   : > { %v5537_v49 = vpop.f32.mrf.mxu0  ;;  %v7798_v43 = vadd.f32 %v7637_v50, %v5450_v42  ;;  %4228 = vmatprep.mubr.bf16.mxu1 %v3754_v58 }
 0x29f   : > { %v5538_v35 = vadd.f32 %v5537_v49, %v5536_v6  ;;  %v5452_v22 = vpop.f32.mrf.mxu1 }
 0x2a0   : > { %v5539_v23 = vpop.f32.mrf.mxu0  ;;  %v5453_v9 = vadd.f32 %v5452_v22, %v5451_v54 }
 0x2a1   : > { %v5454_v36 = vpop.f32.mrf.mxu1  ;;  %v7801_v25 = vadd.f32 %v5538_v35, %v7621_v55 }
 0x2a2   : > { %v5540_v37 = vpop.f32.mrf.mxu0  ;;  %v7804_v46 = vadd.f32 %v5453_v9, %v7652_v40 }
 0x2a3   : > { %v5541_v31 = vadd.f32 %v5540_v37, %v5539_v23  ;;  %v5455_v5 = vpop.f32.mrf.mxu1 }
 0x2a4   : > { %v5542_v45 = vpop.f32.mrf.mxu0  ;;  %v7806_v34 = vadd.f32 %v5455_v5, %v5454_v36 }
 0x2a5   : > { %v5457_v50 = vpop.f32.mrf.mxu1  ;;  %4229 = vmatmul.mubr.bf16.gmra.mxu1 %v7758_v48  ;;  %v7810_v24 = vadd.f32 %v5541_v31, %v7632_v53 }
 0x2a6   : > { %v5543_v3 = vpop.f32.mrf.mxu0 }
 0x2a7   : > { %v5544_v29 = vadd.f32 %v5543_v3, %v5542_v45  ;;  %v5458_v47 = vpop.f32.mrf.mxu1 }
 0x2a8   : > { %v5545_v55 = vpop.f32.mrf.mxu0  ;;  %v5459_v60 = vadd.f32 %v5458_v47, %v5457_v50 }
 0x2a9   : > { %v5460_v38 = vpop.f32.mrf.mxu1  ;;  %v7813_v40 = vadd.f32 %v5544_v29, %v7647_v1 }
 0x2aa   : > { %v5546_v10 = vpop.f32.mrf.mxu0  ;;  %v7816_v17 = vadd.f32 %v7649_v57, %v5459_v60 }
 0x2ab   : > { %v5547_v63 = vadd.f32 %v5546_v10, %v5545_v55  ;;  %v5461_v8 = vpop.f32.mrf.mxu1 }
 0x2ac   : > { %v5548_v58 = vpop.f32.mrf.mxu0  ;;  %v5462_v48 = vadd.f32 %v5461_v8, %v5460_v38 }
 0x2ad   : > { %v5885_v6 = vpop.f32.mrf.mxu1  ;;  %v3123_v53 = vadd.f32 %v5547_v63, %v7655_v21 }
 0x2ae   : > { %v5549_v42 = vpop.f32.mrf.mxu0  ;;  %v7820_v54 = vadd.f32 %v7660_v11, %v5462_v48  ;;  %v7823_v49 = vadd.f32 %v5885_v6, %v7714_v41 }
 0x2af   : > { %v5550_v1 = vadd.f32 %v5549_v42, %v5548_v58  ;;  %v3227_v35 = vpop.f32.mrf.mxu1 }
 0x2b0   : > { %v5551_v22 = vpop.f32.mrf.mxu0  ;;  %v7826_v57 = vadd.f32 %v3227_v35, %v7691_v18 }
 0x2b1   : > { %v5886_v23 = vpop.f32.mrf.mxu1  ;;  %v3126_v9 = vadd.f32 %v5550_v1, %v7669_v20  ;;  %v2829_v20 = vadd.f32 %v7684_v32, %v7577_v51 }
 0x2b2   : > { %v5552_v36 = vpop.f32.mrf.mxu0  ;;  %v7830_v37 = vadd.f32 %v5886_v23, %v7724_v27 }
 0x2b3   : > { %v5553_v21 = vadd.f32 %v5552_v36, %v5551_v22  ;;  %v3230_v31 = vpop.f32.mrf.mxu1 }
 0x2b4   : > { %v5554_v11 = vpop.f32.mrf.mxu0  ;;  %v7833_v5 = vadd.f32 %v3230_v31, %v7698_v59 }
 0x2b5   : > { %v5889_v41 = vpop.f32.mrf.mxu1  ;;  %v3131_v45 = vadd.f32 %v5553_v21, %v7676_v0 }
 0x2b6   : > { %v5555_v50 = vpop.f32.mrf.mxu0  ;;  %v7837_v18 = vadd.f32 %v5889_v41, %v7765_v4 }
 0x2b7   : > { %v5556_v3 = vadd.f32 %v5555_v50, %v5554_v11  ;;  %v3243_v29 = vpop.f32.mrf.mxu1 }
 0x2b8   : > { %v5557_v27 = vpop.f32.mrf.mxu0  ;;  %v7842_v47 = vadd.f32 %v3243_v29, %v7739_v30 }
 0x2b9   : > { %v5890_v55 = vpop.f32.mrf.mxu1  ;;  %v3134_v60 = vadd.f32 %v5556_v3, %v2829_v20 }
 0x2ba   : > { %v5558_v59 = vpop.f32.mrf.mxu0  ;;  %v7845_v38 = vadd.f32 %v5890_v55, %v7772_v56 }
 0x2bb   : > { %v5559_v0 = vadd.f32 %v5558_v59, %v5557_v27  ;;  %v3246_v10 = vpop.f32.mrf.mxu1 }
 0x2bc   : > { %v5560_v63 = vpop.f32.mrf.mxu0  ;;  %v7848_v4 = vadd.f32 %v3246_v10, %v7749_v61 }
 0x2bd   : > { %v5893_v8 = vpop.f32.mrf.mxu1  ;;  %v3139_v51 = vadd.f32 %v5559_v0, %v7704_v15 }
 0x2be   : > { %v5561_v32 = vpop.f32.mrf.mxu0  ;;  %v7852_v58 = vadd.f32 %v5893_v8, %v7795_v7 }
 0x2bf   : > { %v5562_v30 = vadd.f32 %v5561_v32, %v5560_v63  ;;  %v3259_v48 = vpop.f32.mrf.mxu1 }
 0x2c0   : > { %v5563_v6 = vpop.f32.mrf.mxu0  ;;  %v7855_v42 = vadd.f32 %v3259_v48, %v7784_v52  ;;  %v2845_v52 = vadd.f32 %v7732_v33, %v7618_v13 }
 0x2c1   : > { %v5894_v56 = vpop.f32.mrf.mxu1  ;;  %v3142_v1 = vadd.f32 %v5562_v30, %v7717_v14 }
 0x2c2   : > { %v5564_v35 = vpop.f32.mrf.mxu0  ;;  %v7859_v61 = vadd.f32 %v5894_v56, %v7801_v25 }
 0x2c3   : > { %v5565_v22 = vadd.f32 %v5564_v35, %v5563_v6  ;;  %v3262_v23 = vpop.f32.mrf.mxu1 }
 0x2c4   : > { %v5566_v15 = vpop.f32.mrf.mxu0  ;;  %v7862_v36 = vadd.f32 %v3262_v23, %v7787_v28 }
 0x2c5   : > { %v5897_v7 = vpop.f32.mrf.mxu1  ;;  %v3147_v21 = vadd.f32 %v5565_v22, %v7727_v44 }
 0x2c6   : > { %v5567_v31 = vpop.f32.mrf.mxu0  ;;  %v7865_v11 = vadd.f32 %v5897_v7, %v3123_v53 }
 0x2c7   : > { %v5568_v14 = vadd.f32 %v5567_v31, %v5566_v15  ;;  %v3275_v41 = vpop.f32.mrf.mxu1 }
 0x2c8   : > { %v5569_v50 = vpop.f32.mrf.mxu0  ;;  %v7870_v25 = vadd.f32 %v3275_v41, %v7810_v24 }
 0x2c9   : > { %v5898_v20 = vpop.f32.mrf.mxu1  ;;  %v3150_v3 = vadd.f32 %v5568_v14, %v2845_v52 }
 0x2ca   : > { %v5570_v29 = vpop.f32.mrf.mxu0  ;;  %v7872_v28 = vadd.f32 %v5898_v20, %v3126_v9 }
 0x2cb   : > { %v5571_v27 = vadd.f32 %v5570_v29, %v5569_v50  ;;  %v3278_v55 = vpop.f32.mrf.mxu1 }
 0x2cc   : > { %v5572_v44 = vpop.f32.mrf.mxu0  ;;  %v7875_v53 = vadd.f32 %v3278_v55, %v7813_v40 }
 0x2cd   : > { %v5901_v59 = vpop.f32.mrf.mxu1  ;;  %v3155_v13 = vadd.f32 %v5571_v27, %v7752_v2 }
 0x2ce   : > { %v5573_v33 = vpop.f32.mrf.mxu0  ;;  %v7878_v0 = vadd.f32 %v5901_v59, %v3139_v51 }
 0x2cf   : > { %v5574_v10 = vadd.f32 %v5573_v33, %v5572_v44  ;;  %v3291_v24 = vpop.f32.mrf.mxu1 }
 0x2d0   : > { %v5575_v63 = vpop.f32.mrf.mxu0  ;;  %v7880_v8 = vadd.f32 %v3291_v24, %v3131_v45  ;;  %v2861_v45 = vadd.f32 %v7779_v19, %v7644_v12 }
 0x2d1   : > { %v5902_v32 = vpop.f32.mrf.mxu1  ;;  %v3158_v9 = vadd.f32 %v5574_v10, %v7768_v62 }
 0x2d2   : > { %v5576_v30 = vpop.f32.mrf.mxu0  ;;  %v7883_v48 = vadd.f32 %v5902_v32, %v3142_v1 }
 0x2d3   : > { %v5577_v6 = vadd.f32 %v5576_v30, %v5575_v63  ;;  %v3294_v40 = vpop.f32.mrf.mxu1 }
 0x2d4   : > { %v5578_v56 = vpop.f32.mrf.mxu0  ;;  %v7885_v35 = vadd.f32 %v3294_v40, %v3134_v60  ;;  %v2877_v40 = vadd.f32 %v7806_v34, %v7666_v26 }
 0x2d5   : > { %v5905_v2 = vpop.f32.mrf.mxu1  ;;  %v3163_v51 = vadd.f32 %v5577_v6, %v7775_v39 }
 0x2d6   : > { %v5579_v22 = vpop.f32.mrf.mxu0  ;;  %v7888_v23 = vadd.f32 %v5905_v2, %v3155_v13 }
 0x2d7   : > { %v5580_v15 = vadd.f32 %v5579_v22, %v5578_v56  ;;  %v3307_v7 = vpop.f32.mrf.mxu1 }
 0x2d8   : > { %v5581_v62 = vpop.f32.mrf.mxu0  ;;  %v7892_v31 = vadd.f32 %v3307_v7, %v3147_v21 }
 0x2d9   : > { %v5906_v1 = vpop.f32.mrf.mxu1  ;;  %v3166_v52 = vadd.f32 %v5580_v15, %v2861_v45 }
 0x2da   : > { %v5582_v14 = vpop.f32.mrf.mxu0  ;;  %v7894_v41 = vadd.f32 %v5906_v1, %v3158_v9 }
 0x2db   : > { %v5583_v60 = vadd.f32 %v5582_v14, %v5581_v62  ;;  %v3310_v50 = vpop.f32.mrf.mxu1 }
 0x2dc   : > { %v5584_v20 = vpop.f32.mrf.mxu0  ;;  %v7896_v39 = vadd.f32 %v3310_v50, %v3150_v3 }
 0x2dd   : > { %v3171_v29 = vadd.f32 %v5583_v60, %v7790_v16  ;;  %v5909_v27 = vpop.f32.mrf.mxu1 }
 0x2de   : > { %v5585_v55 = vpop.f32.mrf.mxu0 }
 0x2df   : > { %v5586_v12 = vadd.f32 %v5585_v55, %v5584_v20  ;;  %v7899_v19 = vadd.f32 %v5909_v27, %v3171_v29  ;;  %v3323_v44 = vpop.f32.mrf.mxu1 }
 0x2e0   : > { %v5587_v21 = vpop.f32.mrf.mxu0  ;;  %v7901_v59 = vadd.f32 %v3323_v44, %v3163_v51 }
 0x2e1   : > { %v3174_v13 = vadd.f32 %v5586_v12, %v7798_v43  ;;  %v5910_v33 = vpop.f32.mrf.mxu1 }
 0x2e2   : > { %v5588_v10 = vpop.f32.mrf.mxu0 }
 0x2e3   : > { %v5589_v24 = vadd.f32 %v5588_v10, %v5587_v21  ;;  %v7904_v63 = vadd.f32 %v5910_v33, %v3174_v13  ;;  %v3326_v3 = vpop.f32.mrf.mxu1 }
 0x2e4   : > { %v5590_v32 = vpop.f32.mrf.mxu0  ;;  %v7906_v9 = vadd.f32 %v3326_v3, %v3166_v52 }
 0x2e5   : > { %v5913_v16 = vpop.f32.mrf.mxu1  ;;  %v3179_v30 = vadd.f32 %v5589_v24, %v7804_v46 }
 0x2e6   : > { %v5591_v6 = vpop.f32.mrf.mxu0 }
 0x2e7   : > { %v5592_v56 = vadd.f32 %v5591_v6, %v5590_v32  ;;  %v3339_v2 = vpop.f32.mrf.mxu1  ;;  %v7925_v32 = vld [vmem:[%s8181_s4] ss:$0 sm:$0xff] }
 0x2e8   : > { %v5593_v51 = vpop.f32.mrf.mxu0  ;;  %v7911_v43 = vadd.f32 %v3339_v2, %v3179_v30 }
 0x2e9   : > { %v5914_v22 = vpop.f32.mrf.mxu1  ;;  %v3182_v45 = vadd.f32 %v5592_v56, %v2877_v40 }
 0x2ea   : > { %v5594_v15 = vpop.f32.mrf.mxu0 }
 0x2eb   : > { %v5595_v7 = vadd.f32 %v5594_v15, %v5593_v51  ;;  %v3342_v62 = vpop.f32.mrf.mxu1 }
 0x2ec   : > { %v5596_v1 = vpop.f32.mrf.mxu0  ;;  %v7913_v52 = vadd.f32 %v3342_v62, %v3182_v45 }
 0x2ed   : > { %v3187_v14 = vadd.f32 %v5595_v7, %v7816_v17  ;;  %v5639_v46 = vpop.f32.mrf.mxu1 }
 0x2ee   : > { %v5597_v60 = vpop.f32.mrf.mxu0 }
 0x2ef   : > { %v7916_v50 = vadd.f32 %v5913_v16, %v3187_v14  ;;  %v5598_v26 = vadd.f32 %v5597_v60, %v5596_v1  ;;  %v5640_v34 = vpop.f32.mrf.mxu1 }
 0x2f0   : > { %v5933_v20 = vpop.f32.mrf.mxu0  ;;  %v5641_v29 = vadd.f32 %v5640_v34, %v5639_v46 }
 0x2f1   : > { %v3190_v27 = vadd.f32 %v5598_v26, %v7820_v54  ;;  %v5642_v55 = vpop.f32.mrf.mxu1 }
 0x2f2   : > { %v4271_v12 = vpop.f32.mrf.mxu0 }
 0x2f3   : > { %v7919_v44 = vadd.f32 %v5914_v22, %v3190_v27  ;;  %v4272_v21 = vadd.f32 %v5641_v29, %v4271_v12  ;;  %v5643_v13 = vpop.f32.mrf.mxu1 }
 0x2f4   : > { %v5934_v33 = vpop.f32.mrf.mxu0  ;;  %v5644_v10 = vadd.f32 %v5643_v13, %v5642_v55 }
 0x2f5   : > { %v4398_v17 = vadd.f32 %v4272_v21, %v7826_v57  ;;  %v5645_v24 = vpop.f32.mrf.mxu1 }
 0x2f6   : > { %v4274_v3 = vpop.f32.mrf.mxu0 }
 0x2f7   : > { %v4275_v16 = vadd.f32 %v5644_v10, %v4274_v3  ;;  %v5646_v30 = vpop.f32.mrf.mxu1  ;;  %v4437_v2 = vadd.f32 %v7925_v32, %v4398_v17 }
 0x2f8   : > { %v5647_v54 = vadd.f32 %v5646_v30, %v5645_v24  ;;  %v5937_v40 = vpop.f32.mrf.mxu0 }
 0x2f9   : > { %v4399_v6 = vadd.f32 %v4275_v16, %v7833_v5  ;;  %v5648_v56 = vpop.f32.mrf.mxu1  ;;  %v4469_v1 = vmax.f32 %v4437_v2, 0.0 }
 0x2fa   : > { %v4280_v51 = vadd.f32 %v5933_v20, %v5647_v54  ;;  %v4287_v7 = vpop.f32.mrf.mxu0 }
 0x2fb   : > { %v5649_v22 = vpop.f32.mrf.mxu1  ;;  %v4438_v57 = vadd.f32 %v7925_v32, %v4399_v6 }
 0x2fc   : > { %v4400_v45 = vadd.f32 %v4280_v51, %v7823_v49  ;;  %v5650_v15 = vadd.f32 %v5649_v22, %v5648_v56  ;;  %v5938_v27 = vpop.f32.mrf.mxu0 }
 0x2fd   : > { %v5651_v62 = vpop.f32.mrf.mxu1  ;;  %v4470_v14 = vmax.f32 %v4438_v57, 0.0 }
 0x2fe   : > { %v4283_v46 = vadd.f32 %v5934_v33, %v5650_v15  ;;  %v4439_v5 = vadd.f32 %v7925_v32, %v4400_v45  ;;  %v4290_v33 = vpop.f32.mrf.mxu0 }
 0x2ff   : > { %v5652_v60 = vpop.f32.mrf.mxu1  ;;  %v4501_v26 = vpack.c.bf16 %v4470_v14, %v4469_v1 }
 0x300   : > { %v4401_v34 = vadd.f32 %v4283_v46, %v7830_v37  ;;  %v5653_v29 = vadd.f32 %v5652_v60, %v5651_v62  ;;  %v4471_v21 = vmax.f32 %v4439_v5, 0.0  ;;  %v5941_v56 = vpop.f32.mrf.mxu0 }
 0x301   : > { %5979 = vmatprep.mubr.bf16.mxu0 %v4501_v26  ;;  %v5654_v20 = vpop.f32.mrf.mxu1 }
 0x302   : > { %v4440_v55 = vadd.f32 %v7925_v32, %v4401_v34  ;;  %v4288_v12 = vadd.f32 %v5653_v29, %v4287_v7  ;;  %v4303_v62 = vpop.f32.mrf.mxu0 }
 0x303   : > { %v5655_v49 = vpop.f32.mrf.mxu1 }
 0x304   : > { %v4472_v13 = vmax.f32 %v4440_v55, 0.0  ;;  %v4402_v10 = vadd.f32 %v4288_v12, %v7842_v47  ;;  %v5656_v17 = vadd.f32 %v5655_v49, %v5654_v20 }
 0x305   : > { %v5657_v24 = vpop.f32.mrf.mxu1 }
 0x306   : > { %v4502_v3 = vpack.c.bf16 %v4472_v13, %v4471_v21  ;;  %v4291_v16 = vadd.f32 %v5656_v17, %v4290_v33  ;;  %v4441_v6 = vadd.f32 %v7925_v32, %v4402_v10 }
 0x307   : > { %v5658_v30 = vpop.f32.mrf.mxu1 }
 0x308   : > { %v4403_v37 = vadd.f32 %v4291_v16, %v7848_v4  ;;  %v5659_v54 = vadd.f32 %v5658_v30, %v5657_v24  ;;  %5980 = vmatmul.mubr.bf16.vlgmr.msra.gmra.mxu0 %v4502_v3  ;;  %v4473_v15 = vmax.f32 %v4441_v6, 0.0 }
 0x309   : > { %v5660_v2 = vpop.f32.mrf.mxu1 }
 0x30a   : > { %v4296_v51 = vadd.f32 %v5937_v40, %v5659_v54  ;;  %v4442_v22 = vadd.f32 %v7925_v32, %v4403_v37  ;;  %v5942_v40 = vpop.f32.mrf.mxu0 }
 0x30b   : > { %v5661_v57 = vpop.f32.mrf.mxu1 }
 0x30c   : > { %v4404_v47 = vadd.f32 %v4296_v51, %v7837_v18  ;;  %v5662_v45 = vadd.f32 %v5661_v57, %v5660_v2  ;;  %v4474_v7 = vmax.f32 %v4442_v22, 0.0 }
 0x30d   : > { %v5663_v1 = vpop.f32.mrf.mxu1 }
 0x30e   : > { %v4299_v14 = vadd.f32 %v5938_v27, %v5662_v45  ;;  %v4503_v46 = vpack.c.bf16 %v4474_v7, %v4473_v15  ;;  %v4443_v60 = vadd.f32 %v7925_v32, %v4404_v47  ;;  %v4306_v27 = vpop.f32.mrf.mxu0 }
 0x30f   : > { %v5664_v4 = vpop.f32.mrf.mxu1 }
 0x310   : > { %v4405_v26 = vadd.f32 %v4299_v14, %v7845_v38  ;;  %v5665_v5 = vadd.f32 %v5664_v4, %v5663_v1  ;;  %5983 = vmatprep.mubr.bf16.mxu0 %v4503_v46  ;;  %v4475_v55 = vmax.f32 %v4443_v60, 0.0  ;;  %v5945_v16 = vpop.f32.mrf.mxu0 }
 0x311   : > { %v5666_v34 = vpop.f32.mrf.mxu1 }
 0x312   : > { %v4444_v29 = vadd.f32 %v7925_v32, %v4405_v26  ;;  %v4304_v20 = vadd.f32 %v5665_v5, %v4303_v62  ;;  %v4319_v57 = vpop.f32.mrf.mxu0 }
 0x313   : > { %v5667_v18 = vpop.f32.mrf.mxu1 }
 0x314   : > { %v4476_v12 = vmax.f32 %v4444_v29, 0.0  ;;  %v4406_v49 = vadd.f32 %v4304_v20, %v7855_v42  ;;  %v5668_v21 = vadd.f32 %v5667_v18, %v5666_v34 }
 0x315   : > { %v5669_v13 = vpop.f32.mrf.mxu1 }
 0x316   : > { %v4307_v10 = vadd.f32 %v5668_v21, %v4306_v27  ;;  %v4504_v17 = vpack.c.bf16 %v4476_v12, %v4475_v55  ;;  %v4445_v3 = vadd.f32 %v7925_v32, %v4406_v49 }
 0x317   : > { %v5670_v33 = vpop.f32.mrf.mxu1 }
 0x318   : > { %v4407_v38 = vadd.f32 %v4307_v10, %v7862_v36  ;;  %v5671_v24 = vadd.f32 %v5670_v33, %v5669_v13  ;;  %5984 = vmatmul.mubr.bf16.gmra.mxu0 %v4504_v17  ;;  %v4477_v51 = vmax.f32 %v4445_v3, 0.0 }
 0x319   : > { %v5672_v30 = vpop.f32.mrf.mxu1 }
 0x31a   : > { %v4312_v37 = vadd.f32 %v5941_v56, %v5671_v24  ;;  %v4446_v54 = vadd.f32 %v7925_v32, %v4407_v38  ;;  %v5946_v56 = vpop.f32.mrf.mxu0 }
 0x31b   : > { %v5673_v6 = vpop.f32.mrf.mxu1 }
 0x31c   : > { %v4408_v42 = vadd.f32 %v4312_v37, %v7852_v58  ;;  %v5674_v2 = vadd.f32 %v5673_v6, %v5672_v30  ;;  %v4478_v22 = vmax.f32 %v4446_v54, 0.0 }
 0x31d   : > { %v5675_v47 = vpop.f32.mrf.mxu1 }
 0x31e   : > { %v4315_v45 = vadd.f32 %v5942_v40, %v5674_v2  ;;  %v4505_v15 = vpack.c.bf16 %v4478_v22, %v4477_v51  ;;  %v4447_v7 = vadd.f32 %v7925_v32, %v4408_v42  ;;  %v4322_v40 = vpop.f32.mrf.mxu0 }
 0x31f   : > { %v5676_v36 = vpop.f32.mrf.mxu1 }
 0x320   : > { %v4409_v62 = vadd.f32 %v4315_v45, %v7859_v61  ;;  %v5677_v1 = vadd.f32 %v5676_v36, %v5675_v47  ;;  %5987 = vmatprep.mubr.bf16.mxu0 %v4505_v15  ;;  %v4479_v60 = vmax.f32 %v4447_v7, 0.0  ;;  %v5949_v21 = vpop.f32.mrf.mxu0 }
 0x321   : > { %v5678_v14 = vpop.f32.mrf.mxu1 }
 0x322   : > { %v4448_v46 = vadd.f32 %v7925_v32, %v4409_v62  ;;  %v4320_v4 = vadd.f32 %v5677_v1, %v4319_v57  ;;  %v4335_v3 = vpop.f32.mrf.mxu0 }
 0x323   : > { %v5679_v58 = vpop.f32.mrf.mxu1 }
 0x324   : > { %v4480_v26 = vmax.f32 %v4448_v46, 0.0  ;;  %v4410_v5 = vadd.f32 %v4320_v4, %v7870_v25  ;;  %v5680_v34 = vadd.f32 %v5679_v58, %v5678_v14 }
 0x325   : > { %v5681_v29 = vpop.f32.mrf.mxu1 }
 0x326   : > { %v4323_v20 = vadd.f32 %v5680_v34, %v4322_v40  ;;  %v4506_v18 = vpack.c.bf16 %v4480_v26, %v4479_v60  ;;  %v4449_v49 = vadd.f32 %v7925_v32, %v4410_v5 }
 0x327   : > { %v5682_v55 = vpop.f32.mrf.mxu1 }
 0x328   : > { %v4411_v61 = vadd.f32 %v4323_v20, %v7875_v53  ;;  %v5683_v12 = vadd.f32 %v5682_v55, %v5681_v29  ;;  %5988 = vmatmul.mubr.bf16.gmra.mxu0 %v4506_v18  ;;  %v4481_v38 = vmax.f32 %v4449_v49, 0.0 }
 0x329   : > { %v5684_v27 = vpop.f32.mrf.mxu1 }
 0x32a   : > { %v4328_v13 = vadd.f32 %v5945_v16, %v5683_v12  ;;  %v4450_v10 = vadd.f32 %v7925_v32, %v4411_v61  ;;  %v5950_v16 = vpop.f32.mrf.mxu0 }
 0x32b   : > { %v5685_v17 = vpop.f32.mrf.mxu1 }
 0x32c   : > { %v4412_v25 = vadd.f32 %v4328_v13, %v7865_v11  ;;  %v5686_v33 = vadd.f32 %v5685_v17, %v5684_v27  ;;  %v4482_v24 = vmax.f32 %v4450_v10, 0.0  ;;  %v4338_v7 = vpop.f32.mrf.mxu0 }
 0x32d   : > { %v5687_v30 = vpop.f32.mrf.mxu1 }
 0x32e   : > { %v4331_v37 = vadd.f32 %v5946_v56, %v5686_v33  ;;  %v4507_v54 = vpack.c.bf16 %v4482_v24, %v4481_v38  ;;  %v4451_v6 = vadd.f32 %v7925_v32, %v4412_v25  ;;  %v5953_v58 = vpop.f32.mrf.mxu0 }
 0x32f   : > { %v5688_v53 = vpop.f32.mrf.mxu1 }
 0x330   : > { %v4413_v42 = vadd.f32 %v4331_v37, %v7872_v28  ;;  %v5689_v2 = vadd.f32 %v5688_v53, %v5687_v30  ;;  %5991 = vmatprep.mubr.bf16.mxu0 %v4507_v54  ;;  %v4483_v47 = vmax.f32 %v4451_v6, 0.0  ;;  %v4351_v18 = vpop.f32.mrf.mxu0 }
 0x331   : > { %v5690_v51 = vpop.f32.mrf.mxu1 }
 0x332   : > { %v4452_v22 = vadd.f32 %v7925_v32, %v4413_v42  ;;  %v4336_v57 = vadd.f32 %v5689_v2, %v4335_v3 }
 0x333   : > { %v5691_v11 = vpop.f32.mrf.mxu1 }
 0x334   : > { %v4484_v45 = vmax.f32 %v4452_v22, 0.0  ;;  %v4414_v15 = vadd.f32 %v4336_v57, %v7880_v8  ;;  %v5692_v36 = vadd.f32 %v5691_v11, %v5690_v51 }
 0x335   : > { %v5693_v62 = vpop.f32.mrf.mxu1 }
 0x336   : > { %v4339_v1 = vadd.f32 %v5692_v36, %v4338_v7  ;;  %v4508_v56 = vpack.c.bf16 %v4484_v45, %v4483_v47  ;;  %v4453_v4 = vadd.f32 %v7925_v32, %v4414_v15 }
 0x337   : > { %v5694_v14 = vpop.f32.mrf.mxu1 }
 0x338   : > { %v4415_v28 = vadd.f32 %v4339_v1, %v7885_v35  ;;  %v5695_v46 = vadd.f32 %v5694_v14, %v5693_v62  ;;  %5992 = vmatmul.mubr.bf16.gmra.mxu0 %v4508_v56  ;;  %v4485_v29 = vmax.f32 %v4453_v4, 0.0 }
 0x339   : > { %v5696_v60 = vpop.f32.mrf.mxu1 }
 0x33a   : > { %v4344_v26 = vadd.f32 %v5949_v21, %v5695_v46  ;;  %v4454_v5 = vadd.f32 %v7925_v32, %v4415_v28  ;;  %v5954_v21 = vpop.f32.mrf.mxu0 }
 0x33b   : > { %v5697_v34 = vpop.f32.mrf.mxu1 }
 0x33c   : > { %v4416_v8 = vadd.f32 %v4344_v26, %v7878_v0  ;;  %v5698_v40 = vadd.f32 %v5697_v34, %v5696_v60  ;;  %v4486_v20 = vmax.f32 %v4454_v5, 0.0  ;;  %v4354_v30 = vpop.f32.mrf.mxu0 }
 0x33d   : > { %v5699_v55 = vpop.f32.mrf.mxu1 }
 0x33e   : > { %v4347_v61 = vadd.f32 %v5950_v16, %v5698_v40  ;;  %v4509_v12 = vpack.c.bf16 %v4486_v20, %v4485_v29  ;;  %v4455_v49 = vadd.f32 %v7925_v32, %v4416_v8  ;;  %v5957_v16 = vpop.f32.mrf.mxu0 }
 0x33f   : > { %v5700_v35 = vpop.f32.mrf.mxu1 }
 0x340   : > { %v4417_v27 = vadd.f32 %v4347_v61, %v7883_v48  ;;  %v5701_v13 = vadd.f32 %v5700_v35, %v5699_v55  ;;  %5995 = vmatprep.mubr.bf16.mxu0 %v4509_v12  ;;  %v4487_v33 = vmax.f32 %v4455_v49, 0.0  ;;  %v4367_v36 = vpop.f32.mrf.mxu0 }
 0x341   : > { %v5702_v10 = vpop.f32.mrf.mxu1 }
 0x342   : > { %v4456_v17 = vadd.f32 %v7925_v32, %v4417_v27  ;;  %v4352_v25 = vadd.f32 %v5701_v13, %v4351_v18  ;;  %v5958_v46 = vpop.f32.mrf.mxu0 }
 0x343   : > { %v5703_v0 = vpop.f32.mrf.mxu1 }
 0x344   : > { %v4488_v38 = vmax.f32 %v4456_v17, 0.0  ;;  %v4418_v24 = vadd.f32 %v4352_v25, %v7892_v31  ;;  %v5704_v3 = vadd.f32 %v5703_v0, %v5702_v10  ;;  %v4370_v40 = vpop.f32.mrf.mxu0 }
 0x345   : > { %v5705_v37 = vpop.f32.mrf.mxu1 }
 0x346   : > { %v4355_v54 = vadd.f32 %v5704_v3, %v4354_v30  ;;  %v4510_v53 = vpack.c.bf16 %v4488_v38, %v4487_v33  ;;  %v4457_v2 = vadd.f32 %v7925_v32, %v4418_v24  ;;  %v5961_v61 = vpop.f32.mrf.mxu0 }
 0x347   : > { %v5706_v6 = vpop.f32.mrf.mxu1 }
 0x348   : > { %v4419_v48 = vadd.f32 %v4355_v54, %v7896_v39  ;;  %v5707_v42 = vadd.f32 %v5706_v6, %v5705_v37  ;;  %5996 = vmatmul.mubr.bf16.gmra.mxu0 %v4510_v53  ;;  %v4489_v45 = vmax.f32 %v4457_v2, 0.0  ;;  %v4383_v10 = vpop.f32.mrf.mxu0 }
 0x349   : > { %v5708_v51 = vpop.f32.mrf.mxu1 }
 0x34a   : > { %v4360_v22 = vadd.f32 %v5953_v58, %v5707_v42  ;;  %v4458_v57 = vadd.f32 %v7925_v32, %v4419_v48 }
 0x34b   : > { %v5709_v11 = vpop.f32.mrf.mxu1 }
 0x34c   : > { %v4420_v31 = vadd.f32 %v4360_v22, %v7888_v23  ;;  %v5710_v47 = vadd.f32 %v5709_v11, %v5708_v51  ;;  %v4490_v15 = vmax.f32 %v4458_v57, 0.0 }
 0x34d   : > { %v5711_v7 = vpop.f32.mrf.mxu1 }
 0x34e   : > { %v4363_v62 = vadd.f32 %v5954_v21, %v5710_v47  ;;  %v4511_v1 = vpack.c.bf16 %v4490_v15, %v4489_v45  ;;  %v4459_v56 = vadd.f32 %v7925_v32, %v4420_v31 }
 0x34f   : > { %v5712_v39 = vpop.f32.mrf.mxu1 }
 0x350   : > { %v4421_v14 = vadd.f32 %v4363_v62, %v7894_v41  ;;  %v5713_v28 = vadd.f32 %v5712_v39, %v5711_v7  ;;  %5999 = vmatprep.mubr.bf16.mxu0 %v4511_v1  ;;  %v4491_v26 = vmax.f32 %v4459_v56, 0.0 }
 0x351   : > { %v5714_v4 = vpop.f32.mrf.mxu1 }
 0x352   : > { %v4460_v58 = vadd.f32 %v7925_v32, %v4421_v14  ;;  %v4368_v60 = vadd.f32 %v5713_v28, %v4367_v36 }
 0x353   : > { %v5715_v23 = vpop.f32.mrf.mxu1 }
 0x354   : > { %v4492_v5 = vmax.f32 %v4460_v58, 0.0  ;;  %v4422_v34 = vadd.f32 %v4368_v60, %v7901_v59  ;;  %v5716_v8 = vadd.f32 %v5715_v23, %v5714_v4 }
 0x355   : > { %v5717_v29 = vpop.f32.mrf.mxu1 }
 0x356   : > { %v4371_v20 = vadd.f32 %v5716_v8, %v4370_v40  ;;  %v4512_v18 = vpack.c.bf16 %v4492_v5, %v4491_v26  ;;  %v4461_v35 = vadd.f32 %v7925_v32, %v4422_v34  ;;  %v4783_v34 = vld [vmem:[%s6602_s16 + $0x10] sm:$0xff]  ;;  %v4781_v40 = vld [vmem:[%s6602_s16] sm:$0xff] }
 0x357   : > { %v5718_v55 = vpop.f32.mrf.mxu1 }
 0x358   : > { %v4423_v41 = vadd.f32 %v4371_v20, %v7906_v9  ;;  %v5719_v12 = vadd.f32 %v5718_v55, %v5717_v29  ;;  %6000 = vmatmul.mubr.bf16.gmra.mxu0 %v4512_v18  ;;  %v4493_v25 = vmax.f32 %v4461_v35, 0.0  ;;  %v5962_v9 = vpop.f32.mrf.mxu0  ;;  %v4784_v18 = vld [vmem:[%s6602_s16 + $0x18] sm:$0xff]  ;;  %v4782_v35 = vld [vmem:[%s6602_s16 + $0x8] sm:$0xff] }
 0x359   : > { %v5720_v49 = vpop.f32.mrf.mxu1 }
 0x35a   : > { %v4376_v27 = vadd.f32 %v5957_v16, %v5719_v12  ;;  %v4462_v13 = vadd.f32 %v7925_v32, %v4423_v41 }
 0x35b   : > { %v5721_v21 = vpop.f32.mrf.mxu1 }
 0x35c   : > { %v4424_v59 = vadd.f32 %v4376_v27, %v7899_v19  ;;  %v5722_v17 = vadd.f32 %v5721_v21, %v5720_v49  ;;  %v4494_v0 = vmax.f32 %v4462_v13, 0.0  ;;  %v4386_v19 = vpop.f32.mrf.mxu0 }
 0x35d   : > { %v5723_v33 = vpop.f32.mrf.mxu1 }
 0x35e   : > { %v4379_v38 = vadd.f32 %v5958_v46, %v5722_v17  ;;  %v4513_v24 = vpack.c.bf16 %v4494_v0, %v4493_v25  ;;  %v4463_v30 = vadd.f32 %v7925_v32, %v4424_v59  ;;  %v4787_v25 = vld [vmem:[%s6602_s16 + $0x30] sm:$0xff] }
 0x35f   : > { %v5724_v3 = vpop.f32.mrf.mxu1 }
 0x360   : > { %v4425_v37 = vadd.f32 %v4379_v38, %v7904_v63  ;;  %v5725_v54 = vadd.f32 %v5724_v3, %v5723_v33  ;;  %6003 = vmatprep.mubr.bf16.mxu0 %v4513_v24  ;;  %v4495_v2 = vmax.f32 %v4463_v30, 0.0  ;;  %v4785_v38 = vld [vmem:[%s6602_s16 + $0x20] sm:$0xff]  ;;  %v4788_v30 = vld [vmem:[%s6602_s16 + $0x38] sm:$0xff] }
 0x361   : > { %v5726_v53 = vpop.f32.mrf.mxu1 }
 0x362   : > { %v4464_v6 = vadd.f32 %v7925_v32, %v4425_v37  ;;  %v4384_v48 = vadd.f32 %v5725_v54, %v4383_v10 }
 0x363   : > { %v5727_v42 = vpop.f32.mrf.mxu1 }
 0x364   : > { %v4496_v16 = vmax.f32 %v4464_v6, 0.0  ;;  %v4426_v51 = vadd.f32 %v4384_v48, %v7911_v43  ;;  %v5728_v22 = vadd.f32 %v5727_v42, %v5726_v53  ;;  %v4786_v48 = vld [vmem:[%s6602_s16 + $0x28] sm:$0xff] }
 0x365   : > { %v5729_v57 = vpop.f32.mrf.mxu1 }
 0x366   : > { %v4387_v11 = vadd.f32 %v5728_v22, %v4386_v19  ;;  %v4514_v31 = vpack.c.bf16 %v4496_v16, %v4495_v2  ;;  %v4465_v45 = vadd.f32 %v7925_v32, %v4426_v51 }
 0x367   : > { %v5730_v47 = vpop.f32.mrf.mxu1 }
 0x368   : > { %v4427_v63 = vadd.f32 %v4387_v11, %v7913_v52  ;;  %v5731_v15 = vadd.f32 %v5730_v47, %v5729_v57  ;;  %6004 = vmatmul.mubr.bf16.gmra.mxu0 %v4514_v31  ;;  %v4497_v39 = vmax.f32 %v4465_v45, 0.0  ;;  %v4791_v11 = vld [vmem:[%s6602_s16 + $0x50] sm:$0xff]  ;;  %v4789_v45 = vld [vmem:[%s6602_s16 + $0x40] sm:$0xff] }
 0x369   : > { %v5732_v36 = vpop.f32.mrf.mxu1 }
 0x36a   : > { %v4466_v7 = vadd.f32 %v7925_v32, %v4427_v63  ;;  %v4392_v62 = vadd.f32 %v5961_v61, %v5731_v15 }
 0x36b   : > { %v5733_v1 = vpop.f32.mrf.mxu1 }
 0x36c   : > { %v4498_v56 = vmax.f32 %v4466_v7, 0.0  ;;  %v4428_v43 = vadd.f32 %v4392_v62, %v7916_v50  ;;  %v5734_v14 = vadd.f32 %v5733_v1, %v5732_v36  ;;  %v7993_v50 = vld [vmem:[%s8183_s6] ss:$0 sm:$0xff]  ;;  %v4792_v7 = vld [vmem:[%s6602_s16 + $0x58] sm:$0xff] }
 0x36e   : > { %v4395_v28 = vadd.f32 %v5962_v9, %v5734_v14  ;;  %v4515_v46 = vpack.c.bf16 %v4498_v56, %v4497_v39  ;;  %v4467_v4 = vadd.f32 %v7925_v32, %v4428_v43  ;;  %v4790_v43 = vld [vmem:[%s6602_s16 + $0x48] sm:$0xff] }
 0x370   : > { %v4429_v52 = vadd.f32 %v4395_v28, %v7919_v44  ;;  %6007 = vmatprep.mubr.bf16.mxu0 %v4515_v46  ;;  %v4499_v60 = vmax.f32 %v4467_v4, 0.0 }
 0x372   : > { %v4468_v58 = vadd.f32 %v7925_v32, %v4429_v52 }
 0x374   : > { %v4500_v23 = vmax.f32 %v4468_v58, 0.0 }
 0x376   : > { %v4516_v26 = vpack.c.bf16 %v4500_v23, %v4499_v60  ;;  %v4795_v23 = vld [vmem:[%s6602_s16 + $0x70] sm:$0xff] }
 0x378   : > { %6008 = vmatmul.mubr.bf16.gmra.mxu0 %v4516_v26 }
 0x3c8   : > { %v5981_v5 = vpop.f32.mrf.mxu0 }
 0x3c9   : > { %v4751_v8 = vadd.f32 %v5981_v5, %v7993_v50 }
 0x3ca   : > { %v4615_v44 = vpop.f32.mrf.mxu0 }
 0x3cb   : > { %v4815_v29 = vadd.f32 %v4783_v34, %v4751_v8  ;;  %v4749_v32 = vadd.f32 %v7993_v50, %v4615_v44  ;;  %v4793_v34 = vld [vmem:[%s6602_s16 + $0x60] sm:$0xff] }
 0x3cc   : > { %v5982_v20 = vpop.f32.mrf.mxu0 }
 0x3cd   : > { %v4847_v55 = vmax.f32 %v4815_v29, 0.0  ;;  %v4813_v61 = vadd.f32 %v4781_v40, %v4749_v32  ;;  %v4752_v41 = vadd.f32 %v5982_v20, %v7993_v50  ;;  %v4796_v29 = vld [vmem:[%s6602_s16 + $0x78] sm:$0xff] }
 0x3ce   : > { %v4618_v12 = vpop.f32.mrf.mxu0 }
 0x3cf   : > { %4879 = vst.msk [vmem:[%s8004_s30 + $0x10] sm:$0xff] %vm384_vm0, %v4847_v55  ;;  %v4845_v49 = vmax.f32 %v4813_v61, 0.0  ;;  %v4816_v27 = vadd.f32 %v4784_v18, %v4752_v41  ;;  %v4750_v13 = vadd.f32 %v7993_v50, %v4618_v12  ;;  %v4794_v61 = vld [vmem:[%s6602_s16 + $0x68] sm:$0xff] }
 0x3d1   : > { %4877 = vst.msk [vmem:[%s8004_s30] sm:$0xff] %vm384_vm0, %v4845_v49  ;;  %v4848_v21 = vmax.f32 %v4816_v27, 0.0  ;;  %v4814_v10 = vadd.f32 %v4782_v35, %v4750_v13 }
 0x3d3   : > { %4880 = vst.msk [vmem:[%s8004_s30 + $0x18] sm:$0xff] %vm384_vm0, %v4848_v21  ;;  %v4846_v59 = vmax.f32 %v4814_v10, 0.0  ;;  %v4799_v10 = vld [vmem:[%s6602_s16 + $0x90] sm:$0xff] }
 0x3d5   : > { %4878 = vst.msk [vmem:[%s8004_s30 + $0x8] sm:$0xff] %vm384_vm0, %v4846_v59 }
 0x3d8   : > { %v5985_v17 = vpop.f32.mrf.mxu0 }
 0x3d9   : > { %v4755_v0 = vadd.f32 %v5985_v17, %v7993_v50 }
 0x3da   : > { %v4631_v33 = vpop.f32.mrf.mxu0 }
 0x3db   : > { %v4819_v24 = vadd.f32 %v4787_v25, %v4755_v0  ;;  %v4753_v3 = vadd.f32 %v7993_v50, %v4631_v33  ;;  %v4797_v25 = vld [vmem:[%s6602_s16 + $0x80] sm:$0xff] }
 0x3dc   : > { %v5986_v9 = vpop.f32.mrf.mxu0 }
 0x3dd   : > { %v4851_v37 = vmax.f32 %v4819_v24, 0.0  ;;  %v4817_v54 = vadd.f32 %v4785_v38, %v4753_v3  ;;  %v4756_v53 = vadd.f32 %v5986_v9, %v7993_v50  ;;  %v4800_v24 = vld [vmem:[%s6602_s16 + $0x98] sm:$0xff] }
 0x3de   : > { %v4634_v6 = vpop.f32.mrf.mxu0 }
 0x3df   : > { %4883 = vst.msk [vmem:[%s8004_s30 + $0x30] sm:$0xff] %vm384_vm0, %v4851_v37  ;;  %v4849_v42 = vmax.f32 %v4817_v54, 0.0  ;;  %v4820_v19 = vadd.f32 %v4788_v30, %v4756_v53  ;;  %v4754_v2 = vadd.f32 %v7993_v50, %v4634_v6  ;;  %v4798_v54 = vld [vmem:[%s6602_s16 + $0x88] sm:$0xff] }
 0x3e1   : > { %4881 = vst.msk [vmem:[%s8004_s30 + $0x20] sm:$0xff] %vm384_vm0, %v4849_v42  ;;  %v4852_v16 = vmax.f32 %v4820_v19, 0.0  ;;  %v4818_v51 = vadd.f32 %v4786_v48, %v4754_v2 }
 0x3e3   : > { %4884 = vst.msk [vmem:[%s8004_s30 + $0x38] sm:$0xff] %vm384_vm0, %v4852_v16  ;;  %v4850_v22 = vmax.f32 %v4818_v51, 0.0  ;;  %v4803_v51 = vld [vmem:[%s6602_s16 + $0xb0] sm:$0xff] }
 0x3e5   : > { %4882 = vst.msk [vmem:[%s8004_s30 + $0x28] sm:$0xff] %vm384_vm0, %v4850_v22 }
 0x3e8   : > { %v5989_v57 = vpop.f32.mrf.mxu0 }
 0x3e9   : > { %v4759_v31 = vadd.f32 %v5989_v57, %v7993_v50 }
 0x3ea   : > { %v4647_v47 = vpop.f32.mrf.mxu0 }
 0x3eb   : > { %v4823_v63 = vadd.f32 %v4791_v11, %v4759_v31  ;;  %v4757_v15 = vadd.f32 %v7993_v50, %v4647_v47  ;;  %v4801_v11 = vld [vmem:[%s6602_s16 + $0xa0] sm:$0xff] }
 0x3ec   : > { %v5990_v36 = vpop.f32.mrf.mxu0 }
 0x3ed   : > { %v4855_v62 = vmax.f32 %v4823_v63, 0.0  ;;  %v4821_v1 = vadd.f32 %v4789_v45, %v4757_v15  ;;  %v4760_v39 = vadd.f32 %v5990_v36, %v7993_v50  ;;  %v4804_v63 = vld [vmem:[%s6602_s16 + $0xb8] sm:$0xff] }
 0x3ee   : > { %v4650_v56 = vpop.f32.mrf.mxu0 }
 0x3ef   : > { %4887 = vst.msk [vmem:[%s8004_s30 + $0x50] sm:$0xff] %vm384_vm0, %v4855_v62  ;;  %v4853_v14 = vmax.f32 %v4821_v1, 0.0  ;;  %v4824_v28 = vadd.f32 %v4792_v7, %v4760_v39  ;;  %v4758_v46 = vadd.f32 %v7993_v50, %v4650_v56  ;;  %v4802_v1 = vld [vmem:[%s6602_s16 + $0xa8] sm:$0xff] }
 0x3f1   : > { %4885 = vst.msk [vmem:[%s8004_s30 + $0x40] sm:$0xff] %vm384_vm0, %v4853_v14  ;;  %v4856_v4 = vmax.f32 %v4824_v28, 0.0  ;;  %v4822_v52 = vadd.f32 %v4790_v43, %v4758_v46 }
 0x3f3   : > { %4888 = vst.msk [vmem:[%s8004_s30 + $0x58] sm:$0xff] %vm384_vm0, %v4856_v4  ;;  %v4854_v58 = vmax.f32 %v4822_v52, 0.0  ;;  %v4807_v52 = vld [vmem:[%s6602_s16 + $0xd0] sm:$0xff] }
 0x3f5   : > { %4886 = vst.msk [vmem:[%s8004_s30 + $0x48] sm:$0xff] %vm384_vm0, %v4854_v58 }
 0x3f8   : > { %v5993_v60 = vpop.f32.mrf.mxu0 }
 0x3f9   : > { %v4763_v26 = vadd.f32 %v5993_v60, %v7993_v50 }
 0x3fa   : > { %v4663_v5 = vpop.f32.mrf.mxu0 }
 0x3fb   : > { %v4827_v8 = vadd.f32 %v4795_v23, %v4763_v26  ;;  %v4761_v44 = vadd.f32 %v7993_v50, %v4663_v5  ;;  %v4805_v23 = vld [vmem:[%s6602_s16 + $0xc0] sm:$0xff] }
 0x3fc   : > { %v5994_v40 = vpop.f32.mrf.mxu0 }
 0x3fd   : > { %v4859_v32 = vmax.f32 %v4827_v8, 0.0  ;;  %v4825_v20 = vadd.f32 %v4793_v34, %v4761_v44  ;;  %v4764_v18 = vadd.f32 %v5994_v40, %v7993_v50  ;;  %v4808_v8 = vld [vmem:[%s6602_s16 + $0xd8] sm:$0xff] }
 0x3fe   : > { %v4666_v55 = vpop.f32.mrf.mxu0 }
 0x3ff   : > { %4891 = vst.msk [vmem:[%s8004_s30 + $0x70] sm:$0xff] %vm384_vm0, %v4859_v32  ;;  %v4857_v41 = vmax.f32 %v4825_v20, 0.0  ;;  %v4828_v12 = vadd.f32 %v4796_v29, %v4764_v18  ;;  %v4762_v35 = vadd.f32 %v7993_v50, %v4666_v55  ;;  %v4806_v20 = vld [vmem:[%s6602_s16 + $0xc8] sm:$0xff] }
 0x401   : > { %4889 = vst.msk [vmem:[%s8004_s30 + $0x60] sm:$0xff] %vm384_vm0, %v4857_v41  ;;  %v4860_v49 = vmax.f32 %v4828_v12, 0.0  ;;  %v4826_v27 = vadd.f32 %v4794_v61, %v4762_v35 }
 0x403   : > { %4892 = vst.msk [vmem:[%s8004_s30 + $0x78] sm:$0xff] %vm384_vm0, %v4860_v49  ;;  %v4858_v13 = vmax.f32 %v4826_v27, 0.0  ;;  %v4811_v27 = vld [vmem:[%s6602_s16 + $0xf0] sm:$0xff] }
 0x405   : > { %4890 = vst.msk [vmem:[%s8004_s30 + $0x68] sm:$0xff] %vm384_vm0, %v4858_v13 }
 0x408   : > { %v5997_v21 = vpop.f32.mrf.mxu0 }
 0x409   : > { %v4767_v59 = vadd.f32 %v5997_v21, %v7993_v50 }
 0x40a   : > { %v4679_v17 = vpop.f32.mrf.mxu0 }
 0x40b   : > { %v4831_v0 = vadd.f32 %v4799_v10, %v4767_v59  ;;  %v4765_v33 = vadd.f32 %v7993_v50, %v4679_v17  ;;  %v4809_v10 = vld [vmem:[%s6602_s16 + $0xe0] sm:$0xff] }
 0x40c   : > { %v5998_v38 = vpop.f32.mrf.mxu0 }
 0x40d   : > { %v4863_v3 = vmax.f32 %v4831_v0, 0.0  ;;  %v4829_v9 = vadd.f32 %v4797_v25, %v4765_v33  ;;  %v4768_v30 = vadd.f32 %v5998_v38, %v7993_v50  ;;  %v4812_v0 = vld [vmem:[%s6602_s16 + $0xf8] sm:$0xff] }
 0x40e   : > { %v4682_v37 = vpop.f32.mrf.mxu0 }
 0x40f   : > { %4895 = vst.msk [vmem:[%s8004_s30 + $0x90] sm:$0xff] %vm384_vm0, %v4863_v3  ;;  %v4861_v53 = vmax.f32 %v4829_v9, 0.0  ;;  %v4832_v6 = vadd.f32 %v4800_v24, %v4768_v30  ;;  %v4766_v48 = vadd.f32 %v7993_v50, %v4682_v37  ;;  %v4810_v9 = vld [vmem:[%s6602_s16 + $0xe8] sm:$0xff]  ;;  %s6360_s16 = scalar_lea.vmem %s8130_s17, 4096 }
 0x410   : > { %p6361_p3 = scmp.ne.s32.totalorder %s8130_s17, %s6360_s16  ;;  %p6368_p2 = scmp.lt.s32.totalorder %s6366_s12, %s6360_s16 }
 0x411   : > { %4893 = vst.msk [vmem:[%s8004_s30 + $0x80] sm:$0xff] %vm384_vm0, %v4861_v53  ;;  %v4864_v42 = vmax.f32 %v4832_v6, 0.0  ;;  %v4830_v19 = vadd.f32 %v4798_v54, %v4766_v48 }
 0x412   : > { %p6362_p7 = pnand %p6361_p3, %p8210_p11  ;;  %p6369_p13 = por %p6368_p2, %p6367_p10 }
 0x413   : > { %4896 = vst.msk [vmem:[%s8004_s30 + $0x98] sm:$0xff] %vm384_vm0, %v4864_v42  ;;  %v4862_v2 = vmax.f32 %v4830_v19, 0.0 }
 0x414   : > { %p6363_p12 = pneg %p6362_p7 }
 0x415   : > { %4894 = vst.msk [vmem:[%s8004_s30 + $0x88] sm:$0xff] %vm384_vm0, %v4862_v2 }
 0x416   : > { %p6370_p0 = pnand %p6369_p13, %p6363_p12 }
 0x418   : > { %v6001_v16 = vpop.f32.mrf.mxu0 }
 0x419   : > { %v4771_v22 = vadd.f32 %v6001_v16, %v7993_v50 }
 0x41a   : > { %v4695_v57 = vpop.f32.mrf.mxu0 }
 0x41b   : > { %v4835_v31 = vadd.f32 %v4803_v51, %v4771_v22  ;;  %v4769_v47 = vadd.f32 %v7993_v50, %v4695_v57 }
 0x41c   : > { %v6002_v45 = vpop.f32.mrf.mxu0 }
 0x41d   : > { %v4867_v15 = vmax.f32 %v4835_v31, 0.0  ;;  %v4833_v36 = vadd.f32 %v4801_v11, %v4769_v47  ;;  %v4772_v7 = vadd.f32 %v6002_v45, %v7993_v50 }
 0x41e   : > { %v4698_v62 = vpop.f32.mrf.mxu0 }
 0x41f   : > { %4899 = vst.msk [vmem:[%s8004_s30 + $0xb0] sm:$0xff] %vm384_vm0, %v4867_v15  ;;  %v4865_v39 = vmax.f32 %v4833_v36, 0.0  ;;  %v4836_v56 = vadd.f32 %v4804_v63, %v4772_v7  ;;  %v4770_v43 = vadd.f32 %v7993_v50, %v4698_v62 }
 0x421   : > { %4897 = vst.msk [vmem:[%s8004_s30 + $0xa0] sm:$0xff] %vm384_vm0, %v4865_v39  ;;  %v4868_v14 = vmax.f32 %v4836_v56, 0.0  ;;  %v4834_v28 = vadd.f32 %v4802_v1, %v4770_v43 }
 0x423   : > { %4900 = vst.msk [vmem:[%s8004_s30 + $0xb8] sm:$0xff] %vm384_vm0, %v4868_v14  ;;  %v4866_v46 = vmax.f32 %v4834_v28, 0.0 }
 0x425   : > { %4898 = vst.msk [vmem:[%s8004_s30 + $0xa8] sm:$0xff] %vm384_vm0, %v4866_v46 }
 0x428   : > { %v6005_v4 = vpop.f32.mrf.mxu0 }
 0x429   : > { %v4775_v58 = vadd.f32 %v6005_v4, %v7993_v50 }
 0x42a   : > { %v4711_v60 = vpop.f32.mrf.mxu0 }
 0x42b   : > { %v4839_v26 = vadd.f32 %v4807_v52, %v4775_v58  ;;  %v4773_v5 = vadd.f32 %v7993_v50, %v4711_v60 }
 0x42c   : > { %v6006_v34 = vpop.f32.mrf.mxu0 }
 0x42d   : > { %v4871_v44 = vmax.f32 %v4839_v26, 0.0  ;;  %v4837_v40 = vadd.f32 %v4805_v23, %v4773_v5  ;;  %v4776_v29 = vadd.f32 %v6006_v34, %v7993_v50 }
 0x42e   : > { %v4714_v32 = vpop.f32.mrf.mxu0 }
 0x42f   : > { %4903 = vst.msk [vmem:[%s8004_s30 + $0xd0] sm:$0xff] %vm384_vm0, %v4871_v44  ;;  %v4869_v18 = vmax.f32 %v4837_v40, 0.0  ;;  %v4840_v55 = vadd.f32 %v4808_v8, %v4776_v29  ;;  %v4774_v61 = vadd.f32 %v7993_v50, %v4714_v32 }
 0x431   : > { %4901 = vst.msk [vmem:[%s8004_s30 + $0xc0] sm:$0xff] %vm384_vm0, %v4869_v18  ;;  %v4872_v41 = vmax.f32 %v4840_v55, 0.0  ;;  %v4838_v12 = vadd.f32 %v4806_v20, %v4774_v61 }
 0x433   : > { %4904 = vst.msk [vmem:[%s8004_s30 + $0xd8] sm:$0xff] %vm384_vm0, %v4872_v41  ;;  %v4870_v35 = vmax.f32 %v4838_v12, 0.0 }
 0x435   : > { %4902 = vst.msk [vmem:[%s8004_s30 + $0xc8] sm:$0xff] %vm384_vm0, %v4870_v35 }
 0x438   : > { %v6009_v49 = vpop.f32.mrf.mxu0 }
 0x439   : > { %v4779_v13 = vadd.f32 %v6009_v49, %v7993_v50 }
 0x43a   : > { %v4727_v21 = vpop.f32.mrf.mxu0 }
 0x43b   : > { %v4843_v59 = vadd.f32 %v4811_v27, %v4779_v13  ;;  %v4777_v17 = vadd.f32 %v7993_v50, %v4727_v21 }
 0x43c   : > { %v6010_v25 = vpop.f32.mrf.mxu0 }
 0x43d   : > { %v4875_v33 = vmax.f32 %v4843_v59, 0.0  ;;  %v4841_v38 = vadd.f32 %v4809_v10, %v4777_v17  ;;  %v4780_v24 = vadd.f32 %v6010_v25, %v7993_v50 }
 0x43e   : > { %v4730_v3 = vpop.f32.mrf.mxu0 }
 0x43f   : > { %4907 = vst.msk [vmem:[%s8004_s30 + $0xf0] sm:$0xff] %vm384_vm0, %v4875_v33  ;;  %v4873_v30 = vmax.f32 %v4841_v38, 0.0  ;;  %v4844_v37 = vadd.f32 %v4812_v0, %v4780_v24  ;;  %v4778_v54 = vadd.f32 %v7993_v50, %v4730_v3 }
 0x441   : > { %4905 = vst.msk [vmem:[%s8004_s30 + $0xe0] sm:$0xff] %vm384_vm0, %v4873_v30  ;;  %v4876_v53 = vmax.f32 %v4844_v37, 0.0  ;;  %v4842_v6 = vadd.f32 %v4810_v9, %v4778_v54 }
 0x443   : > { %4908 = vst.msk [vmem:[%s8004_s30 + $0xf8] sm:$0xff] %vm384_vm0, %v4876_v53  ;;  %v4874_v48 = vmax.f32 %v4842_v6, 0.0 }
 0x445   : > { %4906 = vst.msk [vmem:[%s8004_s30 + $0xe8] sm:$0xff] %vm384_vm0, %v4874_v48 }
 0x446   : > { %6373 = shalt.err (!%p6370_p0)
}
 0x447   : > { %s6374_s9 = scalar_lea.hbm %s8128_s20, 4096  ;;  %s6378_s15 = scalar_lea.hbm %s8184_s7, 8192 }
 0x448   : > { %p6375_p5 = scmp.ne.s32.totalorder %s8128_s20, %s6374_s9  ;;  %p6379_p4 = scmp.lt.s32.totalorder %s8128_s20, %s8184_s7 }
 0x449   : > { %p6380_p6 = scmp.lt.s32.totalorder %s6378_s15, %s6374_s9 }
 0x44a   : > { %p6376_p9 = pnand %p6375_p5, %p8210_p11 }
 0x44b   : > { %p6381_p8 = por %p6380_p6, %p6379_p4 }
 0x44c   : > { %p6377_p1 = pneg %p6376_p9 }
 0x44e   : > { %p6382_p3 = pnand %p6381_p8, %p6377_p1 }
 0x450   : > { %6385 = shalt.err (!%p6382_p3)
}
 0x451   : > { %s6438_s23 = smov 128   ;;  %s6439_s11 = smov 8  }
 0x452   : > { %6021 = dma.vmem_to_hbm [thread:$0]  (%p8210_p11), %s8130_s17, 4096, %s8128_s20, %s4910_s28, %s6438_s23, %s6438_s23, %s6439_s11  }
 0x453 PF: > { %s4938_s16 = sand.u32 1, %s6416_s24   ;;  %p8211_p7 = scmp.ne.s32.totalorder %s8191_s8, 0 }
 0x454   : > { %p8212_p12 = scmp.ge.s32.totalorder %s6428_s27, 2  ;;  %s4939_s18 = scalar_lea.sflag [#allocation5], %s4938_s16 }
 0x456   : > { %p6032_p10 = pnand %p8212_p12, %p8211_p7 }
 0x458   : > { %p6033_p2 = pneg %p6032_p10 }
 0x45a   : > { %6411 = dma.done.wait (%p6033_p2), %s4939_s18, 4096  }
 0x45b   : > { %6413 = vsyncadd (%p6033_p2), %s4939_s18, 4294963200  ;;  %p21_p13 = scmp.ge.s32.totalorder %s6534_s13, 4   ;;  %s8213_s24 = smov %s6420_s25 }
 0x45c   : > { %s8214_s25 = smov %s6424_s26  ;;  %s8215_s26 = smov %s6551_s21 }
 0x45d   : > { %s8216_s27 = smov %s6534_s13  ;;  %23 = sbr.rel (!%p21_p13) target bundleno = 8 (0x8), region = 102 }
 0x462   :  { %4944 = vsyncpa [#allocation4], 1 }
 0x463   :  { %4946 = vsyncpa [#allocation4 + $0x1], 1 }
 0x464   :  { %4947 = vsyncpa [#allocation7], 1 }
 0x465   :  { %4948 = vsyncpa [#allocation5], 1 }
 0x466   :  { %4950 = vsyncpa [#allocation5 + $0x1], 1 }

</bundles_post_ra>
